<compile_context>
chip_gen: v6e
topology: v6e:2x2x1
jax: 0.10.0
libtpu: 0.0.40
codegen_flags: <defaults>
</compile_context>

<pallas_src>
import functools

import numpy as np
import jax
import jax.numpy as jnp
from jax.experimental import pallas as pl
from jax.experimental.pallas import tpu as pltpu


# ----------------------------- synthetic "args" ------------------------------
class Args:
    num_particles = 8
    h = 32            # hidden_dim
    map_size = 16     # <= 18 so conv1_2 / conv2_2 are not constructed
    act_size = 4
    emb_map = 32
    emb_obs = 16
    emb_act = 16
    dropout = 0.5
    model = "PFGRU"
    obs_num = 5
    resamp_alpha = 0.5
    bp_length = 4


# ---------------- kernel 1: conv-as-matmul + ReLU + folded BatchNorm ----------
def _conv_bn_kernel(x_ref, w_ref, scale_ref, shift_ref, o_ref):
    acc = jnp.dot(x_ref[...], w_ref[...], preferred_element_type=jnp.float32)
    o_ref[...] = jnp.maximum(acc, 0.0) * scale_ref[...] + shift_ref[...]


def conv_bn(patches, w, scale, shift):
    M, K = patches.shape
    K2, N = w.shape
    assert K == K2
    return pl.pallas_call(
        _conv_bn_kernel,
        out_shape=jax.ShapeDtypeStruct((M, N), jnp.float32),
    )(patches, w, scale.reshape(1, N), shift.reshape(1, N))


# ------- kernel 2: map/obs/act embedding head + hoisted GRU x-projection ------
def _head_kernel(f_ref, wm_ref, bm_ref, w23_ref, b23_ref,
                 oa_ref, woa_ref, boa_ref, wx_ref, bx_ref, xproj_ref):
    # emb_map = relu(map_embedding(conv features))
    emb_map = jnp.maximum(
        jnp.dot(f_ref[...], wm_ref[...], preferred_element_type=jnp.float32) + bm_ref[...], 0.0)
    # [obs_map | act_map] = relu(emb_map @ [W_map2obs | W_map2act])
    oa_map = jnp.maximum(
        jnp.dot(emb_map, w23_ref[...], preferred_element_type=jnp.float32) + b23_ref[...], 0.0)
    # [emb_obs | emb_act] = relu([obs_in | act_in] @ blockdiag(W_obs, W_act))
    emb_oa = jnp.maximum(
        jnp.dot(oa_ref[...], woa_ref[...], preferred_element_type=jnp.float32) + boa_ref[...], 0.0)

    B = f_ref.shape[0]
    seq = oa_ref.shape[0] // B
    wx = wx_ref[...]
    bx = bx_ref[...]
    # per-batch broadcast of [obs_map|act_map] + time-invariant GRU input
    # projection for the whole sequence (static slices, static loop over B)
    for b in range(B):
        emb_b = emb_oa[b * seq:(b + 1) * seq, :] * oa_map[b:b + 1, :]
        xproj_ref[b * seq:(b + 1) * seq, :] = (
            jnp.dot(emb_b, wx, preferred_element_type=jnp.float32) + bx)


def head_run(feat, wm, bm, w23, b23, oa_in, woa, boa, wx, bx):
    M = oa_in.shape[0]
    NX = wx.shape[1]
    return pl.pallas_call(
        _head_kernel,
        out_shape=jax.ShapeDtypeStruct((M, NX), jnp.float32),
    )(feat, wm, bm.reshape(1, -1), w23, b23.reshape(1, -1),
      oa_in, woa, boa.reshape(1, -1), wx, bx.reshape(1, -1))


# -------- kernel 3: PFGRU recurrence over time + fused label readout ----------
def _pfgru_kernel(xz_ref, xr_ref, xn_ref, xo_ref, h0_ref, p0_ref,
                  g_ref, gbig_ref, wzh_ref, wrh_ref, wnh_ref, woh_ref,
                  h2l_w_ref, h2l_b_ref, y_ref, pf_ref, hs_sc, hw_sc):
    seq, N, H = xz_ref.shape
    h = h0_ref[...]                        # (N, H)
    p = p0_ref[...]                        # (N, 1)  log particle weights
    g = g_ref[...]                         # (N, B)  particle->batch grouping
    gpos = g > 0.0
    wzh = wzh_ref[...]
    wrh = wrh_ref[...]
    wnh = wnh_ref[...]
    woh = woh_ref[...]

    # TODO(synk): PFGRUCell source is not provided; reparameterization noise on
    # the candidate, its normalisation layer and soft-resampling are omitted
    # (deterministic inference cell).
    for t in range(seq):                   # static, fully unrolled
        z = jax.nn.sigmoid(xz_ref[t] + jnp.dot(h, wzh, preferred_element_type=jnp.float32))
        r = jax.nn.sigmoid(xr_ref[t] + jnp.dot(h, wrh, preferred_element_type=jnp.float32))
        n = jnp.tanh(xn_ref[t] + jnp.dot(r * h, wnh, preferred_element_type=jnp.float32))
        h = (1.0 - z) * n + z * h
        p = xo_ref[t] + jnp.dot(h, woh, preferred_element_type=jnp.float32) + p

        # log-softmax over the particle dimension per batch column via the
        # grouping matrix g (avoids in-kernel lane reshapes)
        pm = jnp.where(gpos, p, -jnp.inf)                               # (N, B)
        m = jnp.max(pm, axis=0, keepdims=True)                          # (1, B)
        ssum = jnp.sum(jnp.where(gpos, jnp.exp(p - m), 0.0), axis=0, keepdims=True)
        lse = m + jnp.log(ssum)
        p = p - jnp.sum(g * lse, axis=1, keepdims=True)                 # (N, 1)

        hs_sc[t * N:(t + 1) * N, :] = h
        hw_sc[t * N:(t + 1) * N, :] = h * jnp.exp(p)

    # fused readout, batched over all timesteps (two big matmuls, single-slab stores)
    w = h2l_w_ref[...]
    b = h2l_b_ref[...]
    # sigmoid(y[:, :2]) cat sigmoid(y[:, 2:]) == sigmoid(y)
    pf_ref[...] = jax.nn.sigmoid(
        jnp.dot(hs_sc[...], w, preferred_element_type=jnp.float32) + b)
    yb = jnp.dot(gbig_ref[...], hw_sc[...], preferred_element_type=jnp.float32)  # (seq*B, H)
    y_ref[...] = jax.nn.sigmoid(
        jnp.dot(yb, w, preferred_element_type=jnp.float32) + b)


def pfgru_label_run(xz, xr, xn, xo, h0, p0, g, gbig, wzh, wrh, wnh, woh, h2l_w, h2l_b):
    seq, N, H = xz.shape
    Bseq = gbig.shape[0]
    return pl.pallas_call(
        _pfgru_kernel,
        out_shape=(jax.ShapeDtypeStruct((Bseq, 3), jnp.float32),
                   jax.ShapeDtypeStruct((seq * N, 3), jnp.float32)),
        scratch_shapes=[pltpu.VMEM((seq * N, H), jnp.float32),
                        pltpu.VMEM((seq * N, H), jnp.float32)],
    )(xz, xr, xn, xo, h0, p0, g, gbig, wzh, wrh, wnh, woh, h2l_w, h2l_b.reshape(1, 3))


# ------------------------------ glue: im2col ----------------------------------
def im2col(x, k, stride, pad):
    """x: (B, H, W, C) NHWC -> (B*Ho*Wo, k*k*C), patch order (kh, kw, cin)."""
    xp = jnp.pad(x, ((0, 0), (pad, pad), (pad, pad), (0, 0)))
    B, Hp, Wp, C = xp.shape
    Ho = (Hp - k) // stride + 1
    Wo = (Wp - k) // stride + 1
    cols = []
    for i in range(k):
        for j in range(k):
            cols.append(xp[:, i:i + (Ho - 1) * stride + 1:stride,
                           j:j + (Wo - 1) * stride + 1:stride, :])
    patches = jnp.concatenate(cols, axis=-1)
    return patches.reshape(B * Ho * Wo, k * k * C), (B, Ho, Wo)


# --------------------------- parameter construction ---------------------------
def init_params(key, args):
    E = args.emb_obs + args.emb_act
    H = args.h
    keys = list(jax.random.split(key, 64))
    it = iter(keys)

    def nrm(shape, fan_in):
        return (jax.random.normal(next(it), shape, jnp.float32) / np.sqrt(fan_in)).astype(jnp.float32)

    def conv_w(cout, cin, k, pad_rows=0):
        wt = nrm((cout, cin, k, k), cin * k * k)                 # torch layout
        w = jnp.transpose(wt, (2, 3, 1, 0)).reshape(k * k * cin, cout)
        if pad_rows:
            w = jnp.pad(w, ((0, pad_rows), (0, 0)))              # zero rows -> no-op
        return w

    def bn(c):
        gamma = 1.0 + 0.1 * jax.random.normal(next(it), (c,), jnp.float32)
        beta = 0.1 * jax.random.normal(next(it), (c,), jnp.float32)
        mean = 0.1 * jax.random.normal(next(it), (c,), jnp.float32)
        var = jnp.abs(jax.random.normal(next(it), (c,), jnp.float32)) + 0.5
        scale = gamma / jnp.sqrt(var + 1e-5)
        shift = beta - mean * scale
        return scale, shift

    def lin(out_f, in_f):
        w = nrm((in_f, out_f), in_f)                              # stored as (K, N)
        b = 0.1 * jax.random.normal(next(it), (out_f,), jnp.float32)
        return w, b

    p = {}
    p["conv1_w"] = conv_w(16, 1, 5, pad_rows=7)   # im2col K padded 25 -> 32
    p["conv2_w"] = conv_w(32, 16, 3)
    p["conv3_w"] = conv_w(32, 32, 3)
    p["bn1_scale"], p["bn1_shift"] = bn(16)
    p["bn2_scale"], p["bn2_shift"] = bn(32)
    p["bn3_scale"], p["bn3_shift"] = bn(32)

    s1 = (args.map_size + 4 - 5) // 2 + 1                         # conv1 output spatial
    out_dim = 32 * s1 * s1                                        # conv2/3 keep spatial size
    p["map_emb_w"], p["map_emb_b"] = lin(args.emb_map, out_dim)

    # map2obs / map2act fused into one (emb_map, emb_obs+emb_act) weight
    m2o_w, m2o_b = lin(args.emb_obs, args.emb_map)
    m2a_w, m2a_b = lin(args.emb_act, args.emb_map)
    p["map2oa_w"] = jnp.concatenate([m2o_w, m2a_w], axis=1)
    p["map2oa_b"] = jnp.concatenate([m2o_b, m2a_b])

    # obs_embedding / act_embedding fused as one block-diagonal weight
    o_w, o_b = lin(args.emb_obs, args.obs_num)
    a_w, a_b = lin(args.emb_act, args.act_size)
    woa = jnp.zeros((args.obs_num + args.act_size, E), jnp.float32)
    woa = woa.at[:args.obs_num, :args.emb_obs].set(o_w)
    woa = woa.at[args.obs_num:, args.emb_obs:].set(a_w)
    p["oa_emb_w"] = woa
    p["oa_emb_b"] = jnp.concatenate([o_b, a_b])

    p["h2l_w"], p["h2l_b"] = lin(3, H)

    # PFGRU cell parameters, split into x-dependent parts (hoisted out of the
    # time loop, concatenated into one projection) and h-dependent parts.
    # wn is truncated to its mu half (sigma branch is unused at inference).
    wz_x, bz = lin(H, E)
    wz_h, _ = lin(H, H)
    wr_x, br = lin(H, E)
    wr_h, _ = lin(H, H)
    wn_x, bnm = lin(H, E)
    wn_h, _ = lin(H, H)
    wo_x, bo = lin(1, E)
    wo_h, _ = lin(1, H)
    p["wx_cat"] = jnp.concatenate([wz_x, wr_x, wn_x, wo_x], axis=1)   # (E, 3H+1)
    p["bx_cat"] = jnp.concatenate([bz, br, bnm, bo])                  # (3H+1,)
    p["wz_h"], p["wr_h"], p["wn_h"], p["wo_h"] = wz_h, wr_h, wn_h, wo_h
    return p


# ------------------------------- forward pass ---------------------------------
def localizer_forward(params, map_in, obs_in, act_in, args, hidden_key):
    B = map_in.shape[0]
    P = args.num_particles
    H = args.h
    seq = obs_in.shape[1]
    N = B * P

    # ---- encode(map_in): conv1(k5,s2) -> conv2(k3,s1) -> conv3(k3,s1) ----
    x = jnp.transpose(map_in, (0, 2, 3, 1))                    # NCHW -> NHWC

    def conv_block(x, wmat, scale, shift, k, stride):
        patches, (b_, ho, wo) = im2col(x, k, stride, (k - 1) // 2)
        kdim = wmat.shape[0]
        if patches.shape[1] < kdim:                            # conv1: pad K 25 -> 32
            patches = jnp.pad(patches, ((0, 0), (0, kdim - patches.shape[1])))
        y = conv_bn(patches, wmat, scale, shift)               # conv -> relu -> BN
        return y.reshape(b_, ho, wo, wmat.shape[1])

    x = conv_block(x, params["conv1_w"], params["bn1_scale"], params["bn1_shift"], 5, 2)
    x = conv_block(x, params["conv2_w"], params["bn2_scale"], params["bn2_shift"], 3, 1)
    x = conv_block(x, params["conv3_w"], params["bn3_scale"], params["bn3_shift"], 3, 1)
    feat = jnp.transpose(x, (0, 3, 1, 2)).reshape(B, -1)       # NCHW flatten order

    # ---- single head kernel: map/obs/act embeddings + hoisted GRU x-projection ----
    oa_in = jnp.concatenate([obs_in, act_in], axis=2).reshape(B * seq, -1)
    xproj = head_run(feat, params["map_emb_w"], params["map_emb_b"],
                     params["map2oa_w"], params["map2oa_b"],
                     oa_in, params["oa_emb_w"], params["oa_emb_b"],
                     params["wx_cat"], params["bx_cat"])       # (B*seq, 3H+1)

    # split the x-projection and replicate over particles (row = p*B + b)
    def prep(a):
        a = a.reshape(B, seq, -1).transpose(1, 0, 2)            # (seq, B, .)
        return jnp.tile(a, (1, P, 1))                           # (seq, N, .)

    xz = prep(xproj[:, :H])
    xr = prep(xproj[:, H:2 * H])
    xn = prep(xproj[:, 2 * H:3 * H])
    xo = prep(xproj[:, 3 * H:])

    # init_hidden('rand'): torch.rand -> uniform [0,1); fixed key for determinism
    h0 = jax.random.uniform(hidden_key, (N, H), jnp.float32)
    p0 = jnp.full((N, 1), np.log(1.0 / P), jnp.float32)

    # one-hot grouping matrix: row n (= p*B + b) belongs to batch column b
    g = (jnp.arange(N)[:, None] % B == jnp.arange(B)[None, :]).astype(jnp.float32)
    # (t,b) <- sum-over-particles selection matrix for the weighted readout
    row_t = jnp.arange(seq * B) // B
    row_b = jnp.arange(seq * B) % B
    col_t = jnp.arange(seq * N) // N
    col_b = (jnp.arange(seq * N) % N) % B
    gbig = ((row_t[:, None] == col_t[None, :]) &
            (row_b[:, None] == col_b[None, :])).astype(jnp.float32)

    # hnn_dropout: eval mode -> identity
    y_flat, pf_flat = pfgru_label_run(
        xz, xr, xn, xo, h0, p0, g, gbig,
        params["wz_h"], params["wr_h"], params["wn_h"], params["wo_h"],
        params["h2l_w"], params["h2l_b"])

    return y_flat.reshape(seq, B, 3), pf_flat.reshape(seq, N, 3)


# ------------------------------------ main -------------------------------------
if __name__ == "__main__":
    args = Args()
    key = jax.random.PRNGKey(0)
    kp, kd, kh = jax.random.split(key, 3)
    params = init_params(kp, args)

    B, seq = 2, 8
    k1, k2, k3 = jax.random.split(kd, 3)
    map_in = jax.random.normal(k1, (B, 1, args.map_size, args.map_size), jnp.float32)
    obs_in = jax.random.normal(k2, (B, seq, args.obs_num), jnp.float32)
    act_in = jax.random.normal(k3, (B, seq, args.act_size), jnp.float32)

    fwd = jax.jit(functools.partial(localizer_forward, args=args))
    y_out, pf_out = fwd(params, map_in, obs_in, act_in, hidden_key=kh)
    jax.block_until_ready((y_out, pf_out))

    assert y_out.shape == (seq, B, 3)
    assert pf_out.shape == (seq, B * args.num_particles, 3)
    assert bool(jnp.all(jnp.isfinite(y_out))) and bool(jnp.all(jnp.isfinite(pf_out)))
    print("KERNEL_OK")
</pallas_src>

<mosaic_0001>
module attributes {stable_mosaic.version = 11 : i64} {
  func.func @_conv_bn_kernel(%arg0: memref<128x32xf32, #tpu.memory_space<vmem>>, %arg1: memref<32x16xf32, #tpu.memory_space<vmem>>, %arg2: memref<1x16xf32, #tpu.memory_space<vmem>>, %arg3: memref<1x16xf32, #tpu.memory_space<vmem>>, %arg4: memref<128x16xf32, #tpu.memory_space<vmem>>) attributes {dimension_semantics = [], scalar_prefetch = 0 : i64, scratch_operands = 0 : i64, tpu.core_type = #tpu.core_type<tc>} {
    %c0 = arith.constant 0 : index
    %c0_0 = arith.constant 0 : index
    %0 = vector.load %arg0[%c0, %c0_0] : memref<128x32xf32, #tpu.memory_space<vmem>>, vector<128x32xf32>
    %c0_1 = arith.constant 0 : index
    %c0_2 = arith.constant 0 : index
    %1 = vector.load %arg1[%c0_1, %c0_2] : memref<32x16xf32, #tpu.memory_space<vmem>>, vector<32x16xf32>
    %cst = arith.constant dense<0.000000e+00> : vector<128x16xf32>
    %2 = tpu.matmul %0, %1, %cst {dimension_numbers = #tpu.dot_dimension_numbers<[1], [0], [0], [1], [0, 0, 1, 1], [], []>} : vector<128x32xf32>, vector<32x16xf32>, vector<128x16xf32> -> vector<128x16xf32>
    %cst_3 = arith.constant 0.000000e+00 : f32
    %3 = vector.broadcast %cst_3 : f32 to vector<128x16xf32>
    %4 = arith.maximumf %2, %3 : vector<128x16xf32>
    %c0_4 = arith.constant 0 : index
    %c0_5 = arith.constant 0 : index
    %5 = vector.load %arg2[%c0_4, %c0_5] : memref<1x16xf32, #tpu.memory_space<vmem>>, vector<1x16xf32>
    %6 = vector.broadcast %5 : vector<1x16xf32> to vector<128x16xf32>
    %7 = arith.mulf %4, %6 : vector<128x16xf32>
    %c0_6 = arith.constant 0 : index
    %c0_7 = arith.constant 0 : index
    %8 = vector.load %arg3[%c0_6, %c0_7] : memref<1x16xf32, #tpu.memory_space<vmem>>, vector<1x16xf32>
    %9 = vector.broadcast %8 : vector<1x16xf32> to vector<128x16xf32>
    %10 = arith.addf %7, %9 : vector<128x16xf32>
    %c0_8 = arith.constant 0 : index
    %c0_9 = arith.constant 0 : index
    %11 = vector.load %arg4[%c0_8, %c0_9] : memref<128x16xf32, #tpu.memory_space<vmem>>, vector<128x16xf32>
    tpu.vector_store %arg4[%c0_8, %c0_9], %10 {strides = array<i32>} : memref<128x16xf32, #tpu.memory_space<vmem>>, vector<128x16xf32>,
    return
  }
}

module attributes {stable_mosaic.version = 11 : i64} {
  func.func @_conv_bn_kernel(%arg0: memref<128x144xf32, #tpu.memory_space<vmem>>, %arg1: memref<144x32xf32, #tpu.memory_space<vmem>>, %arg2: memref<1x32xf32, #tpu.memory_space<vmem>>, %arg3: memref<1x32xf32, #tpu.memory_space<vmem>>, %arg4: memref<128x32xf32, #tpu.memory_space<vmem>>) attributes {dimension_semantics = [], scalar_prefetch = 0 : i64, scratch_operands = 0 : i64, tpu.core_type = #tpu.core_type<tc>} {
    %c0 = arith.constant 0 : index
    %c0_0 = arith.constant 0 : index
    %0 = vector.load %arg0[%c0, %c0_0] : memref<128x144xf32, #tpu.memory_space<vmem>>, vector<128x144xf32>
    %c0_1 = arith.constant 0 : index
    %c0_2 = arith.constant 0 : index
    %1 = vector.load %arg1[%c0_1, %c0_2] : memref<144x32xf32, #tpu.memory_space<vmem>>, vector<144x32xf32>
    %cst = arith.constant dense<0.000000e+00> : vector<128x32xf32>
    %2 = tpu.matmul %0, %1, %cst {dimension_numbers = #tpu.dot_dimension_numbers<[1], [0], [0], [1], [0, 0, 1, 1], [], []>} : vector<128x144xf32>, vector<144x32xf32>, vector<128x32xf32> -> vector<128x32xf32>
    %cst_3 = arith.constant 0.000000e+00 : f32
    %3 = vector.broadcast %cst_3 : f32 to vector<128x32xf32>
    %4 = arith.maximumf %2, %3 : vector<128x32xf32>
    %c0_4 = arith.constant 0 : index
    %c0_5 = arith.constant 0 : index
    %5 = vector.load %arg2[%c0_4, %c0_5] : memref<1x32xf32, #tpu.memory_space<vmem>>, vector<1x32xf32>
    %6 = vector.broadcast %5 : vector<1x32xf32> to vector<128x32xf32>
    %7 = arith.mulf %4, %6 : vector<128x32xf32>
    %c0_6 = arith.constant 0 : index
    %c0_7 = arith.constant 0 : index
    %8 = vector.load %arg3[%c0_6, %c0_7] : memref<1x32xf32, #tpu.memory_space<vmem>>, vector<1x32xf32>
    %9 = vector.broadcast %8 : vector<1x32xf32> to vector<128x32xf32>
    %10 = arith.addf %7, %9 : vector<128x32xf32>
    %c0_8 = arith.constant 0 : index
    %c0_9 = arith.constant 0 : index
    %11 = vector.load %arg4[%c0_8, %c0_9] : memref<128x32xf32, #tpu.memory_space<vmem>>, vector<128x32xf32>
    tpu.vector_store %arg4[%c0_8, %c0_9], %10 {strides = array<i32>} : memref<128x32xf32, #tpu.memory_space<vmem>>, vector<128x32xf32>,
    return
  }
}

module attributes {stable_mosaic.version = 11 : i64} {
  func.func @_conv_bn_kernel(%arg0: memref<128x288xf32, #tpu.memory_space<vmem>>, %arg1: memref<288x32xf32, #tpu.memory_space<vmem>>, %arg2: memref<1x32xf32, #tpu.memory_space<vmem>>, %arg3: memref<1x32xf32, #tpu.memory_space<vmem>>, %arg4: memref<128x32xf32, #tpu.memory_space<vmem>>) attributes {dimension_semantics = [], scalar_prefetch = 0 : i64, scratch_operands = 0 : i64, tpu.core_type = #tpu.core_type<tc>} {
    %c0 = arith.constant 0 : index
    %c0_0 = arith.constant 0 : index
    %0 = vector.load %arg0[%c0, %c0_0] : memref<128x288xf32, #tpu.memory_space<vmem>>, vector<128x288xf32>
    %c0_1 = arith.constant 0 : index
    %c0_2 = arith.constant 0 : index
    %1 = vector.load %arg1[%c0_1, %c0_2] : memref<288x32xf32, #tpu.memory_space<vmem>>, vector<288x32xf32>
    %cst = arith.constant dense<0.000000e+00> : vector<128x32xf32>
    %2 = tpu.matmul %0, %1, %cst {dimension_numbers = #tpu.dot_dimension_numbers<[1], [0], [0], [1], [0, 0, 1, 1], [], []>} : vector<128x288xf32>, vector<288x32xf32>, vector<128x32xf32> -> vector<128x32xf32>
    %cst_3 = arith.constant 0.000000e+00 : f32
    %3 = vector.broadcast %cst_3 : f32 to vector<128x32xf32>
    %4 = arith.maximumf %2, %3 : vector<128x32xf32>
    %c0_4 = arith.constant 0 : index
    %c0_5 = arith.constant 0 : index
    %5 = vector.load %arg2[%c0_4, %c0_5] : memref<1x32xf32, #tpu.memory_space<vmem>>, vector<1x32xf32>
    %6 = vector.broadcast %5 : vector<1x32xf32> to vector<128x32xf32>
    %7 = arith.mulf %4, %6 : vector<128x32xf32>
    %c0_6 = arith.constant 0 : index
    %c0_7 = arith.constant 0 : index
    %8 = vector.load %arg3[%c0_6, %c0_7] : memref<1x32xf32, #tpu.memory_space<vmem>>, vector<1x32xf32>
    %9 = vector.broadcast %8 : vector<1x32xf32> to vector<128x32xf32>
    %10 = arith.addf %7, %9 : vector<128x32xf32>
    %c0_8 = arith.constant 0 : index
    %c0_9 = arith.constant 0 : index
    %11 = vector.load %arg4[%c0_8, %c0_9] : memref<128x32xf32, #tpu.memory_space<vmem>>, vector<128x32xf32>
    tpu.vector_store %arg4[%c0_8, %c0_9], %10 {strides = array<i32>} : memref<128x32xf32, #tpu.memory_space<vmem>>, vector<128x32xf32>,
    return
  }
}

module attributes {stable_mosaic.version = 11 : i64} {
  func.func @_head_kernel(%arg0: memref<2x2048xf32, #tpu.memory_space<vmem>>, %arg1: memref<2048x32xf32, #tpu.memory_space<vmem>>, %arg2: memref<1x32xf32, #tpu.memory_space<vmem>>, %arg3: memref<32x32xf32, #tpu.memory_space<vmem>>, %arg4: memref<1x32xf32, #tpu.memory_space<vmem>>, %arg5: memref<16x9xf32, #tpu.memory_space<vmem>>, %arg6: memref<9x32xf32, #tpu.memory_space<vmem>>, %arg7: memref<1x32xf32, #tpu.memory_space<vmem>>, %arg8: memref<32x97xf32, #tpu.memory_space<vmem>>, %arg9: memref<1x97xf32, #tpu.memory_space<vmem>>, %arg10: memref<16x97xf32, #tpu.memory_space<vmem>>) attributes {dimension_semantics = [], scalar_prefetch = 0 : i64, scratch_operands = 0 : i64, tpu.core_type = #tpu.core_type<tc>} {
    %c0 = arith.constant 0 : index
    %c0_0 = arith.constant 0 : index
    %0 = vector.load %arg0[%c0, %c0_0] : memref<2x2048xf32, #tpu.memory_space<vmem>>, vector<2x2048xf32>
    %c0_1 = arith.constant 0 : index
    %c0_2 = arith.constant 0 : index
    %1 = vector.load %arg1[%c0_1, %c0_2] : memref<2048x32xf32, #tpu.memory_space<vmem>>, vector<2048x32xf32>
    %cst = arith.constant dense<0.000000e+00> : vector<2x32xf32>
    %2 = tpu.matmul %0, %1, %cst {dimension_numbers = #tpu.dot_dimension_numbers<[1], [0], [0], [1], [0, 0, 1, 1], [], []>} : vector<2x2048xf32>, vector<2048x32xf32>, vector<2x32xf32> -> vector<2x32xf32>
    %c0_3 = arith.constant 0 : index
    %c0_4 = arith.constant 0 : index
    %3 = vector.load %arg2[%c0_3, %c0_4] : memref<1x32xf32, #tpu.memory_space<vmem>>, vector<1x32xf32>
    %4 = vector.broadcast %3 : vector<1x32xf32> to vector<2x32xf32>
    %5 = arith.addf %2, %4 : vector<2x32xf32>
    %cst_5 = arith.constant 0.000000e+00 : f32
    %6 = vector.broadcast %cst_5 : f32 to vector<2x32xf32>
    %7 = arith.maximumf %5, %6 : vector<2x32xf32>
    %c0_6 = arith.constant 0 : index
    %c0_7 = arith.constant 0 : index
    %8 = vector.load %arg3[%c0_6, %c0_7] : memref<32x32xf32, #tpu.memory_space<vmem>>, vector<32x32xf32>
    %cst_8 = arith.constant dense<0.000000e+00> : vector<2x32xf32>
    %9 = tpu.matmul %7, %8, %cst_8 {dimension_numbers = #tpu.dot_dimension_numbers<[1], [0], [0], [1], [0, 0, 1, 1], [], []>} : vector<2x32xf32>, vector<32x32xf32>, vector<2x32xf32> -> vector<2x32xf32>
    %c0_9 = arith.constant 0 : index
    %c0_10 = arith.constant 0 : index
    %10 = vector.load %arg4[%c0_9, %c0_10] : memref<1x32xf32, #tpu.memory_space<vmem>>, vector<1x32xf32>
    %11 = vector.broadcast %10 : vector<1x32xf32> to vector<2x32xf32>
    %12 = arith.addf %9, %11 : vector<2x32xf32>
    %cst_11 = arith.constant 0.000000e+00 : f32
    %13 = vector.broadcast %cst_11 : f32 to vector<2x32xf32>
    %14 = arith.maximumf %12, %13 : vector<2x32xf32>
    %c0_12 = arith.constant 0 : index
    %c0_13 = arith.constant 0 : index
    %15 = vector.load %arg5[%c0_12, %c0_13] : memref<16x9xf32, #tpu.memory_space<vmem>>, vector<16x9xf32>
    %c0_14 = arith.constant 0 : index
    %c0_15 = arith.constant 0 : index
    %16 = vector.load %arg6[%c0_14, %c0_15] : memref<9x32xf32, #tpu.memory_space<vmem>>, vector<9x32xf32>
    %cst_16 = arith.constant dense<0.000000e+00> : vector<16x32xf32>
    %17 = tpu.matmul %15, %16, %cst_16 {dimension_numbers = #tpu.dot_dimension_numbers<[1], [0], [0], [1], [0, 0, 1, 1], [], []>} : vector<16x9xf32>, vector<9x32xf32>, vector<16x32xf32> -> vector<16x32xf32>
    %c0_17 = arith.constant 0 : index
    %c0_18 = arith.constant 0 : index
    %18 = vector.load %arg7[%c0_17, %c0_18] : memref<1x32xf32, #tpu.memory_space<vmem>>, vector<1x32xf32>
    %19 = vector.broadcast %18 : vector<1x32xf32> to vector<16x32xf32>
    %20 = arith.addf %17, %19 : vector<16x32xf32>
    %cst_19 = arith.constant 0.000000e+00 : f32
    %21 = vector.broadcast %cst_19 : f32 to vector<16x32xf32>
    %22 = arith.maximumf %20, %21 : vector<16x32xf32>
    %c0_20 = arith.constant 0 : index
    %c0_21 = arith.constant 0 : index
    %23 = vector.load %arg8[%c0_20, %c0_21] : memref<32x97xf32, #tpu.memory_space<vmem>>, vector<32x97xf32>
    %c0_22 = arith.constant 0 : index
    %c0_23 = arith.constant 0 : index
    %24 = vector.load %arg9[%c0_22, %c0_23] : memref<1x97xf32, #tpu.memory_space<vmem>>, vector<1x97xf32>
    %25 = vector.extract_strided_slice %22 {offsets = [0, 0], sizes = [8, 32], strides = [1, 1]} : vector<16x32xf32> to vector<8x32xf32>
    %26 = vector.extract_strided_slice %14 {offsets = [0, 0], sizes = [1, 32], strides = [1, 1]} : vector<2x32xf32> to vector<1x32xf32>
    %27 = vector.broadcast %26 : vector<1x32xf32> to vector<8x32xf32>
    %28 = arith.mulf %25, %27 : vector<8x32xf32>
    %cst_24 = arith.constant dense<0.000000e+00> : vector<8x97xf32>
    %29 = tpu.matmul %28, %23, %cst_24 {dimension_numbers = #tpu.dot_dimension_numbers<[1], [0], [0], [1], [0, 0, 1, 1], [], []>} : vector<8x32xf32>, vector<32x97xf32>, vector<8x97xf32> -> vector<8x97xf32>
    %30 = vector.broadcast %24 : vector<1x97xf32> to vector<8x97xf32>
    %31 = arith.addf %29, %30 : vector<8x97xf32>
    %c0_25 = arith.constant 0 : index
    %c0_26 = arith.constant 0 : index
    %32 = vector.load %arg10[%c0_25, %c0_26] : memref<16x97xf32, #tpu.memory_space<vmem>>, vector<8x97xf32>
    tpu.vector_store %arg10[%c0_25, %c0_26], %31 {strides = array<i32>} : memref<16x97xf32, #tpu.memory_space<vmem>>, vector<8x97xf32>,
    %33 = vector.extract_strided_slice %22 {offsets = [8, 0], sizes = [8, 32], strides = [1, 1]} : vector<16x32xf32> to vector<8x32xf32>
    %34 = vector.extract_strided_slice %14 {offsets = [1, 0], sizes = [1, 32], strides = [1, 1]} : vector<2x32xf32> to vector<1x32xf32>
    %35 = vector.broadcast %34 : vector<1x32xf32> to vector<8x32xf32>
    %36 = arith.mulf %33, %35 : vector<8x32xf32>
    %cst_27 = arith.constant dense<0.000000e+00> : vector<8x97xf32>
    %37 = tpu.matmul %36, %23, %cst_27 {dimension_numbers = #tpu.dot_dimension_numbers<[1], [0], [0], [1], [0, 0, 1, 1], [], []>} : vector<8x32xf32>, vector<32x97xf32>, vector<8x97xf32> -> vector<8x97xf32>
    %38 = vector.broadcast %24 : vector<1x97xf32> to vector<8x97xf32>
    %39 = arith.addf %37, %38 : vector<8x97xf32>
    %c8 = arith.constant 8 : index
    %c0_28 = arith.constant 0 : index
    %40 = vector.load %arg10[%c8, %c0_28] : memref<16x97xf32, #tpu.memory_space<vmem>>, vector<8x97xf32>
    tpu.vector_store %arg10[%c8, %c0_28], %39 {strides = array<i32>} : memref<16x97xf32, #tpu.memory_space<vmem>>, vector<8x97xf32>,
    return
  }
}

module attributes {stable_mosaic.version = 11 : i64} {
  func.func @_pfgru_kernel(%arg0: memref<8x16x32xf32, #tpu.memory_space<vmem>>, %arg1: memref<8x16x32xf32, #tpu.memory_space<vmem>>, %arg2: memref<8x16x32xf32, #tpu.memory_space<vmem>>, %arg3: memref<8x16x1xf32, #tpu.memory_space<vmem>>, %arg4: memref<16x32xf32, #tpu.memory_space<vmem>>, %arg5: memref<16x1xf32, #tpu.memory_space<vmem>>, %arg6: memref<16x2xf32, #tpu.memory_space<vmem>>, %arg7: memref<16x128xf32, #tpu.memory_space<vmem>>, %arg8: memref<32x32xf32, #tpu.memory_space<vmem>>, %arg9: memref<32x32xf32, #tpu.memory_space<vmem>>, %arg10: memref<32x32xf32, #tpu.memory_space<vmem>>, %arg11: memref<32x1xf32, #tpu.memory_space<vmem>>, %arg12: memref<32x3xf32, #tpu.memory_space<vmem>>, %arg13: memref<1x3xf32, #tpu.memory_space<vmem>>, %arg14: memref<16x3xf32, #tpu.memory_space<vmem>>, %arg15: memref<128x3xf32, #tpu.memory_space<vmem>>, %arg16: memref<128x32xf32, #tpu.memory_space<vmem>>, %arg17: memref<128x32xf32, #tpu.memory_space<vmem>>) attributes {dimension_semantics = [], scalar_prefetch = 0 : i64, scratch_operands = 2 : i64, tpu.core_type = #tpu.core_type<tc>} {
    %c0 = arith.constant 0 : index
    %c0_0 = arith.constant 0 : index
    %0 = vector.load %arg4[%c0, %c0_0] : memref<16x32xf32, #tpu.memory_space<vmem>>, vector<16x32xf32>
    %c0_1 = arith.constant 0 : index
    %c0_2 = arith.constant 0 : index
    %1 = vector.load %arg5[%c0_1, %c0_2] : memref<16x1xf32, #tpu.memory_space<vmem>>, vector<16x1xf32>
    %c0_3 = arith.constant 0 : index
    %c0_4 = arith.constant 0 : index
    %2 = vector.load %arg6[%c0_3, %c0_4] : memref<16x2xf32, #tpu.memory_space<vmem>>, vector<16x2xf32>
    %cst = arith.constant 0.000000e+00 : f32
    %3 = vector.broadcast %cst : f32 to vector<16x2xf32>
    %4 = arith.cmpf ogt, %2, %3 : vector<16x2xf32>
    %c0_5 = arith.constant 0 : index
    %c0_6 = arith.constant 0 : index
    %5 = vector.load %arg8[%c0_5, %c0_6] : memref<32x32xf32, #tpu.memory_space<vmem>>, vector<32x32xf32>
    %c0_7 = arith.constant 0 : index
    %c0_8 = arith.constant 0 : index
    %6 = vector.load %arg9[%c0_7, %c0_8] : memref<32x32xf32, #tpu.memory_space<vmem>>, vector<32x32xf32>
    %c0_9 = arith.constant 0 : index
    %c0_10 = arith.constant 0 : index
    %7 = vector.load %arg10[%c0_9, %c0_10] : memref<32x32xf32, #tpu.memory_space<vmem>>, vector<32x32xf32>
    %c0_11 = arith.constant 0 : index
    %c0_12 = arith.constant 0 : index
    %8 = vector.load %arg11[%c0_11, %c0_12] : memref<32x1xf32, #tpu.memory_space<vmem>>, vector<32x1xf32>
    %c0_13 = arith.constant 0 : index
    %c0_14 = arith.constant 0 : index
    %c0_15 = arith.constant 0 : index
    %9 = vector.load %arg0[%c0_13, %c0_14, %c0_15] : memref<8x16x32xf32, #tpu.memory_space<vmem>>, vector<1x16x32xf32>
    %10 = vector.shape_cast %9 : vector<1x16x32xf32> to vector<16x32xf32>
    %cst_16 = arith.constant dense<0.000000e+00> : vector<16x32xf32>
    %11 = tpu.matmul %0, %5, %cst_16 {dimension_numbers = #tpu.dot_dimension_numbers<[1], [0], [0], [1], [0, 0, 1, 1], [], []>} : vector<16x32xf32>, vector<32x32xf32>, vector<16x32xf32> -> vector<16x32xf32>
    %12 = arith.addf %10, %11 : vector<16x32xf32>
    %13 = arith.negf %12 : vector<16x32xf32>
    %14 = math.exp %13 : vector<16x32xf32>
    %cst_17 = arith.constant 1.000000e+00 : f32
    %15 = vector.broadcast %cst_17 : f32 to vector<16x32xf32>
    %16 = arith.addf %15, %14 : vector<16x32xf32>
    %17 = arith.divf %15, %16 : vector<16x32xf32>
    %c0_18 = arith.constant 0 : index
    %c0_19 = arith.constant 0 : index
    %c0_20 = arith.constant 0 : index
    %18 = vector.load %arg1[%c0_18, %c0_19, %c0_20] : memref<8x16x32xf32, #tpu.memory_space<vmem>>, vector<1x16x32xf32>
    %19 = vector.shape_cast %18 : vector<1x16x32xf32> to vector<16x32xf32>
    %cst_21 = arith.constant dense<0.000000e+00> : vector<16x32xf32>
    %20 = tpu.matmul %0, %6, %cst_21 {dimension_numbers = #tpu.dot_dimension_numbers<[1], [0], [0], [1], [0, 0, 1, 1], [], []>} : vector<16x32xf32>, vector<32x32xf32>, vector<16x32xf32> -> vector<16x32xf32>
    %21 = arith.addf %19, %20 : vector<16x32xf32>
    %22 = arith.negf %21 : vector<16x32xf32>
    %23 = math.exp %22 : vector<16x32xf32>
    %cst_22 = arith.constant 1.000000e+00 : f32
    %24 = vector.broadcast %cst_22 : f32 to vector<16x32xf32>
    %25 = arith.addf %24, %23 : vector<16x32xf32>
    %26 = arith.divf %24, %25 : vector<16x32xf32>
    %c0_23 = arith.constant 0 : index
    %c0_24 = arith.constant 0 : index
    %c0_25 = arith.constant 0 : index
    %27 = vector.load %arg2[%c0_23, %c0_24, %c0_25] : memref<8x16x32xf32, #tpu.memory_space<vmem>>, vector<1x16x32xf32>
    %28 = vector.shape_cast %27 : vector<1x16x32xf32> to vector<16x32xf32>
    %29 = arith.mulf %26, %0 : vector<16x32xf32>
    %cst_26 = arith.constant dense<0.000000e+00> : vector<16x32xf32>
    %30 = tpu.matmul %29, %7, %cst_26 {dimension_numbers = #tpu.dot_dimension_numbers<[1], [0], [0], [1], [0, 0, 1, 1], [], []>} : vector<16x32xf32>, vector<32x32xf32>, vector<16x32xf32> -> vector<16x32xf32>
    %31 = arith.addf %28, %30 : vector<16x32xf32>
    %32 = math.tanh %31 : vector<16x32xf32>
    %cst_27 = arith.constant 1.000000e+00 : f32
    %33 = vector.broadcast %cst_27 : f32 to vector<16x32xf32>
    %34 = arith.subf %33, %17 : vector<16x32xf32>
    %35 = arith.mulf %34, %32 : vector<16x32xf32>
    %36 = arith.mulf %17, %0 : vector<16x32xf32>
    %37 = arith.addf %35, %36 : vector<16x32xf32>
    %c0_28 = arith.constant 0 : index
    %c0_29 = arith.constant 0 : index
    %c0_30 = arith.constant 0 : index
    %38 = vector.load %arg3[%c0_28, %c0_29, %c0_30] : memref<8x16x1xf32, #tpu.memory_space<vmem>>, vector<1x16x1xf32>
    %39 = vector.shape_cast %38 : vector<1x16x1xf32> to vector<16x1xf32>
    %cst_31 = arith.constant dense<0.000000e+00> : vector<16x1xf32>
    %40 = tpu.matmul %37, %8, %cst_31 {dimension_numbers = #tpu.dot_dimension_numbers<[1], [0], [0], [1], [0, 0, 1, 1], [], []>} : vector<16x32xf32>, vector<32x1xf32>, vector<16x1xf32> -> vector<16x1xf32>
    %41 = arith.addf %39, %40 : vector<16x1xf32>
    %42 = arith.addf %41, %1 : vector<16x1xf32>
    %cst_32 = arith.constant 0xFF800000 : f32
    %43 = vector.shape_cast %42 : vector<16x1xf32> to vector<16x1xf32>
    %44 = vector.broadcast %43 : vector<16x1xf32> to vector<16x2xf32>
    %45 = vector.broadcast %cst_32 : f32 to vector<16x2xf32>
    %46 = arith.select %4, %44, %45 : vector<16x2xi1>, vector<16x2xf32>
    %cst_33 = arith.constant dense<0xFF800000> : vector<2xf32>
    %47 = vector.multi_reduction <maximumf>, %46, %cst_33 [0] : vector<16x2xf32> to vector<2xf32>
    %48 = vector.shape_cast %47 : vector<2xf32> to vector<1x2xf32>
    %49 = vector.broadcast %42 : vector<16x1xf32> to vector<16x2xf32>
    %50 = vector.broadcast %48 : vector<1x2xf32> to vector<16x2xf32>
    %51 = arith.subf %49, %50 : vector<16x2xf32>
    %52 = math.exp %51 : vector<16x2xf32>
    %cst_34 = arith.constant 0.000000e+00 : f32
    %53 = vector.broadcast %cst_34 : f32 to vector<16x2xf32>
    %54 = arith.select %4, %52, %53 : vector<16x2xi1>, vector<16x2xf32>
    %cst_35 = arith.constant dense<0.000000e+00> : vector<2xf32>
    %55 = vector.multi_reduction <add>, %54, %cst_35 [0] : vector<16x2xf32> to vector<2xf32>
    %56 = vector.shape_cast %55 : vector<2xf32> to vector<1x2xf32>
    %57 = math.log %56 : vector<1x2xf32>
    %58 = arith.addf %48, %57 : vector<1x2xf32>
    %59 = vector.broadcast %58 : vector<1x2xf32> to vector<16x2xf32>
    %60 = arith.mulf %2, %59 : vector<16x2xf32>
    %cst_36 = arith.constant dense<0.000000e+00> : vector<16xf32>
    %61 = vector.multi_reduction <add>, %60, %cst_36 [1] : vector<16x2xf32> to vector<16xf32>
    %62 = vector.shape_cast %61 : vector<16xf32> to vector<16x1xf32>
    %63 = arith.subf %42, %62 : vector<16x1xf32>
    %c0_37 = arith.constant 0 : index
    %c0_38 = arith.constant 0 : index
    %64 = vector.load %arg16[%c0_37, %c0_38] : memref<128x32xf32, #tpu.memory_space<vmem>>, vector<16x32xf32>
    tpu.vector_store %arg16[%c0_37, %c0_38], %37 {strides = array<i32>} : memref<128x32xf32, #tpu.memory_space<vmem>>, vector<16x32xf32>,
    %65 = math.exp %63 : vector<16x1xf32>
    %66 = vector.broadcast %65 : vector<16x1xf32> to vector<16x32xf32>
    %67 = arith.mulf %37, %66 : vector<16x32xf32>
    %c0_39 = arith.constant 0 : index
    %c0_40 = arith.constant 0 : index
    %68 = vector.load %arg17[%c0_39, %c0_40] : memref<128x32xf32, #tpu.memory_space<vmem>>, vector<16x32xf32>
    tpu.vector_store %arg17[%c0_39, %c0_40], %67 {strides = array<i32>} : memref<128x32xf32, #tpu.memory_space<vmem>>, vector<16x32xf32>,
    %c1 = arith.constant 1 : index
    %c0_41 = arith.constant 0 : index
    %c0_42 = arith.constant 0 : index
    %69 = vector.load %arg0[%c1, %c0_41, %c0_42] : memref<8x16x32xf32, #tpu.memory_space<vmem>>, vector<1x16x32xf32>
    %70 = vector.shape_cast %69 : vector<1x16x32xf32> to vector<16x32xf32>
    %cst_43 = arith.constant dense<0.000000e+00> : vector<16x32xf32>
    %71 = tpu.matmul %37, %5, %cst_43 {dimension_numbers = #tpu.dot_dimension_numbers<[1], [0], [0], [1], [0, 0, 1, 1], [], []>} : vector<16x32xf32>, vector<32x32xf32>, vector<16x32xf32> -> vector<16x32xf32>
    %72 = arith.addf %70, %71 : vector<16x32xf32>
    %73 = arith.negf %72 : vector<16x32xf32>
    %74 = math.exp %73 : vector<16x32xf32>
    %cst_44 = arith.constant 1.000000e+00 : f32
    %75 = vector.broadcast %cst_44 : f32 to vector<16x32xf32>
    %76 = arith.addf %75, %74 : vector<16x32xf32>
    %77 = arith.divf %75, %76 : vector<16x32xf32>
    %c1_45 = arith.constant 1 : index
    %c0_46 = arith.constant 0 : index
    %c0_47 = arith.constant 0 : index
    %78 = vector.load %arg1[%c1_45, %c0_46, %c0_47] : memref<8x16x32xf32, #tpu.memory_space<vmem>>, vector<1x16x32xf32>
    %79 = vector.shape_cast %78 : vector<1x16x32xf32> to vector<16x32xf32>
    %cst_48 = arith.constant dense<0.000000e+00> : vector<16x32xf32>
    %80 = tpu.matmul %37, %6, %cst_48 {dimension_numbers = #tpu.dot_dimension_numbers<[1], [0], [0], [1], [0, 0, 1, 1], [], []>} : vector<16x32xf32>, vector<32x32xf32>, vector<16x32xf32> -> vector<16x32xf32>
    %81 = arith.addf %79, %80 : vector<16x32xf32>
    %82 = arith.negf %81 : vector<16x32xf32>
    %83 = math.exp %82 : vector<16x32xf32>
    %cst_49 = arith.constant 1.000000e+00 : f32
    %84 = vector.broadcast %cst_49 : f32 to vector<16x32xf32>
    %85 = arith.addf %84, %83 : vector<16x32xf32>
    %86 = arith.divf %84, %85 : vector<16x32xf32>
    %c1_50 = arith.constant 1 : index
    %c0_51 = arith.constant 0 : index
    %c0_52 = arith.constant 0 : index
    %87 = vector.load %arg2[%c1_50, %c0_51, %c0_52] : memref<8x16x32xf32, #tpu.memory_space<vmem>>, vector<1x16x32xf32>
    %88 = vector.shape_cast %87 : vector<1x16x32xf32> to vector<16x32xf32>
    %89 = arith.mulf %86, %37 : vector<16x32xf32>
    %cst_53 = arith.constant dense<0.000000e+00> : vector<16x32xf32>
    %90 = tpu.matmul %89, %7, %cst_53 {dimension_numbers = #tpu.dot_dimension_numbers<[1], [0], [0], [1], [0, 0, 1, 1], [], []>} : vector<16x32xf32>, vector<32x32xf32>, vector<16x32xf32> -> vector<16x32xf32>
    %91 = arith.addf %88, %90 : vector<16x32xf32>
    %92 = math.tanh %91 : vector<16x32xf32>
    %cst_54 = arith.constant 1.000000e+00 : f32
    %93 = vector.broadcast %cst_54 : f32 to vector<16x32xf32>
    %94 = arith.subf %93, %77 : vector<16x32xf32>
    %95 = arith.mulf %94, %92 : vector<16x32xf32>
    %96 = arith.mulf %77, %37 : vector<16x32xf32>
    %97 = arith.addf %95, %96 : vector<16x32xf32>
    %c1_55 = arith.constant 1 : index
    %c0_56 = arith.constant 0 : index
    %c0_57 = arith.constant 0 : index
    %98 = vector.load %arg3[%c1_55, %c0_56, %c0_57] : memref<8x16x1xf32, #tpu.memory_space<vmem>>, vector<1x16x1xf32>
    %99 = vector.shape_cast %98 : vector<1x16x1xf32> to vector<16x1xf32>
    %cst_58 = arith.constant dense<0.000000e+00> : vector<16x1xf32>
    %100 = tpu.matmul %97, %8, %cst_58 {dimension_numbers = #tpu.dot_dimension_numbers<[1], [0], [0], [1], [0, 0, 1, 1], [], []>} : vector<16x32xf32>, vector<32x1xf32>, vector<16x1xf32> -> vector<16x1xf32>
    %101 = arith.addf %99, %100 : vector<16x1xf32>
    %102 = arith.addf %101, %63 : vector<16x1xf32>
    %cst_59 = arith.constant 0xFF800000 : f32
    %103 = vector.shape_cast %102 : vector<16x1xf32> to vector<16x1xf32>
    %104 = vector.broadcast %103 : vector<16x1xf32> to vector<16x2xf32>
    %105 = vector.broadcast %cst_59 : f32 to vector<16x2xf32>
    %106 = arith.select %4, %104, %105 : vector<16x2xi1>, vector<16x2xf32>
    %cst_60 = arith.constant dense<0xFF800000> : vector<2xf32>
    %107 = vector.multi_reduction <maximumf>, %106, %cst_60 [0] : vector<16x2xf32> to vector<2xf32>
    %108 = vector.shape_cast %107 : vector<2xf32> to vector<1x2xf32>
    %109 = vector.broadcast %102 : vector<16x1xf32> to vector<16x2xf32>
    %110 = vector.broadcast %108 : vector<1x2xf32> to vector<16x2xf32>
    %111 = arith.subf %109, %110 : vector<16x2xf32>
    %112 = math.exp %111 : vector<16x2xf32>
    %cst_61 = arith.constant 0.000000e+00 : f32
    %113 = vector.broadcast %cst_61 : f32 to vector<16x2xf32>
    %114 = arith.select %4, %112, %113 : vector<16x2xi1>, vector<16x2xf32>
    %cst_62 = arith.constant dense<0.000000e+00> : vector<2xf32>
    %115 = vector.multi_reduction <add>, %114, %cst_62 [0] : vector<16x2xf32> to vector<2xf32>
    %116 = vector.shape_cast %115 : vector<2xf32> to vector<1x2xf32>
    %117 = math.log %116 : vector<1x2xf32>
    %118 = arith.addf %108, %117 : vector<1x2xf32>
    %119 = vector.broadcast %118 : vector<1x2xf32> to vector<16x2xf32>
    %120 = arith.mulf %2, %119 : vector<16x2xf32>
    %cst_63 = arith.constant dense<0.000000e+00> : vector<16xf32>
    %121 = vector.multi_reduction <add>, %120, %cst_63 [1] : vector<16x2xf32> to vector<16xf32>
    %122 = vector.shape_cast %121 : vector<16xf32> to vector<16x1xf32>
    %123 = arith.subf %102, %122 : vector<16x1xf32>
    %c16 = arith.constant 16 : index
    %c0_64 = arith.constant 0 : index
    %124 = vector.load %arg16[%c16, %c0_64] : memref<128x32xf32, #tpu.memory_space<vmem>>, vector<16x32xf32>
    tpu.vector_store %arg16[%c16, %c0_64], %97 {strides = array<i32>} : memref<128x32xf32, #tpu.memory_space<vmem>>, vector<16x32xf32>,
    %125 = math.exp %123 : vector<16x1xf32>
    %126 = vector.broadcast %125 : vector<16x1xf32> to vector<16x32xf32>
    %127 = arith.mulf %97, %126 : vector<16x32xf32>
    %c16_65 = arith.constant 16 : index
    %c0_66 = arith.constant 0 : index
    %128 = vector.load %arg17[%c16_65, %c0_66] : memref<128x32xf32, #tpu.memory_space<vmem>>, vector<16x32xf32>
    tpu.vector_store %arg17[%c16_65, %c0_66], %127 {strides = array<i32>} : memref<128x32xf32, #tpu.memory_space<vmem>>, vector<16x32xf32>,
    %c2 = arith.constant 2 : index
    %c0_67 = arith.constant 0 : index
    %c0_68 = arith.constant 0 : index
    %129 = vector.load %arg0[%c2, %c0_67, %c0_68] : memref<8x16x32xf32, #tpu.memory_space<vmem>>, vector<1x16x32xf32>
    %130 = vector.shape_cast %129 : vector<1x16x32xf32> to vector<16x32xf32>
    %cst_69 = arith.constant dense<0.000000e+00> : vector<16x32xf32>
    %131 = tpu.matmul %97, %5, %cst_69 {dimension_numbers = #tpu.dot_dimension_numbers<[1], [0], [0], [1], [0, 0, 1, 1], [], []>} : vector<16x32xf32>, vector<32x32xf32>, vector<16x32xf32> -> vector<16x32xf32>
    %132 = arith.addf %130, %131 : vector<16x32xf32>
    %133 = arith.negf %132 : vector<16x32xf32>
    %134 = math.exp %133 : vector<16x32xf32>
    %cst_70 = arith.constant 1.000000e+00 : f32
    %135 = vector.broadcast %cst_70 : f32 to vector<16x32xf32>
    %136 = arith.addf %135, %134 : vector<16x32xf32>
    %137 = arith.divf %135, %136 : vector<16x32xf32>
    %c2_71 = arith.constant 2 : index
    %c0_72 = arith.constant 0 : index
    %c0_73 = arith.constant 0 : index
    %138 = vector.load %arg1[%c2_71, %c0_72, %c0_73] : memref<8x16x32xf32, #tpu.memory_space<vmem>>, vector<1x16x32xf32>
    %139 = vector.shape_cast %138 : vector<1x16x32xf32> to vector<16x32xf32>
    %cst_74 = arith.constant dense<0.000000e+00> : vector<16x32xf32>
    %140 = tpu.matmul %97, %6, %cst_74 {dimension_numbers = #tpu.dot_dimension_numbers<[1], [0], [0], [1], [0, 0, 1, 1], [], []>} : vector<16x32xf32>, vector<32x32xf32>, vector<16x32xf32> -> vector<16x32xf32>
    %141 = arith.addf %139, %140 : vector<16x32xf32>
    %142 = arith.negf %141 : vector<16x32xf32>
    %143 = math.exp %142 : vector<16x32xf32>
    %cst_75 = arith.constant 1.000000e+00 : f32
    %144 = vector.broadcast %cst_75 : f32 to vector<16x32xf32>
    %145 = arith.addf %144, %143 : vector<16x32xf32>
    %146 = arith.divf %144, %145 : vector<16x32xf32>
    %c2_76 = arith.constant 2 : index
    %c0_77 = arith.constant 0 : index
    %c0_78 = arith.constant 0 : index
    %147 = vector.load %arg2[%c2_76, %c0_77, %c0_78] : memref<8x16x32xf32, #tpu.memory_space<vmem>>, vector<1x16x32xf32>
    %148 = vector.shape_cast %147 : vector<1x16x32xf32> to vector<16x32xf32>
    %149 = arith.mulf %146, %97 : vector<16x32xf32>
    %cst_79 = arith.constant dense<0.000000e+00> : vector<16x32xf32>
    %150 = tpu.matmul %149, %7, %cst_79 {dimension_numbers = #tpu.dot_dimension_numbers<[1], [0], [0], [1], [0, 0, 1, 1], [], []>} : vector<16x32xf32>, vector<32x32xf32>, vector<16x32xf32> -> vector<16x32xf32>
    %151 = arith.addf %148, %150 : vector<16x32xf32>
    %152 = math.tanh %151 : vector<16x32xf32>
    %cst_80 = arith.constant 1.000000e+00 : f32
    %153 = vector.broadcast %cst_80 : f32 to vector<16x32xf32>
    %154 = arith.subf %153, %137 : vector<16x32xf32>
    %155 = arith.mulf %154, %152 : vector<16x32xf32>
    %156 = arith.mulf %137, %97 : vector<16x32xf32>
    %157 = arith.addf %155, %156 : vector<16x32xf32>
    %c2_81 = arith.constant 2 : index
    %c0_82 = arith.constant 0 : index
    %c0_83 = arith.constant 0 : index
    %158 = vector.load %arg3[%c2_81, %c0_82, %c0_83] : memref<8x16x1xf32, #tpu.memory_space<vmem>>, vector<1x16x1xf32>
    %159 = vector.shape_cast %158 : vector<1x16x1xf32> to vector<16x1xf32>
    %cst_84 = arith.constant dense<0.000000e+00> : vector<16x1xf32>
    %160 = tpu.matmul %157, %8, %cst_84 {dimension_numbers = #tpu.dot_dimension_numbers<[1], [0], [0], [1], [0, 0, 1, 1], [], []>} : vector<16x32xf32>, vector<32x1xf32>, vector<16x1xf32> -> vector<16x1xf32>
    %161 = arith.addf %159, %160 : vector<16x1xf32>
    %162 = arith.addf %161, %123 : vector<16x1xf32>
    %cst_85 = arith.constant 0xFF800000 : f32
    %163 = vector.shape_cast %162 : vector<16x1xf32> to vector<16x1xf32>
    %164 = vector.broadcast %163 : vector<16x1xf32> to vector<16x2xf32>
    %165 = vector.broadcast %cst_85 : f32 to vector<16x2xf32>
    %166 = arith.select %4, %164, %165 : vector<16x2xi1>, vector<16x2xf32>
    %cst_86 = arith.constant dense<0xFF800000> : vector<2xf32>
    %167 = vector.multi_reduction <maximumf>, %166, %cst_86 [0] : vector<16x2xf32> to vector<2xf32>
    %168 = vector.shape_cast %167 : vector<2xf32> to vector<1x2xf32>
    %169 = vector.broadcast %162 : vector<16x1xf32> to vector<16x2xf32>
    %170 = vector.broadcast %168 : vector<1x2xf32> to vector<16x2xf32>
    %171 = arith.subf %169, %170 : vector<16x2xf32>
    %172 = math.exp %171 : vector<16x2xf32>
    %cst_87 = arith.constant 0.000000e+00 : f32
    %173 = vector.broadcast %cst_87 : f32 to vector<16x2xf32>
    %174 = arith.select %4, %172, %173 : vector<16x2xi1>, vector<16x2xf32>
    %cst_88 = arith.constant dense<0.000000e+00> : vector<2xf32>
    %175 = vector.multi_reduction <add>, %174, %cst_88 [0] : vector<16x2xf32> to vector<2xf32>
    %176 = vector.shape_cast %175 : vector<2xf32> to vector<1x2xf32>
    %177 = math.log %176 : vector<1x2xf32>
    %178 = arith.addf %168, %177 : vector<1x2xf32>
    %179 = vector.broadcast %178 : vector<1x2xf32> to vector<16x2xf32>
    %180 = arith.mulf %2, %179 : vector<16x2xf32>
    %cst_89 = arith.constant dense<0.000000e+00> : vector<16xf32>
    %181 = vector.multi_reduction <add>, %180, %cst_89 [1] : vector<16x2xf32> to vector<16xf32>
    %182 = vector.shape_cast %181 : vector<16xf32> to vector<16x1xf32>
    %183 = arith.subf %162, %182 : vector<16x1xf32>
    %c32 = arith.constant 32 : index
    %c0_90 = arith.constant 0 : index
    %184 = vector.load %arg16[%c32, %c0_90] : memref<128x32xf32, #tpu.memory_space<vmem>>, vector<16x32xf32>
    tpu.vector_store %arg16[%c32, %c0_90], %157 {strides = array<i32>} : memref<128x32xf32, #tpu.memory_space<vmem>>, vector<16x32xf32>,
    %185 = math.exp %183 : vector<16x1xf32>
    %186 = vector.broadcast %185 : vector<16x1xf32> to vector<16x32xf32>
    %187 = arith.mulf %157, %186 : vector<16x32xf32>
    %c32_91 = arith.constant 32 : index
    %c0_92 = arith.constant 0 : index
    %188 = vector.load %arg17[%c32_91, %c0_92] : memref<128x32xf32, #tpu.memory_space<vmem>>, vector<16x32xf32>
    tpu.vector_store %arg17[%c32_91, %c0_92], %187 {strides = array<i32>} : memref<128x32xf32, #tpu.memory_space<vmem>>, vector<16x32xf32>,
    %c3 = arith.constant 3 : index
    %c0_93 = arith.constant 0 : index
    %c0_94 = arith.constant 0 : index
    %189 = vector.load %arg0[%c3, %c0_93, %c0_94] : memref<8x16x32xf32, #tpu.memory_space<vmem>>, vector<1x16x32xf32>
    %190 = vector.shape_cast %189 : vector<1x16x32xf32> to vector<16x32xf32>
    %cst_95 = arith.constant dense<0.000000e+00> : vector<16x32xf32>
    %191 = tpu.matmul %157, %5, %cst_95 {dimension_numbers = #tpu.dot_dimension_numbers<[1], [0], [0], [1], [0, 0, 1, 1], [], []>} : vector<16x32xf32>, vector<32x32xf32>, vector<16x32xf32> -> vector<16x32xf32>
    %192 = arith.addf %190, %191 : vector<16x32xf32>
    %193 = arith.negf %192 : vector<16x32xf32>
    %194 = math.exp %193 : vector<16x32xf32>
    %cst_96 = arith.constant 1.000000e+00 : f32
    %195 = vector.broadcast %cst_96 : f32 to vector<16x32xf32>
    %196 = arith.addf %195, %194 : vector<16x32xf32>
    %197 = arith.divf %195, %196 : vector<16x32xf32>
    %c3_97 = arith.constant 3 : index
    %c0_98 = arith.constant 0 : index
    %c0_99 = arith.constant 0 : index
    %198 = vector.load %arg1[%c3_97, %c0_98, %c0_99] : memref<8x16x32xf32, #tpu.memory_space<vmem>>, vector<1x16x32xf32>
    %199 = vector.shape_cast %198 : vector<1x16x32xf32> to vector<16x32xf32>
    %cst_100 = arith.constant dense<0.000000e+00> : vector<16x32xf32>
    %200 = tpu.matmul %157, %6, %cst_100 {dimension_numbers = #tpu.dot_dimension_numbers<[1], [0], [0], [1], [0, 0, 1, 1], [], []>} : vector<16x32xf32>, vector<32x32xf32>, vector<16x32xf32> -> vector<16x32xf32>
    %201 = arith.addf %199, %200 : vector<16x32xf32>
    %202 = arith.negf %201 : vector<16x32xf32>
    %203 = math.exp %202 : vector<16x32xf32>
    %cst_101 = arith.constant 1.000000e+00 : f32
    %204 = vector.broadcast %cst_101 : f32 to vector<16x32xf32>
    %205 = arith.addf %204, %203 : vector<16x32xf32>
    %206 = arith.divf %204, %205 : vector<16x32xf32>
    %c3_102 = arith.constant 3 : index
    %c0_103 = arith.constant 0 : index
    %c0_104 = arith.constant 0 : index
    %207 = vector.load %arg2[%c3_102, %c0_103, %c0_104] : memref<8x16x32xf32, #tpu.memory_space<vmem>>, vector<1x16x32xf32>
    %208 = vector.shape_cast %207 : vector<1x16x32xf32> to vector<16x32xf32>
    %209 = arith.mulf %206, %157 : vector<16x32xf32>
    %cst_105 = arith.constant dense<0.000000e+00> : vector<16x32xf32>
    %210 = tpu.matmul %209, %7, %cst_105 {dimension_numbers = #tpu.dot_dimension_numbers<[1], [0], [0], [1], [0, 0, 1, 1], [], []>} : vector<16x32xf32>, vector<32x32xf32>, vector<16x32xf32> -> vector<16x32xf32>
    %211 = arith.addf %208, %210 : vector<16x32xf32>
    %212 = math.tanh %211 : vector<16x32xf32>
    %cst_106 = arith.constant 1.000000e+00 : f32
    %213 = vector.broadcast %cst_106 : f32 to vector<16x32xf32>
    %214 = arith.subf %213, %197 : vector<16x32xf32>
    %215 = arith.mulf %214, %212 : vector<16x32xf32>
    %216 = arith.mulf %197, %157 : vector<16x32xf32>
    %217 = arith.addf %215, %216 : vector<16x32xf32>
    %c3_107 = arith.constant 3 : index
    %c0_108 = arith.constant 0 : index
    %c0_109 = arith.constant 0 : index
    %218 = vector.load %arg3[%c3_107, %c0_108, %c0_109] : memref<8x16x1xf32, #tpu.memory_space<vmem>>, vector<1x16x1xf32>
    %219 = vector.shape_cast %218 : vector<1x16x1xf32> to vector<16x1xf32>
    %cst_110 = arith.constant dense<0.000000e+00> : vector<16x1xf32>
    %220 = tpu.matmul %217, %8, %cst_110 {dimension_numbers = #tpu.dot_dimension_numbers<[1], [0], [0], [1], [0, 0, 1, 1], [], []>} : vector<16x32xf32>, vector<32x1xf32>, vector<16x1xf32> -> vector<16x1xf32>
    %221 = arith.addf %219, %220 : vector<16x1xf32>
    %222 = arith.addf %221, %183 : vector<16x1xf32>
    %cst_111 = arith.constant 0xFF800000 : f32
    %223 = vector.shape_cast %222 : vector<16x1xf32> to vector<16x1xf32>
    %224 = vector.broadcast %223 : vector<16x1xf32> to vector<16x2xf32>
    %225 = vector.broadcast %cst_111 : f32 to vector<16x2xf32>
    %226 = arith.select %4, %224, %225 : vector<16x2xi1>, vector<16x2xf32>
    %cst_112 = arith.constant dense<0xFF800000> : vector<2xf32>
    %227 = vector.multi_reduction <maximumf>, %226, %cst_112 [0] : vector<16x2xf32> to vector<2xf32>
    %228 = vector.shape_cast %227 : vector<2xf32> to vector<1x2xf32>
    %229 = vector.broadcast %222 : vector<16x1xf32> to vector<16x2xf32>
    %230 = vector.broadcast %228 : vector<1x2xf32> to vector<16x2xf32>
    %231 = arith.subf %229, %230 : vector<16x2xf32>
    %232 = math.exp %231 : vector<16x2xf32>
    %cst_113 = arith.constant 0.000000e+00 : f32
    %233 = vector.broadcast %cst_113 : f32 to vector<16x2xf32>
    %234 = arith.select %4, %232, %233 : vector<16x2xi1>, vector<16x2xf32>
    %cst_114 = arith.constant dense<0.000000e+00> : vector<2xf32>
    %235 = vector.multi_reduction <add>, %234, %cst_114 [0] : vector<16x2xf32> to vector<2xf32>
    %236 = vector.shape_cast %235 : vector<2xf32> to vector<1x2xf32>
    %237 = math.log %236 : vector<1x2xf32>
    %238 = arith.addf %228, %237 : vector<1x2xf32>
    %239 = vector.broadcast %238 : vector<1x2xf32> to vector<16x2xf32>
    %240 = arith.mulf %2, %239 : vector<16x2xf32>
    %cst_115 = arith.constant dense<0.000000e+00> : vector<16xf32>
    %241 = vector.multi_reduction <add>, %240, %cst_115 [1] : vector<16x2xf32> to vector<16xf32>
    %242 = vector.shape_cast %241 : vector<16xf32> to vector<16x1xf32>
    %243 = arith.subf %222, %242 : vector<16x1xf32>
    %c48 = arith.constant 48 : index
    %c0_116 = arith.constant 0 : index
    %244 = vector.load %arg16[%c48, %c0_116] : memref<128x32xf32, #tpu.memory_space<vmem>>, vector<16x32xf32>
    tpu.vector_store %arg16[%c48, %c0_116], %217 {strides = array<i32>} : memref<128x32xf32, #tpu.memory_space<vmem>>, vector<16x32xf32>,
    %245 = math.exp %243 : vector<16x1xf32>
    %246 = vector.broadcast %245 : vector<16x1xf32> to vector<16x32xf32>
    %247 = arith.mulf %217, %246 : vector<16x32xf32>
    %c48_117 = arith.constant 48 : index
    %c0_118 = arith.constant 0 : index
    %248 = vector.load %arg17[%c48_117, %c0_118] : memref<128x32xf32, #tpu.memory_space<vmem>>, vector<16x32xf32>
    tpu.vector_store %arg17[%c48_117, %c0_118], %247 {strides = array<i32>} : memref<128x32xf32, #tpu.memory_space<vmem>>, vector<16x32xf32>,
    %c4 = arith.constant 4 : index
    %c0_119 = arith.constant 0 : index
    %c0_120 = arith.constant 0 : index
    %249 = vector.load %arg0[%c4, %c0_119, %c0_120] : memref<8x16x32xf32, #tpu.memory_space<vmem>>, vector<1x16x32xf32>
    %250 = vector.shape_cast %249 : vector<1x16x32xf32> to vector<16x32xf32>
    %cst_121 = arith.constant dense<0.000000e+00> : vector<16x32xf32>
    %251 = tpu.matmul %217, %5, %cst_121 {dimension_numbers = #tpu.dot_dimension_numbers<[1], [0], [0], [1], [0, 0, 1, 1], [], []>} : vector<16x32xf32>, vector<32x32xf32>, vector<16x32xf32> -> vector<16x32xf32>
    %252 = arith.addf %250, %251 : vector<16x32xf32>
    %253 = arith.negf %252 : vector<16x32xf32>
    %254 = math.exp %253 : vector<16x32xf32>
    %cst_122 = arith.constant 1.000000e+00 : f32
    %255 = vector.broadcast %cst_122 : f32 to vector<16x32xf32>
    %256 = arith.addf %255, %254 : vector<16x32xf32>
    %257 = arith.divf %255, %256 : vector<16x32xf32>
    %c4_123 = arith.constant 4 : index
    %c0_124 = arith.constant 0 : index
    %c0_125 = arith.constant 0 : index
    %258 = vector.load %arg1[%c4_123, %c0_124, %c0_125] : memref<8x16x32xf32, #tpu.memory_space<vmem>>, vector<1x16x32xf32>
    %259 = vector.shape_cast %258 : vector<1x16x32xf32> to vector<16x32xf32>
    %cst_126 = arith.constant dense<0.000000e+00> : vector<16x32xf32>
    %260 = tpu.matmul %217, %6, %cst_126 {dimension_numbers = #tpu.dot_dimension_numbers<[1], [0], [0], [1], [0, 0, 1, 1], [], []>} : vector<16x32xf32>, vector<32x32xf32>, vector<16x32xf32> -> vector<16x32xf32>
    %261 = arith.addf %259, %260 : vector<16x32xf32>
    %262 = arith.negf %261 : vector<16x32xf32>
    %263 = math.exp %262 : vector<16x32xf32>
    %cst_127 = arith.constant 1.000000e+00 : f32
    %264 = vector.broadcast %cst_127 : f32 to vector<16x32xf32>
    %265 = arith.addf %264, %263 : vector<16x32xf32>
    %266 = arith.divf %264, %265 : vector<16x32xf32>
    %c4_128 = arith.constant 4 : index
    %c0_129 = arith.constant 0 : index
    %c0_130 = arith.constant 0 : index
    %267 = vector.load %arg2[%c4_128, %c0_129, %c0_130] : memref<8x16x32xf32, #tpu.memory_space<vmem>>, vector<1x16x32xf32>
    %268 = vector.shape_cast %267 : vector<1x16x32xf32> to vector<16x32xf32>
    %269 = arith.mulf %266, %217 : vector<16x32xf32>
    %cst_131 = arith.constant dense<0.000000e+00> : vector<16x32xf32>
    %270 = tpu.matmul %269, %7, %cst_131 {dimension_numbers = #tpu.dot_dimension_numbers<[1], [0], [0], [1], [0, 0, 1, 1], [], []>} : vector<16x32xf32>, vector<32x32xf32>, vector<16x32xf32> -> vector<16x32xf32>
    %271 = arith.addf %268, %270 : vector<16x32xf32>
    %272 = math.tanh %271 : vector<16x32xf32>
    %cst_132 = arith.constant 1.000000e+00 : f32
    %273 = vector.broadcast %cst_132 : f32 to vector<16x32xf32>
    %274 = arith.subf %273, %257 : vector<16x32xf32>
    %275 = arith.mulf %274, %272 : vector<16x32xf32>
    %276 = arith.mulf %257, %217 : vector<16x32xf32>
    %277 = arith.addf %275, %276 : vector<16x32xf32>
    %c4_133 = arith.constant 4 : index
    %c0_134 = arith.constant 0 : index
    %c0_135 = arith.constant 0 : index
    %278 = vector.load %arg3[%c4_133, %c0_134, %c0_135] : memref<8x16x1xf32, #tpu.memory_space<vmem>>, vector<1x16x1xf32>
    %279 = vector.shape_cast %278 : vector<1x16x1xf32> to vector<16x1xf32>
    %cst_136 = arith.constant dense<0.000000e+00> : vector<16x1xf32>
    %280 = tpu.matmul %277, %8, %cst_136 {dimension_numbers = #tpu.dot_dimension_numbers<[1], [0], [0], [1], [0, 0, 1, 1], [], []>} : vector<16x32xf32>, vector<32x1xf32>, vector<16x1xf32> -> vector<16x1xf32>
    %281 = arith.addf %279, %280 : vector<16x1xf32>
    %282 = arith.addf %281, %243 : vector<16x1xf32>
    %cst_137 = arith.constant 0xFF800000 : f32
    %283 = vector.shape_cast %282 : vector<16x1xf32> to vector<16x1xf32>
    %284 = vector.broadcast %283 : vector<16x1xf32> to vector<16x2xf32>
    %285 = vector.broadcast %cst_137 : f32 to vector<16x2xf32>
    %286 = arith.select %4, %284, %285 : vector<16x2xi1>, vector<16x2xf32>
    %cst_138 = arith.constant dense<0xFF800000> : vector<2xf32>
    %287 = vector.multi_reduction <maximumf>, %286, %cst_138 [0] : vector<16x2xf32> to vector<2xf32>
    %288 = vector.shape_cast %287 : vector<2xf32> to vector<1x2xf32>
    %289 = vector.broadcast %282 : vector<16x1xf32> to vector<16x2xf32>
    %290 = vector.broadcast %288 : vector<1x2xf32> to vector<16x2xf32>
    %291 = arith.subf %289, %290 : vector<16x2xf32>
    %292 = math.exp %291 : vector<16x2xf32>
    %cst_139 = arith.constant 0.000000e+00 : f32
    %293 = vector.broadcast %cst_139 : f32 to vector<16x2xf32>
    %294 = arith.select %4, %292, %293 : vector<16x2xi1>, vector<16x2xf32>
    %cst_140 = arith.constant dense<0.000000e+00> : vector<2xf32>
    %295 = vector.multi_reduction <add>, %294, %cst_140 [0] : vector<16x2xf32> to vector<2xf32>
    %296 = vector.shape_cast %295 : vector<2xf32> to vector<1x2xf32>
    %297 = math.log %296 : vector<1x2xf32>
    %298 = arith.addf %288, %297 : vector<1x2xf32>
    %299 = vector.broadcast %298 : vector<1x2xf32> to vector<16x2xf32>
    %300 = arith.mulf %2, %299 : vector<16x2xf32>
    %cst_141 = arith.constant dense<0.000000e+00> : vector<16xf32>
    %301 = vector.multi_reduction <add>, %300, %cst_141 [1] : vector<16x2xf32> to vector<16xf32>
    %302 = vector.shape_cast %301 : vector<16xf32> to vector<16x1xf32>
    %303 = arith.subf %282, %302 : vector<16x1xf32>
    %c64 = arith.constant 64 : index
    %c0_142 = arith.constant 0 : index
    %304 = vector.load %arg16[%c64, %c0_142] : memref<128x32xf32, #tpu.memory_space<vmem>>, vector<16x32xf32>
    tpu.vector_store %arg16[%c64, %c0_142], %277 {strides = array<i32>} : memref<128x32xf32, #tpu.memory_space<vmem>>, vector<16x32xf32>,
    %305 = math.exp %303 : vector<16x1xf32>
    %306 = vector.broadcast %305 : vector<16x1xf32> to vector<16x32xf32>
    %307 = arith.mulf %277, %306 : vector<16x32xf32>
    %c64_143 = arith.constant 64 : index
    %c0_144 = arith.constant 0 : index
    %308 = vector.load %arg17[%c64_143, %c0_144] : memref<128x32xf32, #tpu.memory_space<vmem>>, vector<16x32xf32>
    tpu.vector_store %arg17[%c64_143, %c0_144], %307 {strides = array<i32>} : memref<128x32xf32, #tpu.memory_space<vmem>>, vector<16x32xf32>,
    %c5 = arith.constant 5 : index
    %c0_145 = arith.constant 0 : index
    %c0_146 = arith.constant 0 : index
    %309 = vector.load %arg0[%c5, %c0_145, %c0_146] : memref<8x16x32xf32, #tpu.memory_space<vmem>>, vector<1x16x32xf32>
    %310 = vector.shape_cast %309 : vector<1x16x32xf32> to vector<16x32xf32>
    %cst_147 = arith.constant dense<0.000000e+00> : vector<16x32xf32>
    %311 = tpu.matmul %277, %5, %cst_147 {dimension_numbers = #tpu.dot_dimension_numbers<[1], [0], [0], [1], [0, 0, 1, 1], [], []>} : vector<16x32xf32>, vector<32x32xf32>, vector<16x32xf32> -> vector<16x32xf32>
    %312 = arith.addf %310, %311 : vector<16x32xf32>
    %313 = arith.negf %312 : vector<16x32xf32>
    %314 = math.exp %313 : vector<16x32xf32>
    %cst_148 = arith.constant 1.000000e+00 : f32
    %315 = vector.broadcast %cst_148 : f32 to vector<16x32xf32>
    %316 = arith.addf %315, %314 : vector<16x32xf32>
    %317 = arith.divf %315, %316 : vector<16x32xf32>
    %c5_149 = arith.constant 5 : index
    %c0_150 = arith.constant 0 : index
    %c0_151 = arith.constant 0 : index
    %318 = vector.load %arg1[%c5_149, %c0_150, %c0_151] : memref<8x16x32xf32, #tpu.memory_space<vmem>>, vector<1x16x32xf32>
    %319 = vector.shape_cast %318 : vector<1x16x32xf32> to vector<16x32xf32>
    %cst_152 = arith.constant dense<0.000000e+00> : vector<16x32xf32>
    %320 = tpu.matmul %277, %6, %cst_152 {dimension_numbers = #tpu.dot_dimension_numbers<[1], [0], [0], [1], [0, 0, 1, 1], [], []>} : vector<16x32xf32>, vector<32x32xf32>, vector<16x32xf32> -> vector<16x32xf32>
    %321 = arith.addf %319, %320 : vector<16x32xf32>
    %322 = arith.negf %321 : vector<16x32xf32>
    %323 = math.exp %322 : vector<16x32xf32>
    %cst_153 = arith.constant 1.000000e+00 : f32
    %324 = vector.broadcast %cst_153 : f32 to vector<16x32xf32>
    %325 = arith.addf %324, %323 : vector<16x32xf32>
    %326 = arith.divf %324, %325 : vector<16x32xf32>
    %c5_154 = arith.constant 5 : index
    %c0_155 = arith.constant 0 : index
    %c0_156 = arith.constant 0 : index
    %327 = vector.load %arg2[%c5_154, %c0_155, %c0_156] : memref<8x16x32xf32, #tpu.memory_space<vmem>>, vector<1x16x32xf32>
    %328 = vector.shape_cast %327 : vector<1x16x32xf32> to vector<16x32xf32>
    %329 = arith.mulf %326, %277 : vector<16x32xf32>
    %cst_157 = arith.constant dense<0.000000e+00> : vector<16x32xf32>
    %330 = tpu.matmul %329, %7, %cst_157 {dimension_numbers = #tpu.dot_dimension_numbers<[1], [0], [0], [1], [0, 0, 1, 1], [], []>} : vector<16x32xf32>, vector<32x32xf32>, vector<16x32xf32> -> vector<16x32xf32>
    %331 = arith.addf %328, %330 : vector<16x32xf32>
    %332 = math.tanh %331 : vector<16x32xf32>
    %cst_158 = arith.constant 1.000000e+00 : f32
    %333 = vector.broadcast %cst_158 : f32 to vector<16x32xf32>
    %334 = arith.subf %333, %317 : vector<16x32xf32>
    %335 = arith.mulf %334, %332 : vector<16x32xf32>
    %336 = arith.mulf %317, %277 : vector<16x32xf32>
    %337 = arith.addf %335, %336 : vector<16x32xf32>
    %c5_159 = arith.constant 5 : index
    %c0_160 = arith.constant 0 : index
    %c0_161 = arith.constant 0 : index
    %338 = vector.load %arg3[%c5_159, %c0_160, %c0_161] : memref<8x16x1xf32, #tpu.memory_space<vmem>>, vector<1x16x1xf32>
    %339 = vector.shape_cast %338 : vector<1x16x1xf32> to vector<16x1xf32>
    %cst_162 = arith.constant dense<0.000000e+00> : vector<16x1xf32>
    %340 = tpu.matmul %337, %8, %cst_162 {dimension_numbers = #tpu.dot_dimension_numbers<[1], [0], [0], [1], [0, 0, 1, 1], [], []>} : vector<16x32xf32>, vector<32x1xf32>, vector<16x1xf32> -> vector<16x1xf32>
    %341 = arith.addf %339, %340 : vector<16x1xf32>
    %342 = arith.addf %341, %303 : vector<16x1xf32>
    %cst_163 = arith.constant 0xFF800000 : f32
    %343 = vector.shape_cast %342 : vector<16x1xf32> to vector<16x1xf32>
    %344 = vector.broadcast %343 : vector<16x1xf32> to vector<16x2xf32>
    %345 = vector.broadcast %cst_163 : f32 to vector<16x2xf32>
    %346 = arith.select %4, %344, %345 : vector<16x2xi1>, vector<16x2xf32>
    %cst_164 = arith.constant dense<0xFF800000> : vector<2xf32>
    %347 = vector.multi_reduction <maximumf>, %346, %cst_164 [0] : vector<16x2xf32> to vector<2xf32>
    %348 = vector.shape_cast %347 : vector<2xf32> to vector<1x2xf32>
    %349 = vector.broadcast %342 : vector<16x1xf32> to vector<16x2xf32>
    %350 = vector.broadcast %348 : vector<1x2xf32> to vector<16x2xf32>
    %351 = arith.subf %349, %350 : vector<16x2xf32>
    %352 = math.exp %351 : vector<16x2xf32>
    %cst_165 = arith.constant 0.000000e+00 : f32
    %353 = vector.broadcast %cst_165 : f32 to vector<16x2xf32>
    %354 = arith.select %4, %352, %353 : vector<16x2xi1>, vector<16x2xf32>
    %cst_166 = arith.constant dense<0.000000e+00> : vector<2xf32>
    %355 = vector.multi_reduction <add>, %354, %cst_166 [0] : vector<16x2xf32> to vector<2xf32>
    %356 = vector.shape_cast %355 : vector<2xf32> to vector<1x2xf32>
    %357 = math.log %356 : vector<1x2xf32>
    %358 = arith.addf %348, %357 : vector<1x2xf32>
    %359 = vector.broadcast %358 : vector<1x2xf32> to vector<16x2xf32>
    %360 = arith.mulf %2, %359 : vector<16x2xf32>
    %cst_167 = arith.constant dense<0.000000e+00> : vector<16xf32>
    %361 = vector.multi_reduction <add>, %360, %cst_167 [1] : vector<16x2xf32> to vector<16xf32>
    %362 = vector.shape_cast %361 : vector<16xf32> to vector<16x1xf32>
    %363 = arith.subf %342, %362 : vector<16x1xf32>
    %c80 = arith.constant 80 : index
    %c0_168 = arith.constant 0 : index
    %364 = vector.load %arg16[%c80, %c0_168] : memref<128x32xf32, #tpu.memory_space<vmem>>, vector<16x32xf32>
    tpu.vector_store %arg16[%c80, %c0_168], %337 {strides = array<i32>} : memref<128x32xf32, #tpu.memory_space<vmem>>, vector<16x32xf32>,
    %365 = math.exp %363 : vector<16x1xf32>
    %366 = vector.broadcast %365 : vector<16x1xf32> to vector<16x32xf32>
    %367 = arith.mulf %337, %366 : vector<16x32xf32>
    %c80_169 = arith.constant 80 : index
    %c0_170 = arith.constant 0 : index
    %368 = vector.load %arg17[%c80_169, %c0_170] : memref<128x32xf32, #tpu.memory_space<vmem>>, vector<16x32xf32>
    tpu.vector_store %arg17[%c80_169, %c0_170], %367 {strides = array<i32>} : memref<128x32xf32, #tpu.memory_space<vmem>>, vector<16x32xf32>,
    %c6 = arith.constant 6 : index
    %c0_171 = arith.constant 0 : index
    %c0_172 = arith.constant 0 : index
    %369 = vector.load %arg0[%c6, %c0_171, %c0_172] : memref<8x16x32xf32, #tpu.memory_space<vmem>>, vector<1x16x32xf32>
    %370 = vector.shape_cast %369 : vector<1x16x32xf32> to vector<16x32xf32>
    %cst_173 = arith.constant dense<0.000000e+00> : vector<16x32xf32>
    %371 = tpu.matmul %337, %5, %cst_173 {dimension_numbers = #tpu.dot_dimension_numbers<[1], [0], [0], [1], [0, 0, 1, 1], [], []>} : vector<16x32xf32>, vector<32x32xf32>, vector<16x32xf32> -> vector<16x32xf32>
    %372 = arith.addf %370, %371 : vector<16x32xf32>
    %373 = arith.negf %372 : vector<16x32xf32>
    %374 = math.exp %373 : vector<16x32xf32>
    %cst_174 = arith.constant 1.000000e+00 : f32
    %375 = vector.broadcast %cst_174 : f32 to vector<16x32xf32>
    %376 = arith.addf %375, %374 : vector<16x32xf32>
    %377 = arith.divf %375, %376 : vector<16x32xf32>
    %c6_175 = arith.constant 6 : index
    %c0_176 = arith.constant 0 : index
    %c0_177 = arith.constant 0 : index
    %378 = vector.load %arg1[%c6_175, %c0_176, %c0_177] : memref<8x16x32xf32, #tpu.memory_space<vmem>>, vector<1x16x32xf32>
    %379 = vector.shape_cast %378 : vector<1x16x32xf32> to vector<16x32xf32>
    %cst_178 = arith.constant dense<0.000000e+00> : vector<16x32xf32>
    %380 = tpu.matmul %337, %6, %cst_178 {dimension_numbers = #tpu.dot_dimension_numbers<[1], [0], [0], [1], [0, 0, 1, 1], [], []>} : vector<16x32xf32>, vector<32x32xf32>, vector<16x32xf32> -> vector<16x32xf32>
    %381 = arith.addf %379, %380 : vector<16x32xf32>
    %382 = arith.negf %381 : vector<16x32xf32>
    %383 = math.exp %382 : vector<16x32xf32>
    %cst_179 = arith.constant 1.000000e+00 : f32
    %384 = vector.broadcast %cst_179 : f32 to vector<16x32xf32>
    %385 = arith.addf %384, %383 : vector<16x32xf32>
    %386 = arith.divf %384, %385 : vector<16x32xf32>
    %c6_180 = arith.constant 6 : index
    %c0_181 = arith.constant 0 : index
    %c0_182 = arith.constant 0 : index
    %387 = vector.load %arg2[%c6_180, %c0_181, %c0_182] : memref<8x16x32xf32, #tpu.memory_space<vmem>>, vector<1x16x32xf32>
    %388 = vector.shape_cast %387 : vector<1x16x32xf32> to vector<16x32xf32>
    %389 = arith.mulf %386, %337 : vector<16x32xf32>
    %cst_183 = arith.constant dense<0.000000e+00> : vector<16x32xf32>
    %390 = tpu.matmul %389, %7, %cst_183 {dimension_numbers = #tpu.dot_dimension_numbers<[1], [0], [0], [1], [0, 0, 1, 1], [], []>} : vector<16x32xf32>, vector<32x32xf32>, vector<16x32xf32> -> vector<16x32xf32>
    %391 = arith.addf %388, %390 : vector<16x32xf32>
    %392 = math.tanh %391 : vector<16x32xf32>
    %cst_184 = arith.constant 1.000000e+00 : f32
    %393 = vector.broadcast %cst_184 : f32 to vector<16x32xf32>
    %394 = arith.subf %393, %377 : vector<16x32xf32>
    %395 = arith.mulf %394, %392 : vector<16x32xf32>
    %396 = arith.mulf %377, %337 : vector<16x32xf32>
    %397 = arith.addf %395, %396 : vector<16x32xf32>
    %c6_185 = arith.constant 6 : index
    %c0_186 = arith.constant 0 : index
    %c0_187 = arith.constant 0 : index
    %398 = vector.load %arg3[%c6_185, %c0_186, %c0_187] : memref<8x16x1xf32, #tpu.memory_space<vmem>>, vector<1x16x1xf32>
    %399 = vector.shape_cast %398 : vector<1x16x1xf32> to vector<16x1xf32>
    %cst_188 = arith.constant dense<0.000000e+00> : vector<16x1xf32>
    %400 = tpu.matmul %397, %8, %cst_188 {dimension_numbers = #tpu.dot_dimension_numbers<[1], [0], [0], [1], [0, 0, 1, 1], [], []>} : vector<16x32xf32>, vector<32x1xf32>, vector<16x1xf32> -> vector<16x1xf32>
    %401 = arith.addf %399, %400 : vector<16x1xf32>
    %402 = arith.addf %401, %363 : vector<16x1xf32>
    %cst_189 = arith.constant 0xFF800000 : f32
    %403 = vector.shape_cast %402 : vector<16x1xf32> to vector<16x1xf32>
    %404 = vector.broadcast %403 : vector<16x1xf32> to vector<16x2xf32>
    %405 = vector.broadcast %cst_189 : f32 to vector<16x2xf32>
    %406 = arith.select %4, %404, %405 : vector<16x2xi1>, vector<16x2xf32>
    %cst_190 = arith.constant dense<0xFF800000> : vector<2xf32>
    %407 = vector.multi_reduction <maximumf>, %406, %cst_190 [0] : vector<16x2xf32> to vector<2xf32>
    %408 = vector.shape_cast %407 : vector<2xf32> to vector<1x2xf32>
    %409 = vector.broadcast %402 : vector<16x1xf32> to vector<16x2xf32>
    %410 = vector.broadcast %408 : vector<1x2xf32> to vector<16x2xf32>
    %411 = arith.subf %409, %410 : vector<16x2xf32>
    %412 = math.exp %411 : vector<16x2xf32>
    %cst_191 = arith.constant 0.000000e+00 : f32
    %413 = vector.broadcast %cst_191 : f32 to vector<16x2xf32>
    %414 = arith.select %4, %412, %413 : vector<16x2xi1>, vector<16x2xf32>
    %cst_192 = arith.constant dense<0.000000e+00> : vector<2xf32>
    %415 = vector.multi_reduction <add>, %414, %cst_192 [0] : vector<16x2xf32> to vector<2xf32>
    %416 = vector.shape_cast %415 : vector<2xf32> to vector<1x2xf32>
    %417 = math.log %416 : vector<1x2xf32>
    %418 = arith.addf %408, %417 : vector<1x2xf32>
    %419 = vector.broadcast %418 : vector<1x2xf32> to vector<16x2xf32>
    %420 = arith.mulf %2, %419 : vector<16x2xf32>
    %cst_193 = arith.constant dense<0.000000e+00> : vector<16xf32>
    %421 = vector.multi_reduction <add>, %420, %cst_193 [1] : vector<16x2xf32> to vector<16xf32>
    %422 = vector.shape_cast %421 : vector<16xf32> to vector<16x1xf32>
    %423 = arith.subf %402, %422 : vector<16x1xf32>
    %c96 = arith.constant 96 : index
    %c0_194 = arith.constant 0 : index
    %424 = vector.load %arg16[%c96, %c0_194] : memref<128x32xf32, #tpu.memory_space<vmem>>, vector<16x32xf32>
    tpu.vector_store %arg16[%c96, %c0_194], %397 {strides = array<i32>} : memref<128x32xf32, #tpu.memory_space<vmem>>, vector<16x32xf32>,
    %425 = math.exp %423 : vector<16x1xf32>
    %426 = vector.broadcast %425 : vector<16x1xf32> to vector<16x32xf32>
    %427 = arith.mulf %397, %426 : vector<16x32xf32>
    %c96_195 = arith.constant 96 : index
    %c0_196 = arith.constant 0 : index
    %428 = vector.load %arg17[%c96_195, %c0_196] : memref<128x32xf32, #tpu.memory_space<vmem>>, vector<16x32xf32>
    tpu.vector_store %arg17[%c96_195, %c0_196], %427 {strides = array<i32>} : memref<128x32xf32, #tpu.memory_space<vmem>>, vector<16x32xf32>,
    %c7 = arith.constant 7 : index
    %c0_197 = arith.constant 0 : index
    %c0_198 = arith.constant 0 : index
    %429 = vector.load %arg0[%c7, %c0_197, %c0_198] : memref<8x16x32xf32, #tpu.memory_space<vmem>>, vector<1x16x32xf32>
    %430 = vector.shape_cast %429 : vector<1x16x32xf32> to vector<16x32xf32>
    %cst_199 = arith.constant dense<0.000000e+00> : vector<16x32xf32>
    %431 = tpu.matmul %397, %5, %cst_199 {dimension_numbers = #tpu.dot_dimension_numbers<[1], [0], [0], [1], [0, 0, 1, 1], [], []>} : vector<16x32xf32>, vector<32x32xf32>, vector<16x32xf32> -> vector<16x32xf32>
    %432 = arith.addf %430, %431 : vector<16x32xf32>
    %433 = arith.negf %432 : vector<16x32xf32>
    %434 = math.exp %433 : vector<16x32xf32>
    %cst_200 = arith.constant 1.000000e+00 : f32
    %435 = vector.broadcast %cst_200 : f32 to vector<16x32xf32>
    %436 = arith.addf %435, %434 : vector<16x32xf32>
    %437 = arith.divf %435, %436 : vector<16x32xf32>
    %c7_201 = arith.constant 7 : index
    %c0_202 = arith.constant 0 : index
    %c0_203 = arith.constant 0 : index
    %438 = vector.load %arg1[%c7_201, %c0_202, %c0_203] : memref<8x16x32xf32, #tpu.memory_space<vmem>>, vector<1x16x32xf32>
    %439 = vector.shape_cast %438 : vector<1x16x32xf32> to vector<16x32xf32>
    %cst_204 = arith.constant dense<0.000000e+00> : vector<16x32xf32>
    %440 = tpu.matmul %397, %6, %cst_204 {dimension_numbers = #tpu.dot_dimension_numbers<[1], [0], [0], [1], [0, 0, 1, 1], [], []>} : vector<16x32xf32>, vector<32x32xf32>, vector<16x32xf32> -> vector<16x32xf32>
    %441 = arith.addf %439, %440 : vector<16x32xf32>
    %442 = arith.negf %441 : vector<16x32xf32>
    %443 = math.exp %442 : vector<16x32xf32>
    %cst_205 = arith.constant 1.000000e+00 : f32
    %444 = vector.broadcast %cst_205 : f32 to vector<16x32xf32>
    %445 = arith.addf %444, %443 : vector<16x32xf32>
    %446 = arith.divf %444, %445 : vector<16x32xf32>
    %c7_206 = arith.constant 7 : index
    %c0_207 = arith.constant 0 : index
    %c0_208 = arith.constant 0 : index
    %447 = vector.load %arg2[%c7_206, %c0_207, %c0_208] : memref<8x16x32xf32, #tpu.memory_space<vmem>>, vector<1x16x32xf32>
    %448 = vector.shape_cast %447 : vector<1x16x32xf32> to vector<16x32xf32>
    %449 = arith.mulf %446, %397 : vector<16x32xf32>
    %cst_209 = arith.constant dense<0.000000e+00> : vector<16x32xf32>
    %450 = tpu.matmul %449, %7, %cst_209 {dimension_numbers = #tpu.dot_dimension_numbers<[1], [0], [0], [1], [0, 0, 1, 1], [], []>} : vector<16x32xf32>, vector<32x32xf32>, vector<16x32xf32> -> vector<16x32xf32>
    %451 = arith.addf %448, %450 : vector<16x32xf32>
    %452 = math.tanh %451 : vector<16x32xf32>
    %cst_210 = arith.constant 1.000000e+00 : f32
    %453 = vector.broadcast %cst_210 : f32 to vector<16x32xf32>
    %454 = arith.subf %453, %437 : vector<16x32xf32>
    %455 = arith.mulf %454, %452 : vector<16x32xf32>
    %456 = arith.mulf %437, %397 : vector<16x32xf32>
    %457 = arith.addf %455, %456 : vector<16x32xf32>
    %c7_211 = arith.constant 7 : index
    %c0_212 = arith.constant 0 : index
    %c0_213 = arith.constant 0 : index
    %458 = vector.load %arg3[%c7_211, %c0_212, %c0_213] : memref<8x16x1xf32, #tpu.memory_space<vmem>>, vector<1x16x1xf32>
    %459 = vector.shape_cast %458 : vector<1x16x1xf32> to vector<16x1xf32>
    %cst_214 = arith.constant dense<0.000000e+00> : vector<16x1xf32>
    %460 = tpu.matmul %457, %8, %cst_214 {dimension_numbers = #tpu.dot_dimension_numbers<[1], [0], [0], [1], [0, 0, 1, 1], [], []>} : vector<16x32xf32>, vector<32x1xf32>, vector<16x1xf32> -> vector<16x1xf32>
    %461 = arith.addf %459, %460 : vector<16x1xf32>
    %462 = arith.addf %461, %423 : vector<16x1xf32>
    %cst_215 = arith.constant 0xFF800000 : f32
    %463 = vector.shape_cast %462 : vector<16x1xf32> to vector<16x1xf32>
    %464 = vector.broadcast %463 : vector<16x1xf32> to vector<16x2xf32>
    %465 = vector.broadcast %cst_215 : f32 to vector<16x2xf32>
    %466 = arith.select %4, %464, %465 : vector<16x2xi1>, vector<16x2xf32>
    %cst_216 = arith.constant dense<0xFF800000> : vector<2xf32>
    %467 = vector.multi_reduction <maximumf>, %466, %cst_216 [0] : vector<16x2xf32> to vector<2xf32>
    %468 = vector.shape_cast %467 : vector<2xf32> to vector<1x2xf32>
    %469 = vector.broadcast %462 : vector<16x1xf32> to vector<16x2xf32>
    %470 = vector.broadcast %468 : vector<1x2xf32> to vector<16x2xf32>
    %471 = arith.subf %469, %470 : vector<16x2xf32>
    %472 = math.exp %471 : vector<16x2xf32>
    %cst_217 = arith.constant 0.000000e+00 : f32
    %473 = vector.broadcast %cst_217 : f32 to vector<16x2xf32>
    %474 = arith.select %4, %472, %473 : vector<16x2xi1>, vector<16x2xf32>
    %cst_218 = arith.constant dense<0.000000e+00> : vector<2xf32>
    %475 = vector.multi_reduction <add>, %474, %cst_218 [0] : vector<16x2xf32> to vector<2xf32>
    %476 = vector.shape_cast %475 : vector<2xf32> to vector<1x2xf32>
    %477 = math.log %476 : vector<1x2xf32>
    %478 = arith.addf %468, %477 : vector<1x2xf32>
    %479 = vector.broadcast %478 : vector<1x2xf32> to vector<16x2xf32>
    %480 = arith.mulf %2, %479 : vector<16x2xf32>
    %cst_219 = arith.constant dense<0.000000e+00> : vector<16xf32>
    %481 = vector.multi_reduction <add>, %480, %cst_219 [1] : vector<16x2xf32> to vector<16xf32>
    %482 = vector.shape_cast %481 : vector<16xf32> to vector<16x1xf32>
    %483 = arith.subf %462, %482 : vector<16x1xf32>
    %c112 = arith.constant 112 : index
    %c0_220 = arith.constant 0 : index
    %484 = vector.load %arg16[%c112, %c0_220] : memref<128x32xf32, #tpu.memory_space<vmem>>, vector<16x32xf32>
    tpu.vector_store %arg16[%c112, %c0_220], %457 {strides = array<i32>} : memref<128x32xf32, #tpu.memory_space<vmem>>, vector<16x32xf32>,
    %485 = math.exp %483 : vector<16x1xf32>
    %486 = vector.broadcast %485 : vector<16x1xf32> to vector<16x32xf32>
    %487 = arith.mulf %457, %486 : vector<16x32xf32>
    %c112_221 = arith.constant 112 : index
    %c0_222 = arith.constant 0 : index
    %488 = vector.load %arg17[%c112_221, %c0_222] : memref<128x32xf32, #tpu.memory_space<vmem>>, vector<16x32xf32>
    tpu.vector_store %arg17[%c112_221, %c0_222], %487 {strides = array<i32>} : memref<128x32xf32, #tpu.memory_space<vmem>>, vector<16x32xf32>,
    %c0_223 = arith.constant 0 : index
    %c0_224 = arith.constant 0 : index
    %489 = vector.load %arg12[%c0_223, %c0_224] : memref<32x3xf32, #tpu.memory_space<vmem>>, vector<32x3xf32>
    %c0_225 = arith.constant 0 : index
    %c0_226 = arith.constant 0 : index
    %490 = vector.load %arg13[%c0_225, %c0_226] : memref<1x3xf32, #tpu.memory_space<vmem>>, vector<1x3xf32>
    %c0_227 = arith.constant 0 : index
    %c0_228 = arith.constant 0 : index
    %491 = vector.load %arg16[%c0_227, %c0_228] : memref<128x32xf32, #tpu.memory_space<vmem>>, vector<128x32xf32>
    %cst_229 = arith.constant dense<0.000000e+00> : vector<128x3xf32>
    %492 = tpu.matmul %491, %489, %cst_229 {dimension_numbers = #tpu.dot_dimension_numbers<[1], [0], [0], [1], [0, 0, 1, 1], [], []>} : vector<128x32xf32>, vector<32x3xf32>, vector<128x3xf32> -> vector<128x3xf32>
    %493 = vector.broadcast %490 : vector<1x3xf32> to vector<128x3xf32>
    %494 = arith.addf %492, %493 : vector<128x3xf32>
    %495 = arith.negf %494 : vector<128x3xf32>
    %496 = math.exp %495 : vector<128x3xf32>
    %cst_230 = arith.constant 1.000000e+00 : f32
    %497 = vector.broadcast %cst_230 : f32 to vector<128x3xf32>
    %498 = arith.addf %497, %496 : vector<128x3xf32>
    %499 = arith.divf %497, %498 : vector<128x3xf32>
    %c0_231 = arith.constant 0 : index
    %c0_232 = arith.constant 0 : index
    %500 = vector.load %arg15[%c0_231, %c0_232] : memref<128x3xf32, #tpu.memory_space<vmem>>, vector<128x3xf32>
    tpu.vector_store %arg15[%c0_231, %c0_232], %499 {strides = array<i32>} : memref<128x3xf32, #tpu.memory_space<vmem>>, vector<128x3xf32>,
    %c0_233 = arith.constant 0 : index
    %c0_234 = arith.constant 0 : index
    %501 = vector.load %arg7[%c0_233, %c0_234] : memref<16x128xf32, #tpu.memory_space<vmem>>, vector<16x128xf32>
    %c0_235 = arith.constant 0 : index
    %c0_236 = arith.constant 0 : index
    %502 = vector.load %arg17[%c0_235, %c0_236] : memref<128x32xf32, #tpu.memory_space<vmem>>, vector<128x32xf32>
    %cst_237 = arith.constant dense<0.000000e+00> : vector<16x32xf32>
    %503 = tpu.matmul %501, %502, %cst_237 {dimension_numbers = #tpu.dot_dimension_numbers<[1], [0], [0], [1], [0, 0, 1, 1], [], []>} : vector<16x128xf32>, vector<128x32xf32>, vector<16x32xf32> -> vector<16x32xf32>
    %cst_238 = arith.constant dense<0.000000e+00> : vector<16x3xf32>
    %504 = tpu.matmul %503, %489, %cst_238 {dimension_numbers = #tpu.dot_dimension_numbers<[1], [0], [0], [1], [0, 0, 1, 1], [], []>} : vector<16x32xf32>, vector<32x3xf32>, vector<16x3xf32> -> vector<16x3xf32>
    %505 = vector.broadcast %490 : vector<1x3xf32> to vector<16x3xf32>
    %506 = arith.addf %504, %505 : vector<16x3xf32>
    %507 = arith.negf %506 : vector<16x3xf32>
    %508 = math.exp %507 : vector<16x3xf32>
    %cst_239 = arith.constant 1.000000e+00 : f32
    %509 = vector.broadcast %cst_239 : f32 to vector<16x3xf32>
    %510 = arith.addf %509, %508 : vector<16x3xf32>
    %511 = arith.divf %509, %510 : vector<16x3xf32>
    %c0_240 = arith.constant 0 : index
    %c0_241 = arith.constant 0 : index
    %512 = vector.load %arg14[%c0_240, %c0_241] : memref<16x3xf32, #tpu.memory_space<vmem>>, vector<16x3xf32>
    tpu.vector_store %arg14[%c0_240, %c0_241], %511 {strides = array<i32>} : memref<16x3xf32, #tpu.memory_space<vmem>>, vector<16x3xf32>,
    return
  }
}

</mosaic_0001>

<bundles_post_ra>
// kernel: localizer_forward.5
= control target key start
LH: loop header
LB: loop body
LE: loop exit
PB: predicated region body
PF: predicated region fallthrough
CT: control target
= control target key end

     0   :  { %vm37_vm0 = vcmask 261120   ;;  %vm293_vm1 = vcmask 130048   ;;  %s599_s1 = inlined_call_operand.vmem [shape: f32[32,16], index: 1, kind: input, shape index: {}]   ;;  %s600_s0 = inlined_call_operand.vmem [shape: f32[128,32], index: 0, kind: input, shape index: {}]   ;;  %s601_s2 = inlined_call_operand.vmem [shape: f32[1,16], index: 2, kind: input, shape index: {}]   ;;  %s602_s3 = inlined_call_operand.vmem [shape: f32[1,16], index: 3, kind: input, shape index: {}]   ;;  %s603_s4 = inlined_call_operand.vmem [shape: f32[128,16], index: 4, kind: output, shape index: {}]  }
   0x1   :  { %v36_v0 = vld [vmem:[%s599_s1 + $0x18] sm:$0xff]  ;;  %v35_v1 = vld [vmem:[%s599_s1 + $0x10] sm:$0xff]  ;;  %v34_v2 = vld [vmem:[%s599_s1 + $0x8] sm:$0xff] }
   0x2   :  { %352 = vmatprep.subr.mxu0 %v36_v0  ;;  %384 = vmatprep.subr.mxu1 %v36_v0  ;;  %v33_v3 = vld [vmem:[%s599_s1] sm:$0xff]  ;;  %v18_v6 = vld [vmem:[%s600_s0 + $0x8] sm:$0xff]  ;;  %v19_v8 = vld [vmem:[%s600_s0 + $0x10] sm:$0xff] }
   0x3   :  { %353 = vmatpush3.msra.mxu0 %v36_v0  ;;  %388 = vmatpush3.msra.mxu1 %v36_v0  ;;  %v17_v4 = vld [vmem:[%s600_s0] sm:$0xff]  ;;  %v26_v7 = vld [vmem:[%s600_s0 + $0x48] sm:$0xff]  ;;  %v27_v9 = vld [vmem:[%s600_s0 + $0x50] sm:$0xff] }
   0x4   :  { %354 = vmatprep.subr.mxu0 %v35_v1  ;;  %385 = vmatprep.subr.mxu1 %v35_v1  ;;  %v25_v5 = vld [vmem:[%s600_s0 + $0x40] sm:$0xff]  ;;  %v20_v10 = vld [vmem:[%s600_s0 + $0x18] sm:$0xff]  ;;  %v22_v14 = vld [vmem:[%s600_s0 + $0x28] sm:$0xff] }
   0x5   :  { %355 = vmatpush3.msra.mxu0 %v35_v1  ;;  %389 = vmatpush3.msra.mxu1 %v35_v1  ;;  %v28_v11 = vld [vmem:[%s600_s0 + $0x58] sm:$0xff]  ;;  %v21_v12 = vld [vmem:[%s600_s0 + $0x20] sm:$0xff]  ;;  %v30_v15 = vld [vmem:[%s600_s0 + $0x68] sm:$0xff] }
   0x6   :  { %356 = vmatprep.subr.mxu0 %v34_v2  ;;  %386 = vmatprep.subr.mxu1 %v34_v2  ;;  %v29_v13 = vld [vmem:[%s600_s0 + $0x60] sm:$0xff]  ;;  %v23_v16 = vld [vmem:[%s600_s0 + $0x30] sm:$0xff]  ;;  %v24_v18 = vld [vmem:[%s600_s0 + $0x38] sm:$0xff] }
   0x7   :  { %357 = vmatpush3.msra.mxu0 %v34_v2  ;;  %390 = vmatpush3.msra.mxu1 %v34_v2  ;;  %v31_v17 = vld [vmem:[%s600_s0 + $0x70] sm:$0xff]  ;;  %v32_v19 = vld [vmem:[%s600_s0 + $0x78] sm:$0xff]  ;;  %v496_v21 = vld [vmem:[%s601_s2] ss:$0 sm:$0xff] }
   0x8   :  { %358 = vmatprep.subr.mxu0 %v33_v3  ;;  %387 = vmatprep.subr.mxu1 %v33_v3  ;;  %v501_v25 = vld [vmem:[%s602_s3] ss:$0 sm:$0xff] }
   0x9   :  { %359 = vmatpush3.msra.mxu0 %v33_v3  ;;  %391 = vmatpush3.msra.mxu1 %v33_v3 }
   0xa   :  { %360 = vmatprep.mubr.msk.f32.mxu0 %vm37_vm0, %v17_v4  ;;  %372 = vmatprep.mubr.msk.f32.mxu1 %vm37_vm0, %v25_v5 }
   0xb   :  { %361 = vmatmul.mubr.msk.f32.vlgmr.msra.gmra.mxu0 %vm37_vm0, %v18_v6  ;;  %373 = vmatmul.mubr.msk.f32.vlgmr.msra.gmra.mxu1 %vm37_vm0, %v26_v7 }
   0xc   :  { %363 = vmatprep.mubr.msk.f32.mxu0 %vm37_vm0, %v19_v8  ;;  %375 = vmatprep.mubr.msk.f32.mxu1 %vm37_vm0, %v27_v9 }
   0xf   :  { %364 = vmatmul.mubr.msk.f32.gmra.mxu0 %vm37_vm0, %v20_v10  ;;  %376 = vmatmul.mubr.msk.f32.gmra.mxu1 %vm37_vm0, %v28_v11 }
  0x10   :  { %366 = vmatprep.mubr.msk.f32.mxu0 %vm37_vm0, %v21_v12  ;;  %378 = vmatprep.mubr.msk.f32.mxu1 %vm37_vm0, %v29_v13 }
  0x13   :  { %367 = vmatmul.mubr.msk.f32.gmra.mxu0 %vm37_vm0, %v22_v14  ;;  %379 = vmatmul.mubr.msk.f32.gmra.mxu1 %vm37_vm0, %v30_v15 }
  0x14   :  { %369 = vmatprep.mubr.msk.f32.mxu0 %vm37_vm0, %v23_v16  ;;  %381 = vmatprep.mubr.msk.f32.mxu1 %vm37_vm0, %v31_v17 }
  0x17   :  { %370 = vmatmul.mubr.msk.f32.gmra.mxu0 %vm37_vm0, %v24_v18  ;;  %382 = vmatmul.mubr.msk.f32.gmra.mxu1 %vm37_vm0, %v32_v19 }
  0xcb   :  { %v362_v20 = vpop.f32.mrf.mxu0  ;;  %v374_v22 = vpop.f32.mrf.mxu1 }
  0xcc   :  { %v232_v23 = vmax.f32 %v362_v20, 0.0  ;;  %v240_v24 = vmax.f32 %v374_v22, 0.0 }
  0xcd   :  { %v152_v26 = vpop.f32.mrf.mxu0  ;;  %v192_v27 = vpop.f32.mrf.mxu1 }
  0xce   :  { %v255_v28 = vmul.f32 %v496_v21, %v232_v23  ;;  %v263_v29 = vmul.f32 %v496_v21, %v240_v24  ;;  %v231_v30 = vmax.f32 %v152_v26, 0.0  ;;  %v239_v31 = vmax.f32 %v192_v27, 0.0 }
  0xcf   :  { %v365_v32 = vpop.f32.mrf.mxu0  ;;  %v377_v33 = vpop.f32.mrf.mxu1 }
  0xd0   :  { %v278_v34 = vadd.f32 %v501_v25, %v255_v28  ;;  %v286_v35 = vadd.f32 %v501_v25, %v263_v29  ;;  %v254_v36 = vmul.f32 %v496_v21, %v231_v30  ;;  %v262_v37 = vmul.f32 %v496_v21, %v239_v31 }
  0xd1   :  { %v234_v38 = vmax.f32 %v365_v32, 0.0  ;;  %v242_v39 = vmax.f32 %v377_v33, 0.0  ;;  %v162_v40 = vpop.f32.mrf.mxu0  ;;  %v202_v41 = vpop.f32.mrf.mxu1 }
  0xd2   :  { %295 = vst.msk [vmem:[%s603_s4 + $0x8] sm:$0xff] %vm293_vm1, %v278_v34  ;;  %303 = vst.msk [vmem:[%s603_s4 + $0x48] sm:$0xff] %vm293_vm1, %v286_v35  ;;  %v277_v42 = vadd.f32 %v501_v25, %v254_v36  ;;  %v285_v43 = vadd.f32 %v501_v25, %v262_v37  ;;  %v233_v44 = vmax.f32 %v162_v40, 0.0  ;;  %v241_v45 = vmax.f32 %v202_v41, 0.0 }
  0xd3   :  { %v257_v46 = vmul.f32 %v496_v21, %v234_v38  ;;  %v265_v47 = vmul.f32 %v496_v21, %v242_v39  ;;  %v368_v48 = vpop.f32.mrf.mxu0  ;;  %v380_v49 = vpop.f32.mrf.mxu1 }
  0xd4   :  { %294 = vst.msk [vmem:[%s603_s4] sm:$0xff] %vm293_vm1, %v277_v42  ;;  %302 = vst.msk [vmem:[%s603_s4 + $0x40] sm:$0xff] %vm293_vm1, %v285_v43  ;;  %v256_v50 = vmul.f32 %v496_v21, %v233_v44  ;;  %v264_v51 = vmul.f32 %v496_v21, %v241_v45  ;;  %v236_v52 = vmax.f32 %v368_v48, 0.0  ;;  %v244_v53 = vmax.f32 %v380_v49, 0.0 }
  0xd5   :  { %v280_v54 = vadd.f32 %v501_v25, %v257_v46  ;;  %v288_v55 = vadd.f32 %v501_v25, %v265_v47  ;;  %v172_v56 = vpop.f32.mrf.mxu0  ;;  %v212_v57 = vpop.f32.mrf.mxu1 }
  0xd6   :  { %v279_v58 = vadd.f32 %v501_v25, %v256_v50  ;;  %v287_v59 = vadd.f32 %v501_v25, %v264_v51  ;;  %v259_v60 = vmul.f32 %v496_v21, %v236_v52  ;;  %v267_v61 = vmul.f32 %v496_v21, %v244_v53 }
  0xd7   :  { %297 = vst.msk [vmem:[%s603_s4 + $0x18] sm:$0xff] %vm293_vm1, %v280_v54  ;;  %305 = vst.msk [vmem:[%s603_s4 + $0x58] sm:$0xff] %vm293_vm1, %v288_v55  ;;  %v235_v62 = vmax.f32 %v172_v56, 0.0  ;;  %v243_v63 = vmax.f32 %v212_v57, 0.0  ;;  %v371_v0 = vpop.f32.mrf.mxu0  ;;  %v383_v1 = vpop.f32.mrf.mxu1 }
  0xd8   :  { %296 = vst.msk [vmem:[%s603_s4 + $0x10] sm:$0xff] %vm293_vm1, %v279_v58  ;;  %304 = vst.msk [vmem:[%s603_s4 + $0x50] sm:$0xff] %vm293_vm1, %v287_v59  ;;  %v282_v2 = vadd.f32 %v501_v25, %v259_v60  ;;  %v290_v3 = vadd.f32 %v501_v25, %v267_v61  ;;  %v238_v4 = vmax.f32 %v371_v0, 0.0  ;;  %v246_v5 = vmax.f32 %v383_v1, 0.0 }
  0xd9   :  { %v258_v6 = vmul.f32 %v496_v21, %v235_v62  ;;  %v266_v7 = vmul.f32 %v496_v21, %v243_v63  ;;  %v182_v8 = vpop.f32.mrf.mxu0  ;;  %v222_v9 = vpop.f32.mrf.mxu1 }
  0xda   :  { %299 = vst.msk [vmem:[%s603_s4 + $0x28] sm:$0xff] %vm293_vm1, %v282_v2  ;;  %307 = vst.msk [vmem:[%s603_s4 + $0x68] sm:$0xff] %vm293_vm1, %v290_v3  ;;  %v261_v10 = vmul.f32 %v496_v21, %v238_v4  ;;  %v269_v11 = vmul.f32 %v496_v21, %v246_v5  ;;  %v237_v12 = vmax.f32 %v182_v8, 0.0  ;;  %v245_v13 = vmax.f32 %v222_v9, 0.0 }
  0xdb   :  { %v281_v14 = vadd.f32 %v501_v25, %v258_v6  ;;  %v289_v15 = vadd.f32 %v501_v25, %v266_v7 }
  0xdc   :  { %v284_v16 = vadd.f32 %v501_v25, %v261_v10  ;;  %v292_v17 = vadd.f32 %v501_v25, %v269_v11  ;;  %v260_v18 = vmul.f32 %v496_v21, %v237_v12  ;;  %v268_v19 = vmul.f32 %v496_v21, %v245_v13 }
  0xdd   :  { %298 = vst.msk [vmem:[%s603_s4 + $0x20] sm:$0xff] %vm293_vm1, %v281_v14  ;;  %306 = vst.msk [vmem:[%s603_s4 + $0x60] sm:$0xff] %vm293_vm1, %v289_v15 }
  0xde   :  { %301 = vst.msk [vmem:[%s603_s4 + $0x38] sm:$0xff] %vm293_vm1, %v284_v16  ;;  %309 = vst.msk [vmem:[%s603_s4 + $0x78] sm:$0xff] %vm293_vm1, %v292_v17  ;;  %v283_v20 = vadd.f32 %v501_v25, %v260_v18  ;;  %v291_v21 = vadd.f32 %v501_v25, %v268_v19 }
  0xe0   :  { %300 = vst.msk [vmem:[%s603_s4 + $0x30] sm:$0xff] %vm293_vm1, %v283_v20  ;;  %308 = vst.msk [vmem:[%s603_s4 + $0x70] sm:$0xff] %vm293_vm1, %v291_v21 }

// kernel: localizer_forward.6
= control target key start
LH: loop header
LB: loop body
LE: loop exit
PB: predicated region body
PF: predicated region fallthrough
CT: control target
= control target key end

     0   :  { %v399_v0 = vmov 0.0   ;;  %vm67_vm0 = vcmask 130048   ;;  %vm323_vm1 = vcmask 261120   ;;  %s733_s1 = inlined_call_operand.vmem [shape: f32[144,32], index: 1, kind: input, shape index: {}]   ;;  %s734_s0 = inlined_call_operand.vmem [shape: f32[128,144], index: 0, kind: input, shape index: {}]   ;;  %s735_s2 = inlined_call_operand.vmem [shape: f32[1,32], index: 2, kind: input, shape index: {}]   ;;  %s736_s3 = inlined_call_operand.vmem [shape: f32[1,32], index: 3, kind: input, shape index: {}]   ;;  %s737_s4 = inlined_call_operand.vmem [shape: f32[128,32], index: 4, kind: output, shape index: {}]  }
   0x1   :  { %116 = vmatprep.subr.mxu0 %v399_v0  ;;  %362 = vmatprep.subr.mxu1 %v399_v0  ;;  %v64_v1 = vld [vmem:[%s733_s1 + $0x78] sm:$0xff]  ;;  %v63_v2 = vld [vmem:[%s733_s1 + $0x70] sm:$0xff]  ;;  %v62_v3 = vld [vmem:[%s733_s1 + $0x68] sm:$0xff] }
   0x2   :  { %117 = vmatpush1.msra.mxu0 %v64_v1  ;;  %380 = vmatpush1.msra.mxu1 %v64_v1  ;;  %v61_v4 = vld [vmem:[%s733_s1 + $0x60] sm:$0xff]  ;;  %v60_v5 = vld [vmem:[%s733_s1 + $0x58] sm:$0xff]  ;;  %v59_v6 = vld [vmem:[%s733_s1 + $0x50] sm:$0xff] }
   0x3   :  { %118 = vmatprep.subr.mxu0 %v399_v0  ;;  %363 = vmatprep.subr.mxu1 %v399_v0  ;;  %v58_v7 = vld [vmem:[%s733_s1 + $0x48] sm:$0xff]  ;;  %v57_v8 = vld [vmem:[%s733_s1 + $0x40] sm:$0xff]  ;;  %v56_v9 = vld [vmem:[%s733_s1 + $0x38] sm:$0xff] }
   0x4   :  { %119 = vmatpush1.msra.mxu0 %v63_v2  ;;  %381 = vmatpush1.msra.mxu1 %v63_v2  ;;  %v55_v10 = vld [vmem:[%s733_s1 + $0x30] sm:$0xff]  ;;  %v54_v11 = vld [vmem:[%s733_s1 + $0x28] sm:$0xff]  ;;  %v53_v12 = vld [vmem:[%s733_s1 + $0x20] sm:$0xff] }
   0x5   :  { %120 = vmatprep.subr.mxu0 %v399_v0  ;;  %364 = vmatprep.subr.mxu1 %v399_v0  ;;  %v52_v13 = vld [vmem:[%s733_s1 + $0x18] sm:$0xff]  ;;  %v51_v14 = vld [vmem:[%s733_s1 + $0x10] sm:$0xff]  ;;  %v50_v15 = vld [vmem:[%s733_s1 + $0x8] sm:$0xff] }
   0x6   :  { %121 = vmatpush1.msra.mxu0 %v62_v3  ;;  %382 = vmatpush1.msra.mxu1 %v62_v3  ;;  %v49_v16 = vld [vmem:[%s733_s1] sm:$0xff]  ;;  %v66_v17 = vld [vmem:[%s733_s1 + $0x88] sm:$0xff]  ;;  %v20_v23 = vld [vmem:[%s734_s0 + $0x18] sm:$0xff] }
   0x7   :  { %122 = vmatprep.subr.mxu0 %v399_v0  ;;  %365 = vmatprep.subr.mxu1 %v399_v0  ;;  %v65_v18 = vld [vmem:[%s733_s1 + $0x80] sm:$0xff]  ;;  %v18_v19 = vld [vmem:[%s734_s0 + $0x8] sm:$0xff]  ;;  %v36_v24 = vld [vmem:[%s734_s0 + $0x98] sm:$0xff] }
   0x8   :  { %123 = vmatpush1.msra.mxu0 %v61_v4  ;;  %383 = vmatpush1.msra.mxu1 %v61_v4  ;;  %v34_v20 = vld [vmem:[%s734_s0 + $0x88] sm:$0xff]  ;;  %v17_v21 = vld [vmem:[%s734_s0] sm:$0xff]  ;;  %v19_v25 = vld [vmem:[%s734_s0 + $0x10] sm:$0xff] }
   0x9   :  { %124 = vmatprep.subr.mxu0 %v399_v0  ;;  %366 = vmatprep.subr.mxu1 %v399_v0  ;;  %v33_v22 = vld [vmem:[%s734_s0 + $0x80] sm:$0xff]  ;;  %v35_v26 = vld [vmem:[%s734_s0 + $0x90] sm:$0xff]  ;;  %v22_v27 = vld [vmem:[%s734_s0 + $0x28] sm:$0xff] }
   0xa   :  { %125 = vmatpush1.msra.mxu0 %v60_v5  ;;  %384 = vmatpush1.msra.mxu1 %v60_v5  ;;  %v38_v28 = vld [vmem:[%s734_s0 + $0xa8] sm:$0xff]  ;;  %v21_v29 = vld [vmem:[%s734_s0 + $0x20] sm:$0xff]  ;;  %v24_v31 = vld [vmem:[%s734_s0 + $0x38] sm:$0xff] }
   0xb   :  { %126 = vmatprep.subr.mxu0 %v399_v0  ;;  %367 = vmatprep.subr.mxu1 %v399_v0  ;;  %v37_v30 = vld [vmem:[%s734_s0 + $0xa0] sm:$0xff]  ;;  %v40_v32 = vld [vmem:[%s734_s0 + $0xb8] sm:$0xff]  ;;  %v23_v33 = vld [vmem:[%s734_s0 + $0x30] sm:$0xff] }
   0xc   :  { %127 = vmatpush1.msra.mxu0 %v59_v6  ;;  %385 = vmatpush1.msra.mxu1 %v59_v6  ;;  %v39_v34 = vld [vmem:[%s734_s0 + $0xb0] sm:$0xff]  ;;  %v26_v35 = vld [vmem:[%s734_s0 + $0x48] sm:$0xff]  ;;  %v25_v37 = vld [vmem:[%s734_s0 + $0x40] sm:$0xff] }
   0xd   :  { %128 = vmatprep.subr.mxu0 %v399_v0  ;;  %368 = vmatprep.subr.mxu1 %v399_v0  ;;  %v42_v36 = vld [vmem:[%s734_s0 + $0xc8] sm:$0xff]  ;;  %v41_v38 = vld [vmem:[%s734_s0 + $0xc0] sm:$0xff]  ;;  %v28_v39 = vld [vmem:[%s734_s0 + $0x58] sm:$0xff] }
   0xe   :  { %129 = vmatpush1.msra.mxu0 %v58_v7  ;;  %386 = vmatpush1.msra.mxu1 %v58_v7  ;;  %v44_v40 = vld [vmem:[%s734_s0 + $0xd8] sm:$0xff]  ;;  %v27_v41 = vld [vmem:[%s734_s0 + $0x50] sm:$0xff]  ;;  %v30_v43 = vld [vmem:[%s734_s0 + $0x68] sm:$0xff] }
   0xf   :  { %130 = vmatprep.subr.mxu0 %v399_v0  ;;  %369 = vmatprep.subr.mxu1 %v399_v0  ;;  %v43_v42 = vld [vmem:[%s734_s0 + $0xd0] sm:$0xff]  ;;  %v46_v44 = vld [vmem:[%s734_s0 + $0xe8] sm:$0xff]  ;;  %v29_v45 = vld [vmem:[%s734_s0 + $0x60] sm:$0xff] }
  0x10   :  { %131 = vmatpush1.msra.mxu0 %v57_v8  ;;  %387 = vmatpush1.msra.mxu1 %v57_v8  ;;  %v45_v46 = vld [vmem:[%s734_s0 + $0xe0] sm:$0xff]  ;;  %v32_v47 = vld [vmem:[%s734_s0 + $0x78] sm:$0xff]  ;;  %v31_v49 = vld [vmem:[%s734_s0 + $0x70] sm:$0xff] }
  0x11   :  { %132 = vmatprep.subr.mxu0 %v399_v0  ;;  %370 = vmatprep.subr.mxu1 %v399_v0  ;;  %v48_v48 = vld [vmem:[%s734_s0 + $0xf8] sm:$0xff]  ;;  %v47_v50 = vld [vmem:[%s734_s0 + $0xf0] sm:$0xff]  ;;  %v630_v52 = vld [vmem:[%s735_s2] ss:$0 sm:$0xff] }
  0x12   :  { %133 = vmatpush1.msra.mxu0 %v56_v9  ;;  %388 = vmatpush1.msra.mxu1 %v56_v9  ;;  %v635_v56 = vld [vmem:[%s736_s3] ss:$0 sm:$0xff] }
  0x13   :  { %134 = vmatprep.subr.mxu0 %v399_v0  ;;  %371 = vmatprep.subr.mxu1 %v399_v0 }
  0x14   :  { %135 = vmatpush1.msra.mxu0 %v55_v10  ;;  %389 = vmatpush1.msra.mxu1 %v55_v10 }
  0x15   :  { %136 = vmatprep.subr.mxu0 %v399_v0  ;;  %372 = vmatprep.subr.mxu1 %v399_v0 }
  0x16   :  { %137 = vmatpush1.msra.mxu0 %v54_v11  ;;  %390 = vmatpush1.msra.mxu1 %v54_v11 }
  0x17   :  { %138 = vmatprep.subr.mxu0 %v399_v0  ;;  %373 = vmatprep.subr.mxu1 %v399_v0 }
  0x18   :  { %139 = vmatpush1.msra.mxu0 %v53_v12  ;;  %391 = vmatpush1.msra.mxu1 %v53_v12 }
  0x19   :  { %140 = vmatprep.subr.mxu0 %v399_v0  ;;  %374 = vmatprep.subr.mxu1 %v399_v0 }
  0x1a   :  { %141 = vmatpush1.msra.mxu0 %v52_v13  ;;  %392 = vmatpush1.msra.mxu1 %v52_v13 }
  0x1b   :  { %142 = vmatprep.subr.mxu0 %v399_v0  ;;  %375 = vmatprep.subr.mxu1 %v399_v0 }
  0x1c   :  { %143 = vmatpush1.msra.mxu0 %v51_v14  ;;  %393 = vmatpush1.msra.mxu1 %v51_v14 }
  0x1d   :  { %144 = vmatprep.subr.mxu0 %v399_v0  ;;  %376 = vmatprep.subr.mxu1 %v399_v0 }
  0x1e   :  { %145 = vmatpush1.msra.mxu0 %v50_v15  ;;  %394 = vmatpush1.msra.mxu1 %v50_v15 }
  0x1f   :  { %146 = vmatprep.subr.mxu0 %v399_v0  ;;  %377 = vmatprep.subr.mxu1 %v399_v0 }
  0x20   :  { %147 = vmatpush1.msra.mxu0 %v49_v16  ;;  %395 = vmatpush1.msra.mxu1 %v49_v16 }
  0x21   :  { %176 = vmatprep.subr.mxu0 %v399_v0  ;;  %378 = vmatprep.subr.mxu1 %v399_v0 }
  0x22   :  { %177 = vmatpush2.msra.mxu0 %v66_v17  ;;  %396 = vmatpush2.msra.mxu1 %v66_v17 }
  0x23   :  { %178 = vmatprep.subr.mxu0 %v399_v0  ;;  %379 = vmatprep.subr.mxu1 %v399_v0 }
  0x24   :  { %179 = vmatpush2.msra.mxu0 %v65_v18  ;;  %397 = vmatpush2.msra.mxu1 %v65_v18 }
  0x25   :  { %344 = vmatprep.mubr.msk.f32.mxu0 %vm67_vm0, %v18_v19  ;;  %352 = vmatprep.mubr.msk.f32.mxu1 %vm67_vm0, %v34_v20 }
  0x26   :  { %181 = vmatmul.mubr.f32.vlgmr.msra.gmra.mxu0 %v17_v21  ;;  %221 = vmatmul.mubr.f32.vlgmr.msra.gmra.mxu1 %v33_v22 }
  0x27   :  { %345 = vmatprep.mubr.msk.f32.mxu0 %vm67_vm0, %v20_v23  ;;  %353 = vmatprep.mubr.msk.f32.mxu1 %vm67_vm0, %v36_v24 }
  0x2a   :  { %186 = vmatmul.mubr.f32.gmra.mxu0 %v19_v25  ;;  %226 = vmatmul.mubr.f32.gmra.mxu1 %v35_v26 }
  0x2b   :  { %346 = vmatprep.mubr.msk.f32.mxu0 %vm67_vm0, %v22_v27  ;;  %354 = vmatprep.mubr.msk.f32.mxu1 %vm67_vm0, %v38_v28 }
  0x2e   :  { %191 = vmatmul.mubr.f32.gmra.mxu0 %v21_v29  ;;  %231 = vmatmul.mubr.f32.gmra.mxu1 %v37_v30 }
  0x2f   :  { %347 = vmatprep.mubr.msk.f32.mxu0 %vm67_vm0, %v24_v31  ;;  %355 = vmatprep.mubr.msk.f32.mxu1 %vm67_vm0, %v40_v32 }
  0x32   :  { %196 = vmatmul.mubr.f32.gmra.mxu0 %v23_v33  ;;  %236 = vmatmul.mubr.f32.gmra.mxu1 %v39_v34 }
  0x33   :  { %348 = vmatprep.mubr.msk.f32.mxu0 %vm67_vm0, %v26_v35  ;;  %356 = vmatprep.mubr.msk.f32.mxu1 %vm67_vm0, %v42_v36 }
  0x36   :  { %201 = vmatmul.mubr.f32.gmra.mxu0 %v25_v37  ;;  %241 = vmatmul.mubr.f32.gmra.mxu1 %v41_v38 }
  0x37   :  { %349 = vmatprep.mubr.msk.f32.mxu0 %vm67_vm0, %v28_v39  ;;  %357 = vmatprep.mubr.msk.f32.mxu1 %vm67_vm0, %v44_v40 }
  0x3a   :  { %206 = vmatmul.mubr.f32.gmra.mxu0 %v27_v41  ;;  %246 = vmatmul.mubr.f32.gmra.mxu1 %v43_v42 }
  0x3b   :  { %350 = vmatprep.mubr.msk.f32.mxu0 %vm67_vm0, %v30_v43  ;;  %358 = vmatprep.mubr.msk.f32.mxu1 %vm67_vm0, %v46_v44 }
  0x3e   :  { %211 = vmatmul.mubr.f32.gmra.mxu0 %v29_v45  ;;  %251 = vmatmul.mubr.f32.gmra.mxu1 %v45_v46 }
  0x3f   :  { %351 = vmatprep.mubr.msk.f32.mxu0 %vm67_vm0, %v32_v47  ;;  %359 = vmatprep.mubr.msk.f32.mxu1 %vm67_vm0, %v48_v48 }
  0x42   :  { %216 = vmatmul.mubr.f32.gmra.mxu0 %v31_v49  ;;  %256 = vmatmul.mubr.f32.gmra.mxu1 %v47_v50 }
  0xe6   :  { %v182_v51 = vpop.f32.mrf.mxu0  ;;  %v222_v53 = vpop.f32.mrf.mxu1 }
  0xe7   :  { %v261_v54 = vmax.f32 %v182_v51, 0.0  ;;  %v269_v55 = vmax.f32 %v222_v53, 0.0 }
  0xe8   :  { %v184_v57 = vpop.f32.mrf.mxu0  ;;  %v224_v58 = vpop.f32.mrf.mxu1 }
  0xe9   :  { %v284_v59 = vmul.f32 %v630_v52, %v261_v54  ;;  %v292_v60 = vmul.f32 %v630_v52, %v269_v55 }
  0xea   :  { %v187_v61 = vpop.f32.mrf.mxu0  ;;  %v227_v62 = vpop.f32.mrf.mxu1 }
  0xeb   :  { %v307_v63 = vadd.f32 %v635_v56, %v284_v59  ;;  %v315_v0 = vadd.f32 %v635_v56, %v292_v60  ;;  %v262_v1 = vmax.f32 %v187_v61, 0.0  ;;  %v270_v2 = vmax.f32 %v227_v62, 0.0 }
  0xec   :  { %v189_v3 = vpop.f32.mrf.mxu0  ;;  %v229_v4 = vpop.f32.mrf.mxu1 }
  0xed   :  { %324 = vst.msk [vmem:[%s737_s4] sm:$0xff] %vm323_vm1, %v307_v63  ;;  %332 = vst.msk [vmem:[%s737_s4 + $0x40] sm:$0xff] %vm323_vm1, %v315_v0  ;;  %v285_v5 = vmul.f32 %v630_v52, %v262_v1  ;;  %v293_v6 = vmul.f32 %v630_v52, %v270_v2 }
  0xee   :  { %v192_v7 = vpop.f32.mrf.mxu0  ;;  %v232_v8 = vpop.f32.mrf.mxu1 }
  0xef   :  { %v308_v9 = vadd.f32 %v635_v56, %v285_v5  ;;  %v316_v10 = vadd.f32 %v635_v56, %v293_v6  ;;  %v263_v11 = vmax.f32 %v192_v7, 0.0  ;;  %v271_v12 = vmax.f32 %v232_v8, 0.0 }
  0xf0   :  { %v194_v13 = vpop.f32.mrf.mxu0  ;;  %v234_v14 = vpop.f32.mrf.mxu1 }
  0xf1   :  { %325 = vst.msk [vmem:[%s737_s4 + $0x8] sm:$0xff] %vm323_vm1, %v308_v9  ;;  %333 = vst.msk [vmem:[%s737_s4 + $0x48] sm:$0xff] %vm323_vm1, %v316_v10  ;;  %v286_v15 = vmul.f32 %v630_v52, %v263_v11  ;;  %v294_v16 = vmul.f32 %v630_v52, %v271_v12 }
  0xf2   :  { %v197_v17 = vpop.f32.mrf.mxu0  ;;  %v237_v18 = vpop.f32.mrf.mxu1 }
  0xf3   :  { %v309_v19 = vadd.f32 %v635_v56, %v286_v15  ;;  %v317_v20 = vadd.f32 %v635_v56, %v294_v16  ;;  %v264_v21 = vmax.f32 %v197_v17, 0.0  ;;  %v272_v22 = vmax.f32 %v237_v18, 0.0 }
  0xf4   :  { %v199_v23 = vpop.f32.mrf.mxu0  ;;  %v239_v24 = vpop.f32.mrf.mxu1 }
  0xf5   :  { %326 = vst.msk [vmem:[%s737_s4 + $0x10] sm:$0xff] %vm323_vm1, %v309_v19  ;;  %334 = vst.msk [vmem:[%s737_s4 + $0x50] sm:$0xff] %vm323_vm1, %v317_v20  ;;  %v287_v25 = vmul.f32 %v630_v52, %v264_v21  ;;  %v295_v26 = vmul.f32 %v630_v52, %v272_v22 }
  0xf6   :  { %v202_v27 = vpop.f32.mrf.mxu0  ;;  %v242_v28 = vpop.f32.mrf.mxu1 }
  0xf7   :  { %v310_v29 = vadd.f32 %v635_v56, %v287_v25  ;;  %v318_v30 = vadd.f32 %v635_v56, %v295_v26  ;;  %v265_v31 = vmax.f32 %v202_v27, 0.0  ;;  %v273_v32 = vmax.f32 %v242_v28, 0.0 }
  0xf8   :  { %v204_v33 = vpop.f32.mrf.mxu0  ;;  %v244_v34 = vpop.f32.mrf.mxu1 }
  0xf9   :  { %327 = vst.msk [vmem:[%s737_s4 + $0x18] sm:$0xff] %vm323_vm1, %v310_v29  ;;  %335 = vst.msk [vmem:[%s737_s4 + $0x58] sm:$0xff] %vm323_vm1, %v318_v30  ;;  %v288_v35 = vmul.f32 %v630_v52, %v265_v31  ;;  %v296_v36 = vmul.f32 %v630_v52, %v273_v32 }
  0xfa   :  { %v207_v37 = vpop.f32.mrf.mxu0  ;;  %v247_v38 = vpop.f32.mrf.mxu1 }
  0xfb   :  { %v311_v39 = vadd.f32 %v635_v56, %v288_v35  ;;  %v319_v40 = vadd.f32 %v635_v56, %v296_v36  ;;  %v266_v41 = vmax.f32 %v207_v37, 0.0  ;;  %v274_v42 = vmax.f32 %v247_v38, 0.0 }
  0xfc   :  { %v209_v43 = vpop.f32.mrf.mxu0  ;;  %v249_v44 = vpop.f32.mrf.mxu1 }
  0xfd   :  { %328 = vst.msk [vmem:[%s737_s4 + $0x20] sm:$0xff] %vm323_vm1, %v311_v39  ;;  %336 = vst.msk [vmem:[%s737_s4 + $0x60] sm:$0xff] %vm323_vm1, %v319_v40  ;;  %v289_v45 = vmul.f32 %v630_v52, %v266_v41  ;;  %v297_v46 = vmul.f32 %v630_v52, %v274_v42 }
  0xfe   :  { %v212_v47 = vpop.f32.mrf.mxu0  ;;  %v252_v48 = vpop.f32.mrf.mxu1 }
  0xff   :  { %v312_v49 = vadd.f32 %v635_v56, %v289_v45  ;;  %v320_v50 = vadd.f32 %v635_v56, %v297_v46  ;;  %v267_v51 = vmax.f32 %v212_v47, 0.0  ;;  %v275_v53 = vmax.f32 %v252_v48, 0.0 }
 0x100   :  { %v214_v54 = vpop.f32.mrf.mxu0  ;;  %v254_v55 = vpop.f32.mrf.mxu1 }
 0x101   :  { %329 = vst.msk [vmem:[%s737_s4 + $0x28] sm:$0xff] %vm323_vm1, %v312_v49  ;;  %337 = vst.msk [vmem:[%s737_s4 + $0x68] sm:$0xff] %vm323_vm1, %v320_v50  ;;  %v290_v57 = vmul.f32 %v630_v52, %v267_v51  ;;  %v298_v58 = vmul.f32 %v630_v52, %v275_v53 }
 0x102   :  { %v217_v59 = vpop.f32.mrf.mxu0  ;;  %v257_v60 = vpop.f32.mrf.mxu1 }
 0x103   :  { %v313_v61 = vadd.f32 %v635_v56, %v290_v57  ;;  %v321_v62 = vadd.f32 %v635_v56, %v298_v58  ;;  %v268_v63 = vmax.f32 %v217_v59, 0.0  ;;  %v276_v0 = vmax.f32 %v257_v60, 0.0 }
 0x104   :  { %v219_v1 = vpop.f32.mrf.mxu0  ;;  %v259_v2 = vpop.f32.mrf.mxu1 }
 0x105   :  { %330 = vst.msk [vmem:[%s737_s4 + $0x30] sm:$0xff] %vm323_vm1, %v313_v61  ;;  %338 = vst.msk [vmem:[%s737_s4 + $0x70] sm:$0xff] %vm323_vm1, %v321_v62  ;;  %v291_v3 = vmul.f32 %v630_v52, %v268_v63  ;;  %v299_v4 = vmul.f32 %v630_v52, %v276_v0 }
 0x107   :  { %v314_v5 = vadd.f32 %v635_v56, %v291_v3  ;;  %v322_v6 = vadd.f32 %v635_v56, %v299_v4 }
 0x109   :  { %331 = vst.msk [vmem:[%s737_s4 + $0x38] sm:$0xff] %vm323_vm1, %v314_v5  ;;  %339 = vst.msk [vmem:[%s737_s4 + $0x78] sm:$0xff] %vm323_vm1, %v322_v6 }

// kernel: localizer_forward.7
= control target key start
LH: loop header
LB: loop body
LE: loop exit
PB: predicated region body
PF: predicated region fallthrough
CT: control target
= control target key end

     0   :  { %vm101_vm0 = vcmask 261120   ;;  %s1127_s1 = inlined_call_operand.vmem [shape: f32[288,32], index: 1, kind: input, shape index: {}]   ;;  %s1128_s0 = inlined_call_operand.vmem [shape: f32[128,288], index: 0, kind: input, shape index: {}]   ;;  %s1129_s2 = inlined_call_operand.vmem [shape: f32[1,32], index: 2, kind: input, shape index: {}]   ;;  %s1130_s3 = inlined_call_operand.vmem [shape: f32[1,32], index: 3, kind: input, shape index: {}]   ;;  %s1131_s4 = inlined_call_operand.vmem [shape: f32[128,32], index: 4, kind: output, shape index: {}]  }
   0x1   :  { %v96_v0 = vld [vmem:[%s1127_s1 + $0xf8] sm:$0xff]  ;;  %v95_v2 = vld [vmem:[%s1127_s1 + $0xf0] sm:$0xff]  ;;  %v94_v4 = vld [vmem:[%s1127_s1 + $0xe8] sm:$0xff] }
   0x2   :  { %v80_v1 = vld [vmem:[%s1127_s1 + $0x78] sm:$0xff]  ;;  %540 = vmatprep.subr.mxu0 %v96_v0  ;;  %672 = vmatprep.subr.mxu1 %v96_v0  ;;  %v79_v3 = vld [vmem:[%s1127_s1 + $0x70] sm:$0xff]  ;;  %v78_v5 = vld [vmem:[%s1127_s1 + $0x68] sm:$0xff] }
   0x3   :  { %541 = vmatpush3.msra.mxu0 %v80_v1  ;;  %688 = vmatpush3.msra.mxu1 %v80_v1  ;;  %v93_v6 = vld [vmem:[%s1127_s1 + $0xe0] sm:$0xff]  ;;  %v92_v8 = vld [vmem:[%s1127_s1 + $0xd8] sm:$0xff]  ;;  %v91_v10 = vld [vmem:[%s1127_s1 + $0xd0] sm:$0xff] }
   0x4   :  { %542 = vmatprep.subr.mxu0 %v95_v2  ;;  %673 = vmatprep.subr.mxu1 %v95_v2  ;;  %v77_v7 = vld [vmem:[%s1127_s1 + $0x60] sm:$0xff]  ;;  %v76_v9 = vld [vmem:[%s1127_s1 + $0x58] sm:$0xff]  ;;  %v75_v11 = vld [vmem:[%s1127_s1 + $0x50] sm:$0xff] }
   0x5   :  { %543 = vmatpush3.msra.mxu0 %v79_v3  ;;  %689 = vmatpush3.msra.mxu1 %v79_v3  ;;  %v90_v12 = vld [vmem:[%s1127_s1 + $0xc8] sm:$0xff]  ;;  %v89_v14 = vld [vmem:[%s1127_s1 + $0xc0] sm:$0xff]  ;;  %v88_v16 = vld [vmem:[%s1127_s1 + $0xb8] sm:$0xff] }
   0x6   :  { %544 = vmatprep.subr.mxu0 %v94_v4  ;;  %674 = vmatprep.subr.mxu1 %v94_v4  ;;  %v74_v13 = vld [vmem:[%s1127_s1 + $0x48] sm:$0xff]  ;;  %v73_v15 = vld [vmem:[%s1127_s1 + $0x40] sm:$0xff]  ;;  %v72_v17 = vld [vmem:[%s1127_s1 + $0x38] sm:$0xff] }
   0x7   :  { %545 = vmatpush3.msra.mxu0 %v78_v5  ;;  %690 = vmatpush3.msra.mxu1 %v78_v5  ;;  %v87_v18 = vld [vmem:[%s1127_s1 + $0xb0] sm:$0xff]  ;;  %v86_v20 = vld [vmem:[%s1127_s1 + $0xa8] sm:$0xff]  ;;  %v85_v22 = vld [vmem:[%s1127_s1 + $0xa0] sm:$0xff] }
   0x8   :  { %546 = vmatprep.subr.mxu0 %v93_v6  ;;  %675 = vmatprep.subr.mxu1 %v93_v6  ;;  %v71_v19 = vld [vmem:[%s1127_s1 + $0x30] sm:$0xff]  ;;  %v70_v21 = vld [vmem:[%s1127_s1 + $0x28] sm:$0xff]  ;;  %v69_v23 = vld [vmem:[%s1127_s1 + $0x20] sm:$0xff] }
   0x9   :  { %547 = vmatpush3.msra.mxu0 %v77_v7  ;;  %691 = vmatpush3.msra.mxu1 %v77_v7  ;;  %v84_v24 = vld [vmem:[%s1127_s1 + $0x98] sm:$0xff]  ;;  %v83_v26 = vld [vmem:[%s1127_s1 + $0x90] sm:$0xff]  ;;  %v82_v28 = vld [vmem:[%s1127_s1 + $0x88] sm:$0xff] }
   0xa   :  { %548 = vmatprep.subr.mxu0 %v92_v8  ;;  %676 = vmatprep.subr.mxu1 %v92_v8  ;;  %v68_v25 = vld [vmem:[%s1127_s1 + $0x18] sm:$0xff]  ;;  %v67_v27 = vld [vmem:[%s1127_s1 + $0x10] sm:$0xff]  ;;  %v66_v29 = vld [vmem:[%s1127_s1 + $0x8] sm:$0xff] }
   0xb   :  { %549 = vmatpush3.msra.mxu0 %v76_v9  ;;  %692 = vmatpush3.msra.mxu1 %v76_v9  ;;  %v81_v30 = vld [vmem:[%s1127_s1 + $0x80] sm:$0xff]  ;;  %v18_v32 = vld [vmem:[%s1128_s0 + $0x8] sm:$0xff]  ;;  %v100_v36 = vld [vmem:[%s1127_s1 + $0x118] sm:$0xff] }
   0xc   :  { %550 = vmatprep.subr.mxu0 %v91_v10  ;;  %677 = vmatprep.subr.mxu1 %v91_v10  ;;  %v65_v31 = vld [vmem:[%s1127_s1] sm:$0xff]  ;;  %v54_v33 = vld [vmem:[%s1128_s0 + $0x128] sm:$0xff]  ;;  %v99_v39 = vld [vmem:[%s1127_s1 + $0x110] sm:$0xff] }
   0xd   :  { %551 = vmatpush3.msra.mxu0 %v75_v11  ;;  %693 = vmatpush3.msra.mxu1 %v75_v11  ;;  %v17_v34 = vld [vmem:[%s1128_s0] sm:$0xff]  ;;  %v20_v40 = vld [vmem:[%s1128_s0 + $0x18] sm:$0xff]  ;;  %v98_v44 = vld [vmem:[%s1127_s1 + $0x108] sm:$0xff] }
   0xe   :  { %552 = vmatprep.subr.mxu0 %v90_v12  ;;  %678 = vmatprep.subr.mxu1 %v90_v12  ;;  %v53_v35 = vld [vmem:[%s1128_s0 + $0x120] sm:$0xff]  ;;  %v56_v41 = vld [vmem:[%s1128_s0 + $0x138] sm:$0xff]  ;;  %v23_v45 = vld [vmem:[%s1128_s0 + $0x30] sm:$0xff] }
   0xf   :  { %553 = vmatpush3.msra.mxu0 %v74_v13  ;;  %694 = vmatpush3.msra.mxu1 %v74_v13  ;;  %v21_v37 = vld [vmem:[%s1128_s0 + $0x20] sm:$0xff]  ;;  %v24_v42 = vld [vmem:[%s1128_s0 + $0x38] sm:$0xff]  ;;  %v59_v46 = vld [vmem:[%s1128_s0 + $0x150] sm:$0xff] }
  0x10   :  { %554 = vmatprep.subr.mxu0 %v89_v14  ;;  %679 = vmatprep.subr.mxu1 %v89_v14  ;;  %v57_v38 = vld [vmem:[%s1128_s0 + $0x140] sm:$0xff]  ;;  %v60_v43 = vld [vmem:[%s1128_s0 + $0x158] sm:$0xff]  ;;  %v27_v47 = vld [vmem:[%s1128_s0 + $0x50] sm:$0xff] }
  0x11   :  { %555 = vmatpush3.msra.mxu0 %v73_v15  ;;  %695 = vmatpush3.msra.mxu1 %v73_v15  ;;  %v63_v48 = vld [vmem:[%s1128_s0 + $0x170] sm:$0xff]  ;;  %v97_v49 = vld [vmem:[%s1127_s1 + $0x100] sm:$0xff]  ;;  %v26_v50 = vld [vmem:[%s1128_s0 + $0x48] sm:$0xff] }
  0x12   :  { %556 = vmatprep.subr.mxu0 %v88_v16  ;;  %680 = vmatprep.subr.mxu1 %v88_v16  ;;  %v62_v51 = vld [vmem:[%s1128_s0 + $0x168] sm:$0xff]  ;;  %v19_v53 = vld [vmem:[%s1128_s0 + $0x10] sm:$0xff]  ;;  %v29_v54 = vld [vmem:[%s1128_s0 + $0x60] sm:$0xff] }
  0x13   :  { %557 = vmatpush3.msra.mxu0 %v72_v17  ;;  %696 = vmatpush3.msra.mxu1 %v72_v17  ;;  %v30_v52 = vld [vmem:[%s1128_s0 + $0x68] sm:$0xff]  ;;  %v33_v56 = vld [vmem:[%s1128_s0 + $0x80] sm:$0xff]  ;;  %v32_v58 = vld [vmem:[%s1128_s0 + $0x78] sm:$0xff] }
  0x14   :  { %558 = vmatprep.subr.mxu0 %v87_v18  ;;  %681 = vmatprep.subr.mxu1 %v87_v18  ;;  %v22_v55 = vld [vmem:[%s1128_s0 + $0x28] sm:$0xff]  ;;  %v25_v57 = vld [vmem:[%s1128_s0 + $0x40] sm:$0xff]  ;;  %v28_v59 = vld [vmem:[%s1128_s0 + $0x58] sm:$0xff] }
  0x15   :  { %559 = vmatpush3.msra.mxu0 %v71_v19  ;;  %697 = vmatpush3.msra.mxu1 %v71_v19  ;;  %v36_v60 = vld [vmem:[%s1128_s0 + $0x98] sm:$0xff]  ;;  %v31_v61 = vld [vmem:[%s1128_s0 + $0x70] sm:$0xff]  ;;  %v34_v63 = vld [vmem:[%s1128_s0 + $0x88] sm:$0xff] }
  0x16   :  { %560 = vmatprep.subr.mxu0 %v86_v20  ;;  %682 = vmatprep.subr.mxu1 %v86_v20  ;;  %v35_v62 = vld [vmem:[%s1128_s0 + $0x90] sm:$0xff]  ;;  %v37_v1 = vld [vmem:[%s1128_s0 + $0xa0] sm:$0xff]  ;;  %v38_v2 = vld [vmem:[%s1128_s0 + $0xa8] sm:$0xff] }
  0x17   :  { %561 = vmatpush3.msra.mxu0 %v70_v21  ;;  %698 = vmatpush3.msra.mxu1 %v70_v21  ;;  %v39_v0 = vld [vmem:[%s1128_s0 + $0xb0] sm:$0xff]  ;;  %v40_v3 = vld [vmem:[%s1128_s0 + $0xb8] sm:$0xff]  ;;  %v42_v4 = vld [vmem:[%s1128_s0 + $0xc8] sm:$0xff] }
  0x18   :  { %562 = vmatprep.subr.mxu0 %v85_v22  ;;  %683 = vmatprep.subr.mxu1 %v85_v22  ;;  %v43_v5 = vld [vmem:[%s1128_s0 + $0xd0] sm:$0xff]  ;;  %v41_v6 = vld [vmem:[%s1128_s0 + $0xc0] sm:$0xff]  ;;  %v46_v7 = vld [vmem:[%s1128_s0 + $0xe8] sm:$0xff] }
  0x19   :  { %563 = vmatpush3.msra.mxu0 %v69_v23  ;;  %699 = vmatpush3.msra.mxu1 %v69_v23  ;;  %v45_v8 = vld [vmem:[%s1128_s0 + $0xe0] sm:$0xff]  ;;  %v44_v10 = vld [vmem:[%s1128_s0 + $0xd8] sm:$0xff]  ;;  %v55_v13 = vld [vmem:[%s1128_s0 + $0x130] sm:$0xff] }
  0x1a   :  { %564 = vmatprep.subr.mxu0 %v84_v24  ;;  %684 = vmatprep.subr.mxu1 %v84_v24  ;;  %v49_v9 = vld [vmem:[%s1128_s0 + $0x100] sm:$0xff]  ;;  %v52_v11 = vld [vmem:[%s1128_s0 + $0x118] sm:$0xff]  ;;  %v47_v14 = vld [vmem:[%s1128_s0 + $0xf0] sm:$0xff] }
  0x1b   :  { %565 = vmatpush3.msra.mxu0 %v68_v25  ;;  %700 = vmatpush3.msra.mxu1 %v68_v25  ;;  %v48_v12 = vld [vmem:[%s1128_s0 + $0xf8] sm:$0xff]  ;;  %v58_v15 = vld [vmem:[%s1128_s0 + $0x148] sm:$0xff]  ;;  %v51_v16 = vld [vmem:[%s1128_s0 + $0x110] sm:$0xff] }
  0x1c   :  { %566 = vmatprep.subr.mxu0 %v83_v26  ;;  %685 = vmatprep.subr.mxu1 %v83_v26  ;;  %v61_v17 = vld [vmem:[%s1128_s0 + $0x160] sm:$0xff]  ;;  %v50_v18 = vld [vmem:[%s1128_s0 + $0x108] sm:$0xff]  ;;  %v64_v19 = vld [vmem:[%s1128_s0 + $0x178] sm:$0xff] }
  0x1d   :  { %567 = vmatpush3.msra.mxu0 %v67_v27  ;;  %701 = vmatpush3.msra.mxu1 %v67_v27 }
  0x1e   :  { %568 = vmatprep.subr.mxu0 %v82_v28  ;;  %686 = vmatprep.subr.mxu1 %v82_v28 }
  0x1f   :  { %569 = vmatpush3.msra.mxu0 %v66_v29  ;;  %702 = vmatpush3.msra.mxu1 %v66_v29 }
  0x20   :  { %570 = vmatprep.subr.mxu0 %v81_v30  ;;  %687 = vmatprep.subr.mxu1 %v81_v30 }
  0x21   :  { %571 = vmatpush3.msra.mxu0 %v65_v31  ;;  %703 = vmatpush3.msra.mxu1 %v65_v31 }
  0x22   :  { %214 = vmatprep.mubr.f32.mxu0 %v18_v32  ;;  %274 = vmatprep.mubr.f32.mxu1 %v54_v33 }
  0x23   :  { %215 = vmatmul.mubr.f32.vlgmr.msra.gmra.mxu0 %v17_v34  ;;  %275 = vmatmul.mubr.f32.vlgmr.msra.gmra.mxu1 %v53_v35 }
  0x24   :  { %640 = vmatprep.subr.mxu1 %v100_v36  ;;  %219 = vmatprep.mubr.f32.mxu0 %v21_v37 }
  0x25   :  { %641 = vmatpush3.msra.mxu1 %v100_v36  ;;  %279 = vmatprep.mubr.f32.mxu1 %v57_v38 }
  0x26   :  { %642 = vmatprep.subr.mxu1 %v99_v39 }
  0x27   :  { %220 = vmatmul.mubr.f32.gmra.mxu0 %v20_v40  ;;  %280 = vmatmul.mubr.f32.gmra.mxu1 %v56_v41  ;;  %v1016_v41 = vld [vmem:[%s1129_s2] ss:$0 sm:$0xff] }
  0x28   :  { %643 = vmatpush3.msra.mxu1 %v99_v39  ;;  %224 = vmatprep.mubr.f32.mxu0 %v24_v42 }
  0x29   :  { %284 = vmatprep.mubr.f32.mxu1 %v60_v43  ;;  %644 = vmatprep.subr.mxu1 %v98_v44 }
  0x2a   :  { %645 = vmatpush3.msra.mxu1 %v98_v44 }
  0x2b   :  { %225 = vmatmul.mubr.f32.gmra.mxu0 %v23_v45  ;;  %285 = vmatmul.mubr.f32.gmra.mxu1 %v59_v46 }
  0x2c   :  { %229 = vmatprep.mubr.f32.mxu0 %v27_v47  ;;  %289 = vmatprep.mubr.f32.mxu1 %v63_v48  ;;  %v1021_v47 = vld [vmem:[%s1130_s3] ss:$0 sm:$0xff] }
  0x2d   :  { %646 = vmatprep.subr.mxu1 %v97_v49 }
  0x2e   :  { %647 = vmatpush3.msra.mxu1 %v97_v49 }
  0x2f   :  { %230 = vmatmul.mubr.f32.gmra.mxu0 %v26_v50  ;;  %290 = vmatmul.mubr.f32.gmra.mxu1 %v62_v51 }
  0x30   :  { %234 = vmatprep.mubr.f32.mxu0 %v30_v52  ;;  %648 = vmatprep.mubr.msk.f32.mxu1 %vm101_vm0, %v19_v53 }
  0x33   :  { %235 = vmatmul.mubr.f32.gmra.mxu0 %v29_v54  ;;  %649 = vmatmul.mubr.msk.f32.vlgmr.msra.gmra.mxu1 %vm101_vm0, %v22_v55 }
  0x34   :  { %239 = vmatprep.mubr.f32.mxu0 %v33_v56  ;;  %651 = vmatprep.mubr.msk.f32.mxu1 %vm101_vm0, %v25_v57 }
  0x37   :  { %240 = vmatmul.mubr.f32.gmra.mxu0 %v32_v58  ;;  %652 = vmatmul.mubr.msk.f32.gmra.mxu1 %vm101_vm0, %v28_v59 }
  0x38   :  { %244 = vmatprep.mubr.f32.mxu0 %v36_v60  ;;  %654 = vmatprep.mubr.msk.f32.mxu1 %vm101_vm0, %v31_v61 }
  0x3b   :  { %245 = vmatmul.mubr.f32.gmra.mxu0 %v35_v62  ;;  %655 = vmatmul.mubr.msk.f32.gmra.mxu1 %vm101_vm0, %v34_v63 }
  0x3c   :  { %249 = vmatprep.mubr.f32.mxu0 %v39_v0  ;;  %657 = vmatprep.mubr.msk.f32.mxu1 %vm101_vm0, %v37_v1 }
  0x3f   :  { %250 = vmatmul.mubr.f32.gmra.mxu0 %v38_v2  ;;  %658 = vmatmul.mubr.msk.f32.gmra.mxu1 %vm101_vm0, %v40_v3 }
  0x40   :  { %254 = vmatprep.mubr.f32.mxu0 %v42_v4  ;;  %660 = vmatprep.mubr.msk.f32.mxu1 %vm101_vm0, %v43_v5 }
  0x43   :  { %255 = vmatmul.mubr.f32.gmra.mxu0 %v41_v6  ;;  %661 = vmatmul.mubr.msk.f32.gmra.mxu1 %vm101_vm0, %v46_v7 }
  0x44   :  { %259 = vmatprep.mubr.f32.mxu0 %v45_v8  ;;  %663 = vmatprep.mubr.msk.f32.mxu1 %vm101_vm0, %v49_v9 }
  0x47   :  { %260 = vmatmul.mubr.f32.gmra.mxu0 %v44_v10  ;;  %664 = vmatmul.mubr.msk.f32.gmra.mxu1 %vm101_vm0, %v52_v11 }
  0x48   :  { %264 = vmatprep.mubr.f32.mxu0 %v48_v12  ;;  %666 = vmatprep.mubr.msk.f32.mxu1 %vm101_vm0, %v55_v13 }
  0x4b   :  { %265 = vmatmul.mubr.f32.gmra.mxu0 %v47_v14  ;;  %667 = vmatmul.mubr.msk.f32.gmra.mxu1 %vm101_vm0, %v58_v15 }
  0x4c   :  { %269 = vmatprep.mubr.f32.mxu0 %v51_v16  ;;  %669 = vmatprep.mubr.msk.f32.mxu1 %vm101_vm0, %v61_v17 }
  0x4f   :  { %270 = vmatmul.mubr.f32.gmra.mxu0 %v50_v18  ;;  %670 = vmatmul.mubr.msk.f32.gmra.mxu1 %vm101_vm0, %v64_v19 }
  0xe3   :  { %v572_v20 = vpop.f32.mrf.mxu0  ;;  %v997_v21 = vpop.f32.mrf.mxu1 }
  0xe5   :  { %v573_v22 = vpop.f32.mrf.mxu0  ;;  %v999_v23 = vpop.f32.mrf.mxu1 }
  0xe6   :  { %v574_v39 = vadd.f32 %v573_v22, %v572_v20 }
  0xe7   :  { %v575_v24 = vpop.f32.mrf.mxu0  ;;  %v1001_v25 = vpop.f32.mrf.mxu1 }
  0xe9   :  { %v576_v26 = vpop.f32.mrf.mxu0  ;;  %v1003_v27 = vpop.f32.mrf.mxu1 }
  0xea   :  { %v577_v36 = vadd.f32 %v576_v26, %v575_v24 }
  0xeb   :  { %v578_v28 = vpop.f32.mrf.mxu0  ;;  %v1005_v29 = vpop.f32.mrf.mxu1 }
  0xed   :  { %v579_v30 = vpop.f32.mrf.mxu0  ;;  %v1007_v31 = vpop.f32.mrf.mxu1 }
  0xee   :  { %v580_v53 = vadd.f32 %v579_v30, %v578_v28 }
  0xef   :  { %v581_v32 = vpop.f32.mrf.mxu0  ;;  %v1009_v33 = vpop.f32.mrf.mxu1 }
  0xf1   :  { %v582_v34 = vpop.f32.mrf.mxu0  ;;  %v1011_v35 = vpop.f32.mrf.mxu1 }
  0xf2   :  { %v583_v44 = vadd.f32 %v582_v34, %v581_v32 }
  0xf3   :  { %v584_v37 = vpop.f32.mrf.mxu0  ;;  %v650_v38 = vpop.f32.mrf.mxu1 }
  0xf4   :  { %v367_v40 = vadd.f32 %v650_v38, %v577_v36 }
  0xf5   :  { %v585_v42 = vpop.f32.mrf.mxu0  ;;  %v361_v43 = vpop.f32.mrf.mxu1 }
  0xf6   :  { %v441_v45 = vmax.f32 %v367_v40, 0.0  ;;  %v362_v46 = vadd.f32 %v574_v39, %v361_v43  ;;  %v586_v63 = vadd.f32 %v585_v42, %v584_v37 }
  0xf7   :  { %v587_v48 = vpop.f32.mrf.mxu0  ;;  %v653_v49 = vpop.f32.mrf.mxu1 }
  0xf8   :  { %v464_v50 = vmul.f32 %v1016_v41, %v441_v45  ;;  %v440_v51 = vmax.f32 %v362_v46, 0.0  ;;  %v377_v52 = vadd.f32 %v653_v49, %v583_v44  ;;  %v613_v49 = vadd.f32 %v1003_v27, %v1001_v25 }
  0xf9   :  { %v588_v54 = vpop.f32.mrf.mxu0  ;;  %v371_v55 = vpop.f32.mrf.mxu1  ;;  %v610_v27 = vadd.f32 %v999_v23, %v997_v21 }
  0xfa   :  { %v487_v56 = vadd.f32 %v1021_v47, %v464_v50  ;;  %v463_v57 = vmul.f32 %v1016_v41, %v440_v51  ;;  %v443_v58 = vmax.f32 %v377_v52, 0.0  ;;  %v589_v59 = vadd.f32 %v588_v54, %v587_v48 }
  0xfb   :  { %v372_v60 = vadd.f32 %v580_v53, %v371_v55  ;;  %v590_v61 = vpop.f32.mrf.mxu0  ;;  %v656_v62 = vpop.f32.mrf.mxu1 }
  0xfc   :  { %503 = vst.msk [vmem:[%s1131_s4 + $0x8] sm:$0xff] %vm101_vm0, %v487_v56  ;;  %v486_v0 = vadd.f32 %v1021_v47, %v463_v57  ;;  %v466_v1 = vmul.f32 %v1016_v41, %v443_v58  ;;  %v387_v2 = vadd.f32 %v656_v62, %v589_v59  ;;  %v619_v57 = vadd.f32 %v1011_v35, %v1009_v33 }
  0xfd   :  { %v442_v3 = vmax.f32 %v372_v60, 0.0  ;;  %v591_v4 = vpop.f32.mrf.mxu0  ;;  %v381_v5 = vpop.f32.mrf.mxu1 }
  0xfe   :  { %502 = vst.msk [vmem:[%s1131_s4] sm:$0xff] %vm101_vm0, %v486_v0  ;;  %v489_v6 = vadd.f32 %v1021_v47, %v466_v1  ;;  %v445_v7 = vmax.f32 %v387_v2, 0.0  ;;  %v382_v8 = vadd.f32 %v586_v63, %v381_v5  ;;  %v592_v13 = vadd.f32 %v591_v4, %v590_v61 }
  0xff   :  { %v465_v9 = vmul.f32 %v1016_v41, %v442_v3  ;;  %v593_v10 = vpop.f32.mrf.mxu0  ;;  %v659_v11 = vpop.f32.mrf.mxu1  ;;  %v616_v3 = vadd.f32 %v1007_v31, %v1005_v29 }
 0x100   :  { %505 = vst.msk [vmem:[%s1131_s4 + $0x18] sm:$0xff] %vm101_vm0, %v489_v6  ;;  %v468_v12 = vmul.f32 %v1016_v41, %v445_v7  ;;  %v444_v14 = vmax.f32 %v382_v8, 0.0 }
 0x101   :  { %v488_v15 = vadd.f32 %v1021_v47, %v465_v9  ;;  %v594_v16 = vpop.f32.mrf.mxu0  ;;  %v391_v17 = vpop.f32.mrf.mxu1 }
 0x102   :  { %v491_v18 = vadd.f32 %v1021_v47, %v468_v12  ;;  %v467_v19 = vmul.f32 %v1016_v41, %v444_v14  ;;  %v595_v20 = vadd.f32 %v594_v16, %v593_v10  ;;  %v392_v22 = vadd.f32 %v592_v13, %v391_v17 }
 0x103   :  { %504 = vst.msk [vmem:[%s1131_s4 + $0x10] sm:$0xff] %vm101_vm0, %v488_v15  ;;  %v596_v24 = vpop.f32.mrf.mxu0  ;;  %v662_v26 = vpop.f32.mrf.mxu1 }
 0x104   :  { %507 = vst.msk [vmem:[%s1131_s4 + $0x28] sm:$0xff] %vm101_vm0, %v491_v18  ;;  %v490_v28 = vadd.f32 %v1021_v47, %v467_v19  ;;  %v397_v30 = vadd.f32 %v659_v11, %v595_v20  ;;  %v446_v32 = vmax.f32 %v392_v22, 0.0 }
 0x105   :  { %v597_v34 = vpop.f32.mrf.mxu0  ;;  %v401_v36 = vpop.f32.mrf.mxu1 }
 0x106   :  { %506 = vst.msk [vmem:[%s1131_s4 + $0x20] sm:$0xff] %vm101_vm0, %v490_v28  ;;  %v447_v37 = vmax.f32 %v397_v30, 0.0  ;;  %v469_v38 = vmul.f32 %v1016_v41, %v446_v32  ;;  %v598_v39 = vadd.f32 %v597_v34, %v596_v24 }
 0x107   :  { %v599_v40 = vpop.f32.mrf.mxu0  ;;  %v665_v42 = vpop.f32.mrf.mxu1 }
 0x108   :  { %v470_v43 = vmul.f32 %v1016_v41, %v447_v37  ;;  %v492_v44 = vadd.f32 %v1021_v47, %v469_v38  ;;  %v402_v45 = vadd.f32 %v598_v39, %v401_v36 }
 0x109   :  { %v600_v46 = vpop.f32.mrf.mxu0  ;;  %v411_v48 = vpop.f32.mrf.mxu1 }
 0x10a   :  { %v493_v50 = vadd.f32 %v1021_v47, %v470_v43  ;;  %508 = vst.msk [vmem:[%s1131_s4 + $0x30] sm:$0xff] %vm101_vm0, %v492_v44  ;;  %v448_v51 = vmax.f32 %v402_v45, 0.0  ;;  %v601_v52 = vadd.f32 %v600_v46, %v599_v40 }
 0x10b   :  { %v602_v53 = vpop.f32.mrf.mxu0  ;;  %v668_v54 = vpop.f32.mrf.mxu1 }
 0x10c   :  { %509 = vst.msk [vmem:[%s1131_s4 + $0x38] sm:$0xff] %vm101_vm0, %v493_v50  ;;  %v471_v55 = vmul.f32 %v1016_v41, %v448_v51  ;;  %v407_v56 = vadd.f32 %v662_v26, %v601_v52  ;;  %v427_v25 = vadd.f32 %v668_v54, %v613_v49 }
 0x10d   :  { %v603_v58 = vpop.f32.mrf.mxu0  ;;  %v421_v59 = vpop.f32.mrf.mxu1 }
 0x10e   :  { %v494_v60 = vadd.f32 %v1021_v47, %v471_v55  ;;  %v449_v61 = vmax.f32 %v407_v56, 0.0  ;;  %v453_v62 = vmax.f32 %v427_v25, 0.0  ;;  %v604_v63 = vadd.f32 %v603_v58, %v602_v53 }
 0x10f   :  { %v422_v0 = vadd.f32 %v610_v27, %v421_v59  ;;  %v605_v1 = vpop.f32.mrf.mxu0  ;;  %v671_v2 = vpop.f32.mrf.mxu1 }
 0x110   :  { %510 = vst.msk [vmem:[%s1131_s4 + $0x40] sm:$0xff] %vm101_vm0, %v494_v60  ;;  %v472_v21 = vmul.f32 %v1016_v41, %v449_v61  ;;  %v476_v23 = vmul.f32 %v1016_v41, %v453_v62  ;;  %v412_v33 = vadd.f32 %v604_v63, %v411_v48  ;;  %v437_v35 = vadd.f32 %v671_v2, %v619_v57 }
 0x111   :  { %v452_v4 = vmax.f32 %v422_v0, 0.0  ;;  %v606_v5 = vpop.f32.mrf.mxu0  ;;  %v431_v6 = vpop.f32.mrf.mxu1 }
 0x112   :  { %v495_v7 = vadd.f32 %v1021_v47, %v472_v21  ;;  %v499_v8 = vadd.f32 %v1021_v47, %v476_v23  ;;  %v450_v9 = vmax.f32 %v412_v33, 0.0  ;;  %v455_v10 = vmax.f32 %v437_v35, 0.0 }
 0x113   :  { %v475_v11 = vmul.f32 %v1016_v41, %v452_v4  ;;  %v607_v12 = vadd.f32 %v606_v5, %v605_v1  ;;  %v432_v13 = vadd.f32 %v616_v3, %v431_v6 }
 0x114   :  { %511 = vst.msk [vmem:[%s1131_s4 + $0x48] sm:$0xff] %vm101_vm0, %v495_v7  ;;  %515 = vst.msk [vmem:[%s1131_s4 + $0x68] sm:$0xff] %vm101_vm0, %v499_v8  ;;  %v473_v29 = vmul.f32 %v1016_v41, %v450_v9  ;;  %v478_v31 = vmul.f32 %v1016_v41, %v455_v10 }
 0x115   :  { %v498_v14 = vadd.f32 %v1021_v47, %v475_v11  ;;  %v417_v15 = vadd.f32 %v665_v42, %v607_v12  ;;  %v454_v16 = vmax.f32 %v432_v13, 0.0 }
 0x116   :  { %v496_v17 = vadd.f32 %v1021_v47, %v473_v29  ;;  %v501_v18 = vadd.f32 %v1021_v47, %v478_v31 }
 0x117   :  { %514 = vst.msk [vmem:[%s1131_s4 + $0x60] sm:$0xff] %vm101_vm0, %v498_v14  ;;  %v451_v19 = vmax.f32 %v417_v15, 0.0  ;;  %v477_v20 = vmul.f32 %v1016_v41, %v454_v16 }
 0x118   :  { %512 = vst.msk [vmem:[%s1131_s4 + $0x50] sm:$0xff] %vm101_vm0, %v496_v17  ;;  %517 = vst.msk [vmem:[%s1131_s4 + $0x78] sm:$0xff] %vm101_vm0, %v501_v18 }
 0x119   :  { %v474_v22 = vmul.f32 %v1016_v41, %v451_v19  ;;  %v500_v24 = vadd.f32 %v1021_v47, %v477_v20 }
 0x11b   :  { %v497_v26 = vadd.f32 %v1021_v47, %v474_v22  ;;  %516 = vst.msk [vmem:[%s1131_s4 + $0x70] sm:$0xff] %vm101_vm0, %v500_v24 }
 0x11d   :  { %513 = vst.msk [vmem:[%s1131_s4 + $0x58] sm:$0xff] %vm101_vm0, %v497_v26 }

// kernel: localizer_forward.8
= control target key start
LH: loop header
LB: loop body
LE: loop exit
PB: predicated region body
PF: predicated region fallthrough
CT: control target
= control target key end

     0   :  { %v1666_v30 = vmov 1983009808   ;;  %v310_v32 = vlaneseq  ;;  %vm1055_vm0 = vcmask 1040384   ;;  %vm1048_vm1 = vcmask 72704   ;;  %s2594_s1 = inlined_call_operand.vmem [shape: f32[2048,32], index: 1, kind: input, shape index: {}]   ;;  %s2595_s0 = inlined_call_operand.vmem [shape: f32[2,2048], index: 0, kind: input, shape index: {}]   ;;  %s2596_s3 = inlined_call_operand.vmem [shape: f32[32,32], index: 3, kind: input, shape index: {}]   ;;  %s2597_s6 = inlined_call_operand.vmem [shape: f32[9,32], index: 6, kind: input, shape index: {}]   ;;  %s2598_s5 = inlined_call_operand.vmem [shape: f32[16,9], index: 5, kind: input, shape index: {}]   ;;  %s2599_s2 = inlined_call_operand.vmem [shape: f32[1,32], index: 2, kind: input, shape index: {}]   ;;  %s2600_s8 = inlined_call_operand.vmem [shape: f32[32,97], index: 8, kind: input, shape index: {}]   ;;  %s2601_s7 = inlined_call_operand.vmem [shape: f32[1,32], index: 7, kind: input, shape index: {}]   ;;  %s2602_s4 = inlined_call_operand.vmem [shape: f32[1,32], index: 4, kind: input, shape index: {}]   ;;  %s2603_s9 = inlined_call_operand.vmem [shape: f32[1,97], index: 9, kind: input, shape index: {}]   ;;  %s2604_s10 = inlined_call_operand.vmem [shape: f32[16,97], index: 10, kind: output, shape index: {}]  }
   0x1   :  { %v70_v0 = vld [vmem:[%s2594_s1 + $0xf8] sm:$0xff]  ;;  %v69_v4 = vld [vmem:[%s2594_s1 + $0xf0] sm:$0xff]  ;;  %v68_v8 = vld [vmem:[%s2594_s1 + $0xe8] sm:$0xff]  ;;  %v308_v31 = vunpack.c.l.s4 %v1666_v30  ;;  %vm1668_vm2 = vmmov 0   ;;  %vm962_vm3 = vcmask 261120   ;;  %vm1225_vm4 = vcmask 793600  }
   0x2   :  { %v102_v1 = vld [vmem:[%s2594_s1 + $0x1f8] sm:$0xff]  ;;  %1320 = vmatprep.subr.mxu0 %v70_v0  ;;  %v101_v5 = vld [vmem:[%s2594_s1 + $0x1f0] sm:$0xff]  ;;  %v100_v9 = vld [vmem:[%s2594_s1 + $0x1e8] sm:$0xff]  ;;  %v1838_v42 = vshrl.u32 %v310_v32, 7 }
   0x3   :  { %v54_v2 = vld [vmem:[%s2594_s1 + $0x78] sm:$0xff]  ;;  %1355 = vmatprep.subr.mxu1 %v102_v1  ;;  %v53_v6 = vld [vmem:[%s2594_s1 + $0x70] sm:$0xff]  ;;  %v52_v10 = vld [vmem:[%s2594_s1 + $0x68] sm:$0xff]  ;;  %v309_v41 = vunpack.c.0.s8 %v308_v31 }
   0x4   :  { %v86_v3 = vld [vmem:[%s2594_s1 + $0x178] sm:$0xff]  ;;  %1321 = vmatpush3.msra.mxu0 %v54_v2  ;;  %v85_v7 = vld [vmem:[%s2594_s1 + $0x170] sm:$0xff]  ;;  %v84_v11 = vld [vmem:[%s2594_s1 + $0x168] sm:$0xff] }
   0x5   :  { %1356 = vmatpush3.msra.mxu1 %v86_v3  ;;  %1322 = vmatprep.subr.mxu0 %v69_v4  ;;  %v67_v12 = vld [vmem:[%s2594_s1 + $0xe0] sm:$0xff]  ;;  %v66_v16 = vld [vmem:[%s2594_s1 + $0xd8] sm:$0xff]  ;;  %v65_v20 = vld [vmem:[%s2594_s1 + $0xd0] sm:$0xff]  ;;  %v1865_v51 = vsub.s32 %v309_v41, %v1838_v42 }
   0x6   :  { %1357 = vmatprep.subr.mxu1 %v101_v5  ;;  %1323 = vmatpush3.msra.mxu0 %v53_v6  ;;  %v99_v13 = vld [vmem:[%s2594_s1 + $0x1e0] sm:$0xff]  ;;  %v98_v17 = vld [vmem:[%s2594_s1 + $0x1d8] sm:$0xff]  ;;  %v97_v21 = vld [vmem:[%s2594_s1 + $0x1d0] sm:$0xff] }
   0x7   :  { %1358 = vmatpush3.msra.mxu1 %v85_v7  ;;  %1324 = vmatprep.subr.mxu0 %v68_v8  ;;  %v51_v14 = vld [vmem:[%s2594_s1 + $0x60] sm:$0xff]  ;;  %v50_v18 = vld [vmem:[%s2594_s1 + $0x58] sm:$0xff]  ;;  %v49_v22 = vld [vmem:[%s2594_s1 + $0x50] sm:$0xff] }
   0x8   :  { %1359 = vmatprep.subr.mxu1 %v100_v9  ;;  %v83_v15 = vld [vmem:[%s2594_s1 + $0x160] sm:$0xff]  ;;  %1325 = vmatpush3.msra.mxu0 %v52_v10  ;;  %v82_v19 = vld [vmem:[%s2594_s1 + $0x158] sm:$0xff]  ;;  %v81_v23 = vld [vmem:[%s2594_s1 + $0x150] sm:$0xff] }
   0x9   :  { %1360 = vmatpush3.msra.mxu1 %v84_v11  ;;  %1326 = vmatprep.subr.mxu0 %v67_v12  ;;  %v64_v24 = vld [vmem:[%s2594_s1 + $0xc8] sm:$0xff]  ;;  %v63_v28 = vld [vmem:[%s2594_s1 + $0xc0] sm:$0xff]  ;;  %v62_v35 = vld [vmem:[%s2594_s1 + $0xb8] sm:$0xff] }
   0xa   :  { %1361 = vmatprep.subr.mxu1 %v99_v13  ;;  %1327 = vmatpush3.msra.mxu0 %v51_v14  ;;  %v96_v25 = vld [vmem:[%s2594_s1 + $0x1c8] sm:$0xff]  ;;  %v95_v29 = vld [vmem:[%s2594_s1 + $0x1c0] sm:$0xff]  ;;  %v94_v36 = vld [vmem:[%s2594_s1 + $0x1b8] sm:$0xff] }
   0xb   :  { %1362 = vmatpush3.msra.mxu1 %v83_v15  ;;  %1328 = vmatprep.subr.mxu0 %v66_v16  ;;  %v48_v26 = vld [vmem:[%s2594_s1 + $0x48] sm:$0xff]  ;;  %v47_v33 = vld [vmem:[%s2594_s1 + $0x40] sm:$0xff]  ;;  %v46_v37 = vld [vmem:[%s2594_s1 + $0x38] sm:$0xff] }
   0xc   :  { %1363 = vmatprep.subr.mxu1 %v98_v17  ;;  %1329 = vmatpush3.msra.mxu0 %v50_v18  ;;  %v80_v27 = vld [vmem:[%s2594_s1 + $0x148] sm:$0xff]  ;;  %v79_v34 = vld [vmem:[%s2594_s1 + $0x140] sm:$0xff]  ;;  %v78_v38 = vld [vmem:[%s2594_s1 + $0x138] sm:$0xff] }
   0xd   :  { %1364 = vmatpush3.msra.mxu1 %v82_v19  ;;  %1330 = vmatprep.subr.mxu0 %v65_v20  ;;  %v61_v39 = vld [vmem:[%s2594_s1 + $0xb0] sm:$0xff]  ;;  %v60_v45 = vld [vmem:[%s2594_s1 + $0xa8] sm:$0xff]  ;;  %v59_v49 = vld [vmem:[%s2594_s1 + $0xa0] sm:$0xff] }
   0xe   :  { %1365 = vmatprep.subr.mxu1 %v97_v21  ;;  %1331 = vmatpush3.msra.mxu0 %v49_v22  ;;  %v93_v40 = vld [vmem:[%s2594_s1 + $0x1b0] sm:$0xff]  ;;  %v92_v46 = vld [vmem:[%s2594_s1 + $0x1a8] sm:$0xff]  ;;  %v91_v50 = vld [vmem:[%s2594_s1 + $0x1a0] sm:$0xff] }
   0xf   :  { %1366 = vmatpush3.msra.mxu1 %v81_v23  ;;  %1332 = vmatprep.subr.mxu0 %v64_v24  ;;  %v45_v43 = vld [vmem:[%s2594_s1 + $0x30] sm:$0xff]  ;;  %v44_v47 = vld [vmem:[%s2594_s1 + $0x28] sm:$0xff]  ;;  %v43_v52 = vld [vmem:[%s2594_s1 + $0x20] sm:$0xff] }
  0x10   :  { %1367 = vmatprep.subr.mxu1 %v96_v25  ;;  %1333 = vmatpush3.msra.mxu0 %v48_v26  ;;  %v77_v44 = vld [vmem:[%s2594_s1 + $0x130] sm:$0xff]  ;;  %v76_v48 = vld [vmem:[%s2594_s1 + $0x128] sm:$0xff]  ;;  %v75_v53 = vld [vmem:[%s2594_s1 + $0x120] sm:$0xff] }
  0x11   :  { %1368 = vmatpush3.msra.mxu1 %v80_v27  ;;  %1334 = vmatprep.subr.mxu0 %v63_v28  ;;  %v35_v54 = vld [vmem:[%s2595_s0] sm:$0xff]  ;;  %v58_v55 = vld [vmem:[%s2594_s1 + $0x98] sm:$0xff]  ;;  %v57_v60 = vld [vmem:[%s2594_s1 + $0x90] sm:$0xff] }
  0x12   :  { %1369 = vmatprep.subr.mxu1 %v95_v29  ;;  %1335 = vmatpush3.msra.mxu0 %v47_v33  ;;  %v90_v56 = vld [vmem:[%s2594_s1 + $0x198] sm:$0xff]  ;;  %v306_v57 = vcombine.high %v35_v54, %v35_v54  ;;  %v89_v61 = vld [vmem:[%s2594_s1 + $0x190] sm:$0xff]  ;;  %v313_v62 = vrot.slane %v35_v54, %v1865_v51  ;;  %v56_v1 = vld [vmem:[%s2594_s1 + $0x88] sm:$0xff] }
  0x13   :  { %1370 = vmatpush3.msra.mxu1 %v79_v34  ;;  %1336 = vmatprep.subr.mxu0 %v62_v35  ;;  %v42_v58 = vld [vmem:[%s2594_s1 + $0x18] sm:$0xff]  ;;  %v41_v63 = vld [vmem:[%s2594_s1 + $0x10] sm:$0xff]  ;;  %v88_v2 = vld [vmem:[%s2594_s1 + $0x188] sm:$0xff] }
  0x14   :  { %1371 = vmatprep.subr.mxu1 %v94_v36  ;;  %1337 = vmatpush3.msra.mxu0 %v46_v37  ;;  %v74_v59 = vld [vmem:[%s2594_s1 + $0x118] sm:$0xff]  ;;  %v73_v0 = vld [vmem:[%s2594_s1 + $0x110] sm:$0xff]  ;;  %v320_v3 = vrot.slane %v306_v57, %v1865_v51  ;;  %v40_v4 = vld [vmem:[%s2594_s1 + $0x8] sm:$0xff]  ;;  %v321_v8 = vcombine.high %v313_v62, %v313_v62 }
  0x15   :  { %1372 = vmatpush3.msra.mxu1 %v78_v38  ;;  %1338 = vmatprep.subr.mxu0 %v61_v39  ;;  %v72_v5 = vld [vmem:[%s2594_s1 + $0x108] sm:$0xff]  ;;  %v55_v6 = vld [vmem:[%s2594_s1 + $0x80] sm:$0xff]  ;;  %v134_v12 = vld [vmem:[%s2594_s1 + $0x2f8] sm:$0xff] }
  0x16   :  { %1373 = vmatprep.subr.mxu1 %v93_v40  ;;  %1339 = vmatpush3.msra.mxu0 %v45_v43  ;;  %v87_v7 = vld [vmem:[%s2594_s1 + $0x180] sm:$0xff]  ;;  %v322_v11 = vcombine.high %v320_v3, %v320_v3  ;;  %v166_v13 = vld [vmem:[%s2594_s1 + $0x3f8] sm:$0xff]  ;;  %v133_v16 = vld [vmem:[%s2594_s1 + $0x2f0] sm:$0xff] }
  0x17   :  { %1374 = vmatpush3.msra.mxu1 %v77_v44  ;;  %1340 = vmatprep.subr.mxu0 %v60_v45  ;;  %v39_v9 = vld [vmem:[%s2594_s1] sm:$0xff]  ;;  %v118_v14 = vld [vmem:[%s2594_s1 + $0x278] sm:$0xff]  ;;  %v165_v17 = vld [vmem:[%s2594_s1 + $0x3f0] sm:$0xff] }
  0x18   :  { %1375 = vmatprep.subr.mxu1 %v92_v46  ;;  %1341 = vmatpush3.msra.mxu0 %v44_v47  ;;  %v71_v10 = vld [vmem:[%s2594_s1 + $0x100] sm:$0xff]  ;;  %v150_v15 = vld [vmem:[%s2594_s1 + $0x378] sm:$0xff]  ;;  %v117_v18 = vld [vmem:[%s2594_s1 + $0x270] sm:$0xff] }
  0x19   :  { %1376 = vmatpush3.msra.mxu1 %v76_v48  ;;  %1342 = vmatprep.subr.mxu0 %v59_v49  ;;  %v149_v19 = vld [vmem:[%s2594_s1 + $0x370] sm:$0xff]  ;;  %v132_v20 = vld [vmem:[%s2594_s1 + $0x2e8] sm:$0xff]  ;;  %v131_v24 = vld [vmem:[%s2594_s1 + $0x2e0] sm:$0xff] }
  0x1a   :  { %1377 = vmatprep.subr.mxu1 %v91_v50  ;;  %1343 = vmatpush3.msra.mxu0 %v43_v52  ;;  %v164_v21 = vld [vmem:[%s2594_s1 + $0x3e8] sm:$0xff]  ;;  %v163_v25 = vld [vmem:[%s2594_s1 + $0x3e0] sm:$0xff]  ;;  %v130_v28 = vld [vmem:[%s2594_s1 + $0x2d8] sm:$0xff] }
  0x1b   :  { %1378 = vmatpush3.msra.mxu1 %v75_v53  ;;  %1344 = vmatprep.subr.mxu0 %v58_v55  ;;  %v116_v22 = vld [vmem:[%s2594_s1 + $0x268] sm:$0xff]  ;;  %v115_v26 = vld [vmem:[%s2594_s1 + $0x260] sm:$0xff]  ;;  %v162_v29 = vld [vmem:[%s2594_s1 + $0x3d8] sm:$0xff] }
  0x1c   :  { %1379 = vmatprep.subr.mxu1 %v90_v56  ;;  %1345 = vmatpush3.msra.mxu0 %v42_v58  ;;  %v148_v23 = vld [vmem:[%s2594_s1 + $0x368] sm:$0xff]  ;;  %v147_v27 = vld [vmem:[%s2594_s1 + $0x360] sm:$0xff]  ;;  %v114_v30 = vld [vmem:[%s2594_s1 + $0x258] sm:$0xff] }
  0x1d   :  { %1380 = vmatpush3.msra.mxu1 %v74_v59  ;;  %1346 = vmatprep.subr.mxu0 %v57_v60  ;;  %v146_v31 = vld [vmem:[%s2594_s1 + $0x358] sm:$0xff]  ;;  %v129_v32 = vld [vmem:[%s2594_s1 + $0x2d0] sm:$0xff]  ;;  %v128_v36 = vld [vmem:[%s2594_s1 + $0x2c8] sm:$0xff] }
  0x1e   :  { %1381 = vmatprep.subr.mxu1 %v89_v61  ;;  %1347 = vmatpush3.msra.mxu0 %v41_v63  ;;  %v161_v33 = vld [vmem:[%s2594_s1 + $0x3d0] sm:$0xff]  ;;  %v160_v37 = vld [vmem:[%s2594_s1 + $0x3c8] sm:$0xff]  ;;  %v127_v40 = vld [vmem:[%s2594_s1 + $0x2c0] sm:$0xff] }
  0x1f   :  { %1382 = vmatpush3.msra.mxu1 %v73_v0  ;;  %1348 = vmatprep.subr.mxu0 %v56_v1  ;;  %v113_v34 = vld [vmem:[%s2594_s1 + $0x250] sm:$0xff]  ;;  %v112_v38 = vld [vmem:[%s2594_s1 + $0x248] sm:$0xff]  ;;  %v159_v41 = vld [vmem:[%s2594_s1 + $0x3c0] sm:$0xff] }
  0x20   :  { %1383 = vmatprep.subr.mxu1 %v88_v2  ;;  %1349 = vmatpush3.msra.mxu0 %v40_v4  ;;  %v145_v35 = vld [vmem:[%s2594_s1 + $0x350] sm:$0xff]  ;;  %v144_v39 = vld [vmem:[%s2594_s1 + $0x348] sm:$0xff]  ;;  %v111_v43 = vld [vmem:[%s2594_s1 + $0x240] sm:$0xff] }
  0x21   :  { %1384 = vmatpush3.msra.mxu1 %v72_v5  ;;  %1350 = vmatprep.subr.mxu0 %v55_v6  ;;  %v143_v44 = vld [vmem:[%s2594_s1 + $0x340] sm:$0xff]  ;;  %v126_v45 = vld [vmem:[%s2594_s1 + $0x2b8] sm:$0xff]  ;;  %v125_v49 = vld [vmem:[%s2594_s1 + $0x2b0] sm:$0xff] }
  0x22   :  { %1385 = vmatprep.subr.mxu1 %v87_v7  ;;  %1351 = vmatpush3.msra.mxu0 %v39_v9  ;;  %v158_v46 = vld [vmem:[%s2594_s1 + $0x3b8] sm:$0xff]  ;;  %v157_v50 = vld [vmem:[%s2594_s1 + $0x3b0] sm:$0xff]  ;;  %v124_v54 = vld [vmem:[%s2594_s1 + $0x2a8] sm:$0xff] }
  0x23   :  { %454 = vmatprep.mubr.f32.mxu0 %v321_v8  ;;  %1386 = vmatpush3.msra.mxu1 %v71_v10  ;;  %v110_v47 = vld [vmem:[%s2594_s1 + $0x238] sm:$0xff]  ;;  %v109_v52 = vld [vmem:[%s2594_s1 + $0x230] sm:$0xff]  ;;  %v156_v55 = vld [vmem:[%s2594_s1 + $0x3a8] sm:$0xff] }
  0x24   :  { %455 = vmatmul.mubr.f32.vlgmr.msra.gmra.mxu0 %v313_v62  ;;  %524 = vmatprep.mubr.f32.mxu1 %v322_v11  ;;  %v142_v48 = vld [vmem:[%s2594_s1 + $0x338] sm:$0xff]  ;;  %v141_v53 = vld [vmem:[%s2594_s1 + $0x330] sm:$0xff]  ;;  %v108_v56 = vld [vmem:[%s2594_s1 + $0x228] sm:$0xff] }
  0x25   :  { %1390 = vmatprep.subr.mxu0 %v134_v12  ;;  %1425 = vmatprep.subr.mxu1 %v166_v13  ;;  %v140_v57 = vld [vmem:[%s2594_s1 + $0x328] sm:$0xff]  ;;  %v123_v59 = vld [vmem:[%s2594_s1 + $0x2a0] sm:$0xff]  ;;  %v122_v63 = vld [vmem:[%s2594_s1 + $0x298] sm:$0xff] }
  0x26   :  { %525 = vmatmul.mubr.f32.vlgmr.msra.gmra.mxu1 %v320_v3  ;;  %1391 = vmatpush3.msra.mxu0 %v118_v14  ;;  %v36_v58 = vld [vmem:[%s2595_s0 + $0x8] sm:$0xff]  ;;  %v155_v60 = vld [vmem:[%s2594_s1 + $0x3a0] sm:$0xff]  ;;  %v154_v0 = vld [vmem:[%s2594_s1 + $0x398] sm:$0xff] }
  0x27   :  { %1426 = vmatpush3.msra.mxu1 %v150_v15  ;;  %1392 = vmatprep.subr.mxu0 %v133_v16  ;;  %v107_v61 = vld [vmem:[%s2594_s1 + $0x220] sm:$0xff]  ;;  %v323_v1 = vcombine.high %v36_v58, %v36_v58  ;;  %v106_v2 = vld [vmem:[%s2594_s1 + $0x218] sm:$0xff]  ;;  %v121_v4 = vld [vmem:[%s2594_s1 + $0x290] sm:$0xff]  ;;  %v330_v6 = vrot.slane %v36_v58, %v1865_v51 }
  0x28   :  { %1427 = vmatprep.subr.mxu1 %v165_v17  ;;  %1393 = vmatpush3.msra.mxu0 %v117_v18  ;;  %v139_v62 = vld [vmem:[%s2594_s1 + $0x320] sm:$0xff]  ;;  %v138_v3 = vld [vmem:[%s2594_s1 + $0x318] sm:$0xff]  ;;  %v153_v5 = vld [vmem:[%s2594_s1 + $0x390] sm:$0xff] }
  0x29   :  { %1428 = vmatpush3.msra.mxu1 %v149_v19  ;;  %1394 = vmatprep.subr.mxu0 %v132_v20  ;;  %v105_v7 = vld [vmem:[%s2594_s1 + $0x210] sm:$0xff]  ;;  %v120_v9 = vld [vmem:[%s2594_s1 + $0x288] sm:$0xff]  ;;  %v337_v11 = vrot.slane %v323_v1, %v1865_v51  ;;  %v119_v14 = vld [vmem:[%s2594_s1 + $0x280] sm:$0xff]  ;;  %v338_v16 = vcombine.high %v330_v6, %v330_v6 }
  0x2a   :  { %1429 = vmatprep.subr.mxu1 %v164_v21  ;;  %1395 = vmatpush3.msra.mxu0 %v116_v22  ;;  %v137_v8 = vld [vmem:[%s2594_s1 + $0x310] sm:$0xff]  ;;  %v152_v10 = vld [vmem:[%s2594_s1 + $0x388] sm:$0xff]  ;;  %v151_v15 = vld [vmem:[%s2594_s1 + $0x380] sm:$0xff] }
  0x2b   :  { %1430 = vmatpush3.msra.mxu1 %v148_v23  ;;  %1396 = vmatprep.subr.mxu0 %v131_v24  ;;  %v104_v12 = vld [vmem:[%s2594_s1 + $0x208] sm:$0xff]  ;;  %v103_v17 = vld [vmem:[%s2594_s1 + $0x200] sm:$0xff]  ;;  %v339_v19 = vcombine.high %v337_v11, %v337_v11  ;;  %v198_v20 = vld [vmem:[%s2594_s1 + $0x4f8] sm:$0xff] }
  0x2c   :  { %1431 = vmatprep.subr.mxu1 %v163_v25  ;;  %1397 = vmatpush3.msra.mxu0 %v115_v26  ;;  %v136_v13 = vld [vmem:[%s2594_s1 + $0x308] sm:$0xff]  ;;  %v135_v18 = vld [vmem:[%s2594_s1 + $0x300] sm:$0xff]  ;;  %v230_v21 = vld [vmem:[%s2594_s1 + $0x5f8] sm:$0xff] }
  0x2d   :  { %1432 = vmatpush3.msra.mxu1 %v147_v27  ;;  %1398 = vmatprep.subr.mxu0 %v130_v28  ;;  %v182_v22 = vld [vmem:[%s2594_s1 + $0x478] sm:$0xff]  ;;  %v197_v24 = vld [vmem:[%s2594_s1 + $0x4f0] sm:$0xff]  ;;  %v196_v28 = vld [vmem:[%s2594_s1 + $0x4e8] sm:$0xff] }
  0x2e   :  { %1433 = vmatprep.subr.mxu1 %v162_v29  ;;  %1399 = vmatpush3.msra.mxu0 %v114_v30  ;;  %v214_v23 = vld [vmem:[%s2594_s1 + $0x578] sm:$0xff]  ;;  %v229_v25 = vld [vmem:[%s2594_s1 + $0x5f0] sm:$0xff]  ;;  %v228_v29 = vld [vmem:[%s2594_s1 + $0x5e8] sm:$0xff] }
  0x2f   :  { %1434 = vmatpush3.msra.mxu1 %v146_v31  ;;  %1400 = vmatprep.subr.mxu0 %v129_v32  ;;  %v181_v26 = vld [vmem:[%s2594_s1 + $0x470] sm:$0xff]  ;;  %v180_v30 = vld [vmem:[%s2594_s1 + $0x468] sm:$0xff]  ;;  %v195_v32 = vld [vmem:[%s2594_s1 + $0x4e0] sm:$0xff] }
  0x30   :  { %1435 = vmatprep.subr.mxu1 %v161_v33  ;;  %1401 = vmatpush3.msra.mxu0 %v113_v34  ;;  %v213_v27 = vld [vmem:[%s2594_s1 + $0x570] sm:$0xff]  ;;  %v212_v31 = vld [vmem:[%s2594_s1 + $0x568] sm:$0xff]  ;;  %v227_v33 = vld [vmem:[%s2594_s1 + $0x5e0] sm:$0xff] }
  0x31   :  { %1436 = vmatpush3.msra.mxu1 %v145_v35  ;;  %1402 = vmatprep.subr.mxu0 %v128_v36  ;;  %v179_v34 = vld [vmem:[%s2594_s1 + $0x460] sm:$0xff]  ;;  %v194_v36 = vld [vmem:[%s2594_s1 + $0x4d8] sm:$0xff]  ;;  %v189_v58 = vld [vmem:[%s2594_s1 + $0x4b0] sm:$0xff] }
  0x32   :  { %1437 = vmatprep.subr.mxu1 %v160_v37  ;;  %1403 = vmatpush3.msra.mxu0 %v112_v38  ;;  %v211_v35 = vld [vmem:[%s2594_s1 + $0x560] sm:$0xff]  ;;  %v226_v37 = vld [vmem:[%s2594_s1 + $0x5d8] sm:$0xff]  ;;  %v204_v1 = vld [vmem:[%s2594_s1 + $0x528] sm:$0xff] }
  0x33   :  { %1438 = vmatpush3.msra.mxu1 %v144_v39  ;;  %1404 = vmatprep.subr.mxu0 %v127_v40  ;;  %v178_v38 = vld [vmem:[%s2594_s1 + $0x458] sm:$0xff]  ;;  %v193_v40 = vld [vmem:[%s2594_s1 + $0x4d0] sm:$0xff] }
  0x34   :  { %1439 = vmatprep.subr.mxu1 %v159_v41  ;;  %1405 = vmatpush3.msra.mxu0 %v111_v43  ;;  %v210_v39 = vld [vmem:[%s2594_s1 + $0x558] sm:$0xff]  ;;  %v225_v41 = vld [vmem:[%s2594_s1 + $0x5d0] sm:$0xff] }
  0x35   :  { %1440 = vmatpush3.msra.mxu1 %v143_v44  ;;  %1406 = vmatprep.subr.mxu0 %v126_v45  ;;  %v177_v43 = vld [vmem:[%s2594_s1 + $0x450] sm:$0xff]  ;;  %v192_v45 = vld [vmem:[%s2594_s1 + $0x4c8] sm:$0xff] }
  0x36   :  { %1441 = vmatprep.subr.mxu1 %v158_v46  ;;  %1407 = vmatpush3.msra.mxu0 %v110_v47  ;;  %v209_v44 = vld [vmem:[%s2594_s1 + $0x550] sm:$0xff]  ;;  %v224_v46 = vld [vmem:[%s2594_s1 + $0x5c8] sm:$0xff] }
  0x37   :  { %1442 = vmatpush3.msra.mxu1 %v142_v48  ;;  %1408 = vmatprep.subr.mxu0 %v125_v49  ;;  %v176_v47 = vld [vmem:[%s2594_s1 + $0x448] sm:$0xff]  ;;  %v191_v49 = vld [vmem:[%s2594_s1 + $0x4c0] sm:$0xff] }
  0x38   :  { %1443 = vmatprep.subr.mxu1 %v157_v50  ;;  %1409 = vmatpush3.msra.mxu0 %v109_v52  ;;  %v208_v48 = vld [vmem:[%s2594_s1 + $0x548] sm:$0xff]  ;;  %v223_v50 = vld [vmem:[%s2594_s1 + $0x5c0] sm:$0xff] }
  0x39   :  { %1444 = vmatpush3.msra.mxu1 %v141_v53  ;;  %1410 = vmatprep.subr.mxu0 %v124_v54  ;;  %v175_v52 = vld [vmem:[%s2594_s1 + $0x440] sm:$0xff]  ;;  %v190_v54 = vld [vmem:[%s2594_s1 + $0x4b8] sm:$0xff] }
  0x3a   :  { %1445 = vmatprep.subr.mxu1 %v156_v55  ;;  %1411 = vmatpush3.msra.mxu0 %v108_v56  ;;  %v207_v53 = vld [vmem:[%s2594_s1 + $0x540] sm:$0xff]  ;;  %v222_v55 = vld [vmem:[%s2594_s1 + $0x5b8] sm:$0xff] }
  0x3b   :  { %1446 = vmatpush3.msra.mxu1 %v140_v57  ;;  %1412 = vmatprep.subr.mxu0 %v123_v59  ;;  %v174_v56 = vld [vmem:[%s2594_s1 + $0x438] sm:$0xff]  ;;  %v221_v59 = vld [vmem:[%s2594_s1 + $0x5b0] sm:$0xff] }
  0x3c   :  { %1447 = vmatprep.subr.mxu1 %v155_v60  ;;  %1413 = vmatpush3.msra.mxu0 %v107_v61  ;;  %v206_v57 = vld [vmem:[%s2594_s1 + $0x538] sm:$0xff]  ;;  %v173_v60 = vld [vmem:[%s2594_s1 + $0x430] sm:$0xff] }
  0x3d   :  { %1448 = vmatpush3.msra.mxu1 %v139_v62  ;;  %1414 = vmatprep.subr.mxu0 %v122_v63  ;;  %v205_v61 = vld [vmem:[%s2594_s1 + $0x530] sm:$0xff]  ;;  %v188_v62 = vld [vmem:[%s2594_s1 + $0x4a8] sm:$0xff] }
  0x3e   :  { %1449 = vmatprep.subr.mxu1 %v154_v0  ;;  %1415 = vmatpush3.msra.mxu0 %v106_v2  ;;  %v220_v63 = vld [vmem:[%s2594_s1 + $0x5a8] sm:$0xff]  ;;  %v37_v2 = vld [vmem:[%s2595_s0 + $0x10] sm:$0xff] }
  0x3f   :  { %1450 = vmatpush3.msra.mxu1 %v138_v3  ;;  %1416 = vmatprep.subr.mxu0 %v121_v4  ;;  %v172_v0 = vld [vmem:[%s2594_s1 + $0x428] sm:$0xff]  ;;  %v187_v3 = vld [vmem:[%s2594_s1 + $0x4a0] sm:$0xff] }
  0x40   :  { %1451 = vmatprep.subr.mxu1 %v153_v5  ;;  %1417 = vmatpush3.msra.mxu0 %v105_v7  ;;  %v219_v4 = vld [vmem:[%s2594_s1 + $0x5a0] sm:$0xff]  ;;  %v186_v7 = vld [vmem:[%s2594_s1 + $0x498] sm:$0xff] }
  0x41   :  { %1452 = vmatpush3.msra.mxu1 %v137_v8  ;;  %1418 = vmatprep.subr.mxu0 %v120_v9  ;;  %v171_v5 = vld [vmem:[%s2594_s1 + $0x420] sm:$0xff]  ;;  %v218_v8 = vld [vmem:[%s2594_s1 + $0x598] sm:$0xff]  ;;  %v340_v9 = vcombine.high %v37_v2, %v37_v2 }
  0x42   :  { %1453 = vmatprep.subr.mxu1 %v152_v10  ;;  %1419 = vmatpush3.msra.mxu0 %v104_v12  ;;  %v170_v10 = vld [vmem:[%s2594_s1 + $0x418] sm:$0xff]  ;;  %v185_v12 = vld [vmem:[%s2594_s1 + $0x490] sm:$0xff] }
  0x43   :  { %1454 = vmatpush3.msra.mxu1 %v136_v13  ;;  %1420 = vmatprep.subr.mxu0 %v119_v14  ;;  %v217_v13 = vld [vmem:[%s2594_s1 + $0x590] sm:$0xff]  ;;  %v347_v14 = vrot.slane %v37_v2, %v1865_v51 }
  0x44   :  { %1455 = vmatprep.subr.mxu1 %v151_v15  ;;  %1421 = vmatpush3.msra.mxu0 %v103_v17  ;;  %v169_v15 = vld [vmem:[%s2594_s1 + $0x410] sm:$0xff]  ;;  %v184_v17 = vld [vmem:[%s2594_s1 + $0x488] sm:$0xff] }
  0x45   :  { %594 = vmatprep.mubr.f32.mxu0 %v338_v16  ;;  %1456 = vmatpush3.msra.mxu1 %v135_v18  ;;  %v201_v16 = vld [vmem:[%s2594_s1 + $0x510] sm:$0xff]  ;;  %v216_v18 = vld [vmem:[%s2594_s1 + $0x588] sm:$0xff] }
  0x46   :  { %595 = vmatmul.mubr.f32.vlgmr.msra.gmra.mxu0 %v330_v6  ;;  %664 = vmatprep.mubr.f32.mxu1 %v339_v19  ;;  %v203_v6 = vld [vmem:[%s2594_s1 + $0x520] sm:$0xff]  ;;  %v354_v19 = vrot.slane %v340_v9, %v1865_v51  ;;  %v253_v2 = vld [vmem:[%s2594_s1 + $0x6b0] sm:$0xff]  ;;  %v236_v9 = vld [vmem:[%s2594_s1 + $0x628] sm:$0xff] }
  0x47   :  { %1460 = vmatprep.subr.mxu0 %v198_v20  ;;  %1495 = vmatprep.subr.mxu1 %v230_v21  ;;  %v168_v20 = vld [vmem:[%s2594_s1 + $0x408] sm:$0xff] }
  0x48   :  { %665 = vmatmul.mubr.f32.vlgmr.msra.gmra.mxu1 %v337_v11  ;;  %1461 = vmatpush3.msra.mxu0 %v182_v22  ;;  %v202_v11 = vld [vmem:[%s2594_s1 + $0x518] sm:$0xff]  ;;  %v200_v21 = vld [vmem:[%s2594_s1 + $0x508] sm:$0xff]  ;;  %v183_v22 = vld [vmem:[%s2594_s1 + $0x480] sm:$0xff] }
  0x49   :  { %1496 = vmatpush3.msra.mxu1 %v214_v23  ;;  %1462 = vmatprep.subr.mxu0 %v197_v24  ;;  %v215_v23 = vld [vmem:[%s2594_s1 + $0x580] sm:$0xff]  ;;  %v355_v24 = vcombine.high %v347_v14, %v347_v14 }
  0x4a   :  { %1497 = vmatprep.subr.mxu1 %v229_v25  ;;  %1463 = vmatpush3.msra.mxu0 %v181_v26  ;;  %v167_v25 = vld [vmem:[%s2594_s1 + $0x400] sm:$0xff] }
  0x4b   :  { %1498 = vmatpush3.msra.mxu1 %v213_v27  ;;  %1464 = vmatprep.subr.mxu0 %v196_v28  ;;  %v199_v26 = vld [vmem:[%s2594_s1 + $0x500] sm:$0xff]  ;;  %v356_v27 = vcombine.high %v354_v19, %v354_v19  ;;  %v262_v28 = vld [vmem:[%s2594_s1 + $0x6f8] sm:$0xff] }
  0x4c   :  { %1499 = vmatprep.subr.mxu1 %v228_v29  ;;  %1465 = vmatpush3.msra.mxu0 %v180_v30  ;;  %v294_v29 = vld [vmem:[%s2594_s1 + $0x7f8] sm:$0xff] }
  0x4d   :  { %1500 = vmatpush3.msra.mxu1 %v212_v31  ;;  %1466 = vmatprep.subr.mxu0 %v195_v32  ;;  %v246_v30 = vld [vmem:[%s2594_s1 + $0x678] sm:$0xff]  ;;  %v261_v32 = vld [vmem:[%s2594_s1 + $0x6f0] sm:$0xff] }
  0x4e   :  { %1501 = vmatprep.subr.mxu1 %v227_v33  ;;  %1467 = vmatpush3.msra.mxu0 %v179_v34  ;;  %v278_v31 = vld [vmem:[%s2594_s1 + $0x778] sm:$0xff]  ;;  %v293_v33 = vld [vmem:[%s2594_s1 + $0x7f0] sm:$0xff] }
  0x4f   :  { %1502 = vmatpush3.msra.mxu1 %v211_v35  ;;  %1468 = vmatprep.subr.mxu0 %v194_v36  ;;  %v245_v34 = vld [vmem:[%s2594_s1 + $0x670] sm:$0xff]  ;;  %v260_v36 = vld [vmem:[%s2594_s1 + $0x6e8] sm:$0xff] }
  0x50   :  { %1503 = vmatprep.subr.mxu1 %v226_v37  ;;  %1469 = vmatpush3.msra.mxu0 %v178_v38  ;;  %v277_v35 = vld [vmem:[%s2594_s1 + $0x770] sm:$0xff]  ;;  %v292_v37 = vld [vmem:[%s2594_s1 + $0x7e8] sm:$0xff] }
  0x51   :  { %1504 = vmatpush3.msra.mxu1 %v210_v39  ;;  %1470 = vmatprep.subr.mxu0 %v193_v40  ;;  %v244_v38 = vld [vmem:[%s2594_s1 + $0x668] sm:$0xff]  ;;  %v259_v40 = vld [vmem:[%s2594_s1 + $0x6e0] sm:$0xff] }
  0x52   :  { %1505 = vmatprep.subr.mxu1 %v225_v41  ;;  %1471 = vmatpush3.msra.mxu0 %v177_v43  ;;  %v276_v39 = vld [vmem:[%s2594_s1 + $0x768] sm:$0xff]  ;;  %v291_v41 = vld [vmem:[%s2594_s1 + $0x7e0] sm:$0xff] }
  0x53   :  { %1506 = vmatpush3.msra.mxu1 %v209_v44  ;;  %1472 = vmatprep.subr.mxu0 %v192_v45  ;;  %v243_v43 = vld [vmem:[%s2594_s1 + $0x660] sm:$0xff]  ;;  %v258_v45 = vld [vmem:[%s2594_s1 + $0x6d8] sm:$0xff] }
  0x54   :  { %1507 = vmatprep.subr.mxu1 %v224_v46  ;;  %1473 = vmatpush3.msra.mxu0 %v176_v47  ;;  %v275_v44 = vld [vmem:[%s2594_s1 + $0x760] sm:$0xff]  ;;  %v290_v46 = vld [vmem:[%s2594_s1 + $0x7d8] sm:$0xff] }
  0x55   :  { %1508 = vmatpush3.msra.mxu1 %v208_v48  ;;  %1474 = vmatprep.subr.mxu0 %v191_v49  ;;  %v242_v47 = vld [vmem:[%s2594_s1 + $0x658] sm:$0xff]  ;;  %v257_v49 = vld [vmem:[%s2594_s1 + $0x6d0] sm:$0xff] }
  0x56   :  { %1509 = vmatprep.subr.mxu1 %v223_v50  ;;  %1475 = vmatpush3.msra.mxu0 %v175_v52  ;;  %v274_v48 = vld [vmem:[%s2594_s1 + $0x758] sm:$0xff]  ;;  %v289_v50 = vld [vmem:[%s2594_s1 + $0x7d0] sm:$0xff] }
  0x57   :  { %1510 = vmatpush3.msra.mxu1 %v207_v53  ;;  %1476 = vmatprep.subr.mxu0 %v190_v54  ;;  %v241_v52 = vld [vmem:[%s2594_s1 + $0x650] sm:$0xff]  ;;  %v256_v54 = vld [vmem:[%s2594_s1 + $0x6c8] sm:$0xff] }
  0x58   :  { %1511 = vmatprep.subr.mxu1 %v222_v55  ;;  %1477 = vmatpush3.msra.mxu0 %v174_v56  ;;  %v273_v53 = vld [vmem:[%s2594_s1 + $0x750] sm:$0xff]  ;;  %v288_v55 = vld [vmem:[%s2594_s1 + $0x7c8] sm:$0xff] }
  0x59   :  { %1512 = vmatpush3.msra.mxu1 %v206_v57  ;;  %1478 = vmatprep.subr.mxu0 %v189_v58  ;;  %v240_v56 = vld [vmem:[%s2594_s1 + $0x648] sm:$0xff]  ;;  %v255_v58 = vld [vmem:[%s2594_s1 + $0x6c0] sm:$0xff] }
  0x5a   :  { %1513 = vmatprep.subr.mxu1 %v221_v59  ;;  %1479 = vmatpush3.msra.mxu0 %v173_v60  ;;  %v272_v57 = vld [vmem:[%s2594_s1 + $0x748] sm:$0xff]  ;;  %v287_v59 = vld [vmem:[%s2594_s1 + $0x7c0] sm:$0xff] }
  0x5b   :  { %1514 = vmatpush3.msra.mxu1 %v205_v61  ;;  %1480 = vmatprep.subr.mxu0 %v188_v62  ;;  %v239_v60 = vld [vmem:[%s2594_s1 + $0x640] sm:$0xff]  ;;  %v254_v62 = vld [vmem:[%s2594_s1 + $0x6b8] sm:$0xff] }
  0x5c   :  { %1515 = vmatprep.subr.mxu1 %v220_v63  ;;  %1481 = vmatpush3.msra.mxu0 %v172_v0  ;;  %v271_v61 = vld [vmem:[%s2594_s1 + $0x740] sm:$0xff]  ;;  %v286_v63 = vld [vmem:[%s2594_s1 + $0x7b8] sm:$0xff] }
  0x5d   :  { %1516 = vmatpush3.msra.mxu1 %v204_v1  ;;  %1482 = vmatprep.subr.mxu0 %v187_v3  ;;  %v238_v0 = vld [vmem:[%s2594_s1 + $0x638] sm:$0xff]  ;;  %v285_v3 = vld [vmem:[%s2594_s1 + $0x7b0] sm:$0xff] }
  0x5e   :  { %1517 = vmatprep.subr.mxu1 %v219_v4  ;;  %1483 = vmatpush3.msra.mxu0 %v171_v5  ;;  %v270_v1 = vld [vmem:[%s2594_s1 + $0x738] sm:$0xff]  ;;  %v237_v4 = vld [vmem:[%s2594_s1 + $0x630] sm:$0xff] }
  0x5f   :  { %1518 = vmatpush3.msra.mxu1 %v203_v6  ;;  %1484 = vmatprep.subr.mxu0 %v186_v7  ;;  %v269_v5 = vld [vmem:[%s2594_s1 + $0x730] sm:$0xff]  ;;  %v252_v6 = vld [vmem:[%s2594_s1 + $0x6a8] sm:$0xff] }
  0x60   :  { %1519 = vmatprep.subr.mxu1 %v218_v8  ;;  %1485 = vmatpush3.msra.mxu0 %v170_v10  ;;  %v284_v7 = vld [vmem:[%s2594_s1 + $0x7a8] sm:$0xff]  ;;  %v38_v8 = vld [vmem:[%s2595_s0 + $0x18] sm:$0xff] }
  0x61   :  { %1520 = vmatpush3.msra.mxu1 %v202_v11  ;;  %1486 = vmatprep.subr.mxu0 %v185_v12  ;;  %v268_v10 = vld [vmem:[%s2594_s1 + $0x728] sm:$0xff]  ;;  %v251_v11 = vld [vmem:[%s2594_s1 + $0x6a0] sm:$0xff] }
  0x62   :  { %1521 = vmatprep.subr.mxu1 %v217_v13  ;;  %1487 = vmatpush3.msra.mxu0 %v169_v15  ;;  %v283_v12 = vld [vmem:[%s2594_s1 + $0x7a0] sm:$0xff]  ;;  %v357_v15 = vcombine.high %v38_v8, %v38_v8 }
  0x63   :  { %1522 = vmatpush3.msra.mxu1 %v201_v16  ;;  %1488 = vmatprep.subr.mxu0 %v184_v17  ;;  %v235_v13 = vld [vmem:[%s2594_s1 + $0x620] sm:$0xff]  ;;  %v250_v16 = vld [vmem:[%s2594_s1 + $0x698] sm:$0xff] }
  0x64   :  { %1523 = vmatprep.subr.mxu1 %v216_v18  ;;  %1489 = vmatpush3.msra.mxu0 %v168_v20  ;;  %v282_v17 = vld [vmem:[%s2594_s1 + $0x798] sm:$0xff]  ;;  %v249_v20 = vld [vmem:[%s2594_s1 + $0x690] sm:$0xff] }
  0x65   :  { %1524 = vmatpush3.msra.mxu1 %v200_v21  ;;  %1490 = vmatprep.subr.mxu0 %v183_v22  ;;  %v234_v18 = vld [vmem:[%s2594_s1 + $0x618] sm:$0xff]  ;;  %v281_v21 = vld [vmem:[%s2594_s1 + $0x790] sm:$0xff]  ;;  %v364_v22 = vrot.slane %v38_v8, %v1865_v51 }
  0x66   :  { %1525 = vmatprep.subr.mxu1 %v215_v23  ;;  %1491 = vmatpush3.msra.mxu0 %v167_v25  ;;  %v233_v23 = vld [vmem:[%s2594_s1 + $0x610] sm:$0xff]  ;;  %v371_v25 = vrot.slane %v357_v15, %v1865_v51  ;;  %v264_v51 = vld [vmem:[%s2594_s1 + $0x708] sm:$0xff] }
  0x67   :  { %734 = vmatprep.mubr.f32.mxu0 %v355_v24  ;;  %1526 = vmatpush3.msra.mxu1 %v199_v26  ;;  %v265_v24 = vld [vmem:[%s2594_s1 + $0x710] sm:$0xff]  ;;  %v248_v26 = vld [vmem:[%s2594_s1 + $0x688] sm:$0xff] }
  0x68   :  { %735 = vmatmul.mubr.f32.vlgmr.msra.gmra.mxu0 %v347_v14  ;;  %804 = vmatprep.mubr.f32.mxu1 %v356_v27  ;;  %v267_v14 = vld [vmem:[%s2594_s1 + $0x720] sm:$0xff]  ;;  %v280_v27 = vld [vmem:[%s2594_s1 + $0x788] sm:$0xff] }
  0x69   :  { %1530 = vmatprep.subr.mxu0 %v262_v28  ;;  %1565 = vmatprep.subr.mxu1 %v294_v29  ;;  %v232_v28 = vld [vmem:[%s2594_s1 + $0x608] sm:$0xff]  ;;  %v247_v29 = vld [vmem:[%s2594_s1 + $0x680] sm:$0xff] }
  0x6a   :  { %805 = vmatmul.mubr.f32.vlgmr.msra.gmra.mxu1 %v354_v19  ;;  %1531 = vmatpush3.msra.mxu0 %v246_v30  ;;  %v266_v19 = vld [vmem:[%s2594_s1 + $0x718] sm:$0xff]  ;;  %v279_v30 = vld [vmem:[%s2594_s1 + $0x780] sm:$0xff] }
  0x6b   :  { %1566 = vmatpush3.msra.mxu1 %v278_v31  ;;  %1532 = vmatprep.subr.mxu0 %v261_v32  ;;  %v372_v31 = vcombine.high %v364_v22, %v364_v22  ;;  %v231_v32 = vld [vmem:[%s2594_s1 + $0x600] sm:$0xff] }
  0x6c   :  { %1567 = vmatprep.subr.mxu1 %v293_v33  ;;  %1533 = vmatpush3.msra.mxu0 %v245_v34  ;;  %v373_v33 = vcombine.high %v371_v25, %v371_v25  ;;  %v263_v34 = vld [vmem:[%s2594_s1 + $0x700] sm:$0xff] }
  0x6d   :  { %1568 = vmatpush3.msra.mxu1 %v277_v35  ;;  %1534 = vmatprep.subr.mxu0 %v260_v36  ;;  %v1667_v35 = vmov 0.0   ;;  %v954_v36 = vld [vmem:[%s2596_s3 + $0x18] sm:$0xff] }
  0x6e   :  { %1569 = vmatprep.subr.mxu1 %v292_v37  ;;  %1535 = vmatpush3.msra.mxu0 %v244_v38  ;;  %v1040_v37 = vld [vmem:[%s2597_s6 + $0x8] sm:$0x1]  ;;  %v953_v38 = vld [vmem:[%s2596_s3 + $0x10] sm:$0xff] }
  0x6f   :  { %1570 = vmatpush3.msra.mxu1 %v276_v39  ;;  %1536 = vmatprep.subr.mxu0 %v259_v40  ;;  %v1039_v39 = vld [vmem:[%s2597_s6] sm:$0xff]  ;;  %v952_v40 = vld [vmem:[%s2596_s3 + $0x8] sm:$0xff] }
  0x70   :  { %1571 = vmatprep.subr.mxu1 %v291_v41  ;;  %1537 = vmatpush3.msra.mxu0 %v243_v43  ;;  %v1037_v41 = vld [vmem:[%s2598_s5] sm:$0xff]  ;;  %v1038_v43 = vld [vmem:[%s2598_s5 + $0x8] sm:$0xff] }
  0x71   :  { %1572 = vmatpush3.msra.mxu1 %v275_v44  ;;  %1538 = vmatprep.subr.mxu0 %v258_v45  ;;  %v951_v44 = vld [vmem:[%s2596_s3] sm:$0xff] }
  0x72   :  { %1573 = vmatprep.subr.mxu1 %v290_v46  ;;  %1539 = vmatpush3.msra.mxu0 %v242_v47 }
  0x73   :  { %1574 = vmatpush3.msra.mxu1 %v274_v48  ;;  %1540 = vmatprep.subr.mxu0 %v257_v49 }
  0x74   :  { %1575 = vmatprep.subr.mxu1 %v289_v50  ;;  %1541 = vmatpush3.msra.mxu0 %v241_v52  ;;  %v1310_v50 = vld [vmem:[%s2599_s2] ss:$0 sm:$0xff] }
  0x75   :  { %1576 = vmatpush3.msra.mxu1 %v273_v53  ;;  %1542 = vmatprep.subr.mxu0 %v256_v54 }
  0x76   :  { %1577 = vmatprep.subr.mxu1 %v288_v55  ;;  %1543 = vmatpush3.msra.mxu0 %v240_v56 }
  0x77   :  { %1578 = vmatpush3.msra.mxu1 %v272_v57  ;;  %1544 = vmatprep.subr.mxu0 %v255_v58 }
  0x78   :  { %1579 = vmatprep.subr.mxu1 %v287_v59  ;;  %1545 = vmatpush3.msra.mxu0 %v239_v60 }
  0x79   :  { %1580 = vmatpush3.msra.mxu1 %v271_v61  ;;  %1546 = vmatprep.subr.mxu0 %v254_v62 }
  0x7a   :  { %1581 = vmatprep.subr.mxu1 %v286_v63  ;;  %1547 = vmatpush3.msra.mxu0 %v238_v0 }
  0x7b   :  { %1582 = vmatpush3.msra.mxu1 %v270_v1  ;;  %1548 = vmatprep.subr.mxu0 %v253_v2 }
  0x7c   :  { %1583 = vmatprep.subr.mxu1 %v285_v3  ;;  %1549 = vmatpush3.msra.mxu0 %v237_v4 }
  0x7d   :  { %1584 = vmatpush3.msra.mxu1 %v269_v5  ;;  %1550 = vmatprep.subr.mxu0 %v252_v6 }
  0x7e   :  { %1585 = vmatprep.subr.mxu1 %v284_v7  ;;  %1551 = vmatpush3.msra.mxu0 %v236_v9 }
  0x7f   :  { %1586 = vmatpush3.msra.mxu1 %v268_v10  ;;  %1552 = vmatprep.subr.mxu0 %v251_v11 }
  0x80   :  { %1587 = vmatprep.subr.mxu1 %v283_v12  ;;  %1553 = vmatpush3.msra.mxu0 %v235_v13 }
  0x81   :  { %1588 = vmatpush3.msra.mxu1 %v267_v14  ;;  %1554 = vmatprep.subr.mxu0 %v250_v16  ;;  %v1139_v16 = vld [vmem:[%s2600_s8 + $0x18] sm:$0xff] }
  0x82   :  { %1589 = vmatprep.subr.mxu1 %v282_v17  ;;  %1555 = vmatpush3.msra.mxu0 %v234_v18  ;;  %v1138_v17 = vld [vmem:[%s2600_s8 + $0x10] sm:$0xff]  ;;  %v1137_v18 = vld [vmem:[%s2600_s8 + $0x8] sm:$0xff] }
  0x83   :  { %1590 = vmatpush3.msra.mxu1 %v266_v19  ;;  %1556 = vmatprep.subr.mxu0 %v249_v20  ;;  %v1136_v19 = vld [vmem:[%s2600_s8] sm:$0xff] }
  0x84   :  { %1591 = vmatprep.subr.mxu1 %v281_v21  ;;  %1557 = vmatpush3.msra.mxu0 %v233_v23  ;;  %v1313_v21 = vld [vmem:[%s2601_s7] ss:$0 sm:$0xff] }
  0x85   :  { %1592 = vmatpush3.msra.mxu1 %v265_v24  ;;  %1558 = vmatprep.subr.mxu0 %v248_v26 }
  0x86   :  { %1593 = vmatprep.subr.mxu1 %v280_v27  ;;  %1559 = vmatpush3.msra.mxu0 %v232_v28  ;;  %v1143_v27 = vsub.s32 0, %v1838_v42  ;;  %v1229_v28 = vsub.s32 1, %v1838_v42 }
  0x87   :  { %1594 = vmatpush3.msra.mxu1 %v264_v51  ;;  %1560 = vmatprep.subr.mxu0 %v247_v29 }
  0x88   :  { %1595 = vmatprep.subr.mxu1 %v279_v30  ;;  %1561 = vmatpush3.msra.mxu0 %v231_v32 }
  0x89   :  { %874 = vmatprep.mubr.f32.mxu0 %v372_v31  ;;  %1596 = vmatpush3.msra.mxu1 %v263_v34 }
  0x8a   :  { %944 = vmatprep.mubr.f32.mxu1 %v373_v33  ;;  %875 = vmatmul.mubr.f32.vlgmr.msra.gmra.mxu0 %v364_v22  ;;  %v1311_v22 = vld [vmem:[%s2602_s4] ss:$0 sm:$0xff] }
  0x8b   :  { %945 = vmatmul.mubr.f32.vlgmr.msra.gmra.mxu1 %v371_v25  ;;  %1619 = vmatprep.subr.mxu0 %v1667_v35 }
  0x8c   :  { %1620 = vmatpush3.msra.mxu0 %v954_v36  ;;  %1630 = vmatprep.subr.msk.mxu1 %vm1055_vm0, %v1040_v37 }
  0x8d   :  { %1621 = vmatprep.subr.mxu0 %v1667_v35  ;;  %1631 = vmatpush3.msk.msra.mxu1 %vm1055_vm0, %v1040_v37  ;;  %v1317_v37 = vld [vmem:[%s2603_s9] ss:$0 sm:$0xff] }
  0x8e   :  { %1622 = vmatpush3.msra.mxu0 %v953_v38  ;;  %1632 = vmatprep.subr.mxu1 %v1039_v39 }
  0x8f   :  { %1623 = vmatprep.subr.mxu0 %v1667_v35  ;;  %1633 = vmatpush3.msra.mxu1 %v1039_v39 }
  0x90   :  { %1624 = vmatpush3.msra.mxu0 %v952_v40  ;;  %1634 = vmatprep.mubr.msk.f32.mxu1 %vm1048_vm1, %v1037_v41 }
  0x91   :  { %1625 = vmatprep.subr.mxu0 %v1667_v35  ;;  %1635 = vmatmul.mubr.msk.f32.vlgmr.msra.gmra.mxu1 %vm1048_vm1, %v1038_v43 }
  0x92   :  { %1626 = vmatpush3.msra.mxu0 %v951_v44  ;;  %1627 = vmatprep.mubr.msk.f32.mxu0 %vm1668_vm2, %v1667_v35 }
  0x93   :  { %1637 = vmatprep.subr.mxu1 %v1667_v35  ;;  %1648 = vmatprep.subr.mxu0 %v1667_v35 }
  0x94   :  { %1645 = vmatprep.mubr.msk.f32.mxu1 %vm1668_vm2, %v1667_v35  ;;  %1638 = vmatpush3.msra.mxu1 %v1139_v16 }
  0x95   :  { %1639 = vmatprep.subr.mxu1 %v1667_v35 }
  0x96   :  { %1640 = vmatpush3.msra.mxu1 %v1138_v17 }
  0x97   :  { %1641 = vmatprep.subr.mxu1 %v1667_v35 }
  0x98   :  { %1642 = vmatpush3.msra.mxu1 %v1137_v18 }
  0x99   :  { %1643 = vmatprep.subr.mxu1 %v1667_v35 }
  0x9a   :  { %1644 = vmatpush3.msra.mxu1 %v1136_v19 }
  0xe4   :  { %v1352_v45 = vpop.f32.mrf.mxu0 }
  0xe6   :  { %v1387_v46 = vpop.f32.mrf.mxu1  ;;  %v1353_v47 = vpop.f32.mrf.mxu0 }
  0xe7   :  { %v1354_v49 = vadd.f32 %v1353_v47, %v1352_v45 }
  0xe8   :  { %v1388_v52 = vpop.f32.mrf.mxu1 }
  0xe9   :  { %v457_v55 = vadd.f32 %v1354_v49, %v1310_v50  ;;  %v1389_v56 = vadd.f32 %v1388_v52, %v1387_v46 }
  0xeb   :  { %v527_v60 = vadd.f32 %v1389_v56, %v457_v55 }
 0x106   :  { %v1422_v48 = vpop.f32.mrf.mxu0 }
 0x108   :  { %v1457_v53 = vpop.f32.mrf.mxu1  ;;  %v1423_v54 = vpop.f32.mrf.mxu0 }
 0x109   :  { %v1424_v58 = vadd.f32 %v1423_v54, %v1422_v48 }
 0x10a   :  { %v1458_v59 = vpop.f32.mrf.mxu1 }
 0x10b   :  { %v597_v63 = vadd.f32 %v1424_v58, %v527_v60  ;;  %v1459_v0 = vadd.f32 %v1458_v59, %v1457_v53 }
 0x10d   :  { %v667_v3 = vadd.f32 %v1459_v0, %v597_v63 }
 0x128   :  { %v1492_v57 = vpop.f32.mrf.mxu0 }
 0x12a   :  { %v1527_v61 = vpop.f32.mrf.mxu1  ;;  %v1493_v62 = vpop.f32.mrf.mxu0 }
 0x12b   :  { %v1494_v1 = vadd.f32 %v1493_v62, %v1492_v57 }
 0x12c   :  { %v1528_v2 = vpop.f32.mrf.mxu1 }
 0x12d   :  { %v737_v4 = vadd.f32 %v1494_v1, %v667_v3  ;;  %v1529_v5 = vadd.f32 %v1528_v2, %v1527_v61 }
 0x12f   :  { %v807_v10 = vadd.f32 %v1529_v5, %v737_v4 }
 0x14a   :  { %v1562_v6 = vpop.f32.mrf.mxu0 }
 0x14b   :  { %v1597_v7 = vpop.f32.mrf.mxu1 }
 0x14c   :  { %v1563_v8 = vpop.f32.mrf.mxu0 }
 0x14d   :  { %v1598_v9 = vpop.f32.mrf.mxu1  ;;  %v1564_v11 = vadd.f32 %v1563_v8, %v1562_v6 }
 0x14e   :  { %v1599_v13 = vadd.f32 %v1598_v9, %v1597_v7 }
 0x14f   :  { %v877_v12 = vadd.f32 %v1564_v11, %v807_v10 }
 0x151   :  { %v947_v14 = vadd.f32 %v1599_v13, %v877_v12  ;;  %v1636_v20 = vpop.f32.mrf.mxu1 }
 0x152   :  { %v1131_v24 = vadd.f32 %v1636_v20, %v1313_v21 }
 0x153   :  { %v950_v15 = vmax.f32 %v947_v14, 0.0  ;;  %v1125_v23 = vpop.f32.mrf.mxu1 }
 0x154   :  { %v1126_v51 = vadd.f32 %v1313_v21, %v1125_v23  ;;  %v1135_v31 = vmax.f32 %v1131_v24, 0.0 }
 0x155   :  { %1628 = vmatmul.mubr.msk.f32.vlgmr.msra.gmra.mxu0 %vm962_vm3, %v950_v15 }
 0x156   :  { %1656 = vmatprep.mubr.msk.f32.mxu0 %vm1668_vm2, %v1667_v35  ;;  %1649 = vmatpush3.msra.mxu0 %v1139_v16  ;;  %v1134_v34 = vmax.f32 %v1126_v51, 0.0 }
 0x157   :  { %1650 = vmatprep.subr.mxu0 %v1667_v35 }
 0x158   :  { %1651 = vmatpush3.msra.mxu0 %v1138_v17 }
 0x159   :  { %1652 = vmatprep.subr.mxu0 %v1667_v35 }
 0x15a   :  { %1653 = vmatpush3.msra.mxu0 %v1137_v18 }
 0x15b   :  { %1654 = vmatprep.subr.mxu0 %v1667_v35 }
 0x15c   :  { %1655 = vmatpush3.msra.mxu0 %v1136_v19 }
 0x215   :  { %v1032_v25 = vpop.f32.mrf.mxu0 }
 0x216   :  { %v1033_v26 = vadd.f32 %v1311_v22, %v1032_v25 }
 0x217   :  { %v1629_v29 = vpop.f32.mrf.mxu0 }
 0x218   :  { %v1036_v30 = vmax.f32 %v1033_v26, 0.0 }
 0x21a   :  { %v1144_v32 = vrot.slane %v1036_v30, %v1143_v27  ;;  %v1230_v33 = vrot.slane %v1036_v30, %v1229_v28 }
 0x21c   :  { %v1231_v35 = vmul.f32 %v1230_v33, %v1135_v31  ;;  %v1145_v36 = vmul.f32 %v1144_v32, %v1134_v34 }
 0x21e   :  { %1646 = vmatmul.mubr.msk.f32.vlgmr.msra.gmra.mxu1 %vm962_vm3, %v1145_v36  ;;  %1657 = vmatmul.mubr.msk.f32.vlgmr.msra.gmra.mxu0 %vm962_vm3, %v1231_v35 }
 0x2de   :  { %v1221_v38 = vpop.f32.mrf.mxu1  ;;  %v1301_v42 = vpop.f32.mrf.mxu0 }
 0x2df   :  { %v1222_v39 = vadd.f32 %v1317_v37, %v1221_v38  ;;  %v1302_v40 = vadd.f32 %v1317_v37, %v1301_v42 }
 0x2e0   :  { %v1647_v41 = vpop.f32.mrf.mxu1  ;;  %v1658_v43 = vpop.f32.mrf.mxu0 }
 0x2e1   :  { %1226 = vst.msk [vmem:[%s2604_s10] sm:$0xff] %vm1225_vm4, %v1222_v39  ;;  %1305 = vst.msk [vmem:[%s2604_s10 + $0x8] sm:$0xff] %vm1225_vm4, %v1302_v40 }

// kernel: localizer_forward.9
= control target key start
LH: loop header
LB: loop body
LE: loop exit
PB: predicated region body
PF: predicated region fallthrough
CT: control target
= control target key end

     0   :  { %vm75_vm0 = vcmask 261120   ;;  %vm458_vm3 = vcmask 15360   ;;  %vm3921_vm4 = vcmask 23552   ;;  %s6674_s9 = inlined_call_operand.vmem [shape: f32[32,32], index: 9, kind: input, shape index: {}]   ;;  %s6675_s4 = inlined_call_operand.vmem [shape: f32[16,32], index: 4, kind: input, shape index: {}]   ;;  %s6676_s8 = inlined_call_operand.vmem [shape: f32[32,32], index: 8, kind: input, shape index: {}]   ;;  %s6677_s10 = inlined_call_operand.vmem [shape: f32[32,32], index: 10, kind: input, shape index: {}]   ;;  %s6678_s1 = inlined_call_operand.vmem [shape: f32[8,16,32], index: 1, kind: input, shape index: {}]   ;;  %s6679_s11 = inlined_call_operand.vmem [shape: f32[32,1], index: 11, kind: input, shape index: {}]   ;;  %s6680_s0 = inlined_call_operand.vmem [shape: f32[8,16,32], index: 0, kind: input, shape index: {}]   ;;  %s6681_s2 = inlined_call_operand.vmem [shape: f32[8,16,32], index: 2, kind: input, shape index: {}]   ;;  %s6682_s3 = inlined_call_operand.vmem [shape: f32[8,16,1], index: 3, kind: input, shape index: {}]   ;;  %s6683_s5 = inlined_call_operand.vmem [shape: f32[16,1], index: 5, kind: input, shape index: {}]   ;;  %s6684_s6 = inlined_call_operand.vmem [shape: f32[16,2], index: 6, kind: input, shape index: {}]   ;;  %s6685_s12 = inlined_call_operand.vmem [shape: f32[32,3], index: 12, kind: input, shape index: {}]   ;;  %s6686_s13 = inlined_call_operand.vmem [shape: f32[1,3], index: 13, kind: input, shape index: {}]   ;;  %s6687_s15 = inlined_call_operand.vmem [shape: f32[128,3], index: 15, kind: output, shape index: {1}]   ;;  %s6688_s7 = inlined_call_operand.vmem [shape: f32[16,128], index: 7, kind: input, shape index: {}]   ;;  %s6689_s14 = inlined_call_operand.vmem [shape: f32[16,3], index: 14, kind: output, shape index: {0}]  }
   0x1   :  { %v5408_v0 = vld [vmem:[%s6674_s9 + $0x18] sm:$0xff]  ;;  %v5413_v1 = vld [vmem:[%s6674_s9 + $0x10] sm:$0xff]  ;;  %v5419_v2 = vld [vmem:[%s6675_s4] sm:$0xff] }
   0x2   :  { %4570 = vmatprep.subr.mxu1 %v5408_v0  ;;  %v5425_v3 = vld [vmem:[%s6674_s9 + $0x8] sm:$0xff]  ;;  %4578 = vmatprep.mubr.msk.f32.mxu1 %vm75_vm0, %v5419_v2  ;;  %v5436_v4 = vld [vmem:[%s6674_s9] sm:$0xff]  ;;  %v5452_v6 = vld [vmem:[%s6676_s8 + $0x18] sm:$0xff] }
   0x3   :  { %4571 = vmatpush3.msra.mxu1 %v5408_v0  ;;  %4567 = vmatprep.mubr.msk.f32.mxu0 %vm75_vm0, %v5419_v2  ;;  %v5443_v5 = vld [vmem:[%s6675_s4 + $0x8] sm:$0xff]  ;;  %v5459_v7 = vld [vmem:[%s6676_s8 + $0x10] sm:$0xff]  ;;  %v5473_v9 = vld [vmem:[%s6676_s8] sm:$0xff] }
   0x4   :  { %4572 = vmatprep.subr.mxu1 %v5413_v1  ;;  %4559 = vmatprep.subr.mxu0 %v5452_v6  ;;  %v5466_v8 = vld [vmem:[%s6676_s8 + $0x8] sm:$0xff]  ;;  %v5482_v10 = vld [vmem:[%s6677_s10 + $0x18] sm:$0xff]  ;;  %v5487_v11 = vld [vmem:[%s6677_s10 + $0x10] sm:$0xff] }
   0x5   :  { %4573 = vmatpush3.msra.mxu1 %v5413_v1  ;;  %4560 = vmatpush3.msra.mxu0 %v5452_v6  ;;  %v5494_v12 = vld [vmem:[%s6677_s10 + $0x8] sm:$0xff]  ;;  %v5501_v13 = vld [vmem:[%s6677_s10] sm:$0xff]  ;;  %v5529_v30 = vld [vmem:[%s6679_s11 + $0x18] sm:$0xff] }
   0x6   :  { %4574 = vmatprep.subr.mxu1 %v5425_v3  ;;  %4561 = vmatprep.subr.mxu0 %v5459_v7  ;;  %v172_v14 = vld [vmem:[%s6678_s1 + $0x8] sm:$0xff]  ;;  %v171_v16 = vld [vmem:[%s6678_s1] sm:$0xff]  ;;  %v5536_v31 = vld [vmem:[%s6679_s11 + $0x10] sm:$0xff] }
   0x7   :  { %4575 = vmatpush3.msra.mxu1 %v5425_v3  ;;  %4562 = vmatpush3.msra.mxu0 %v5459_v7  ;;  %v5543_v32 = vld [vmem:[%s6679_s11 + $0x8] sm:$0xff]  ;;  %v5550_v33 = vld [vmem:[%s6679_s11] sm:$0xff] }
   0x8   :  { %4576 = vmatprep.subr.mxu1 %v5436_v4  ;;  %4563 = vmatprep.subr.mxu0 %v5466_v8  ;;  %v74_v34 = vld [vmem:[%s6680_s0 + $0x8] sm:$0xff]  ;;  %v73_v37 = vld [vmem:[%s6680_s0] sm:$0xff] }
   0x9   :  { %4577 = vmatpush3.msra.mxu1 %v5436_v4  ;;  %4564 = vmatpush3.msra.mxu0 %v5466_v8  ;;  %v263_v46 = vld [vmem:[%s6681_s2 + $0x8] sm:$0xff]  ;;  %v262_v48 = vld [vmem:[%s6681_s2] sm:$0xff] }
   0xa   :  { %4579 = vmatmul.mubr.msk.f32.vlgmr.msra.gmra.mxu1 %vm75_vm0, %v5443_v5  ;;  %4565 = vmatprep.subr.mxu0 %v5473_v9 }
   0xb   :  { %4566 = vmatpush3.msra.mxu0 %v5473_v9  ;;  %4592 = vmatprep.subr.mxu1 %v5529_v30 }
   0xc   :  { %4568 = vmatmul.mubr.msk.f32.vlgmr.msra.gmra.mxu0 %vm75_vm0, %v5443_v5  ;;  %4581 = vmatprep.subr.mxu0 %v5482_v10 }
   0xd   :  { %4582 = vmatpush3.msra.mxu0 %v5482_v10  ;;  %4593 = vmatpush3.msra.mxu1 %v5529_v30 }
   0xe   :  { %4583 = vmatprep.subr.mxu0 %v5487_v11  ;;  %4594 = vmatprep.subr.mxu1 %v5536_v31 }
   0xf   :  { %4584 = vmatpush3.msra.mxu0 %v5487_v11  ;;  %4595 = vmatpush3.msra.mxu1 %v5536_v31 }
  0x10   :  { %4585 = vmatprep.subr.mxu0 %v5494_v12  ;;  %4596 = vmatprep.subr.mxu1 %v5543_v32 }
  0x11   :  { %4586 = vmatpush3.msra.mxu0 %v5494_v12  ;;  %4597 = vmatpush3.msra.mxu1 %v5543_v32 }
  0x12   :  { %4587 = vmatprep.subr.mxu0 %v5501_v13  ;;  %4598 = vmatprep.subr.mxu1 %v5550_v33 }
  0x13   :  { %4588 = vmatpush3.msra.mxu0 %v5501_v13  ;;  %4599 = vmatpush3.msra.mxu1 %v5550_v33 }
  0x14   :  { %4603 = vmatprep.subr.mxu0 %v5452_v6  ;;  %4614 = vmatprep.subr.mxu1 %v5408_v0 }
  0xca   :  { %v4580_v15 = vpop.f32.mrf.mxu1 }
  0xcb   :  { %v249_v17 = vadd.f32 %v4580_v15, %v172_v14  ;;  %v359_v14 = vld [vmem:[%s6682_s3] sm:$0xff]  ;;  %v360_v15 = vld [vmem:[%s6682_s3 + $0x8] sm:$0xff] }
  0xcc   :  { %v239_v18 = vpop.f32.mrf.mxu1  ;;  %v4569_v35 = vpop.f32.mrf.mxu0 }
  0xcd   :  { %v4141_v19 = vmul.f32 -1.442695, %v249_v17  ;;  %v248_v20 = vadd.f32 %v239_v18, %v171_v16  ;;  %v158_v36 = vadd.f32 %v4569_v35, %v74_v34  ;;  %v51_v17 = vld [vmem:[%s6683_s5] sm:$0xff] }
  0xce   :  { %v148_v38 = vpop.f32.mrf.mxu0 }
  0xcf   :  { %4992 = vpow2.f32 %v4141_v19  ;;  %v4140_v21 = vmul.f32 -1.442695, %v248_v20  ;;  %v4137_v39 = vmul.f32 -1.442695, %v158_v36  ;;  %v157_v40 = vadd.f32 %v148_v38, %v73_v37 }
  0xd1   :  { %4994 = vpow2.f32 %v4140_v21  ;;  %v4136_v41 = vmul.f32 -1.442695, %v157_v40  ;;  %v52_v21 = vld [vmem:[%s6683_s5 + $0x8] sm:$0xff] }
  0xdc   :  { %v4993_v22 = vpop.eup %4992 }
  0xdd   :  { %v257_v23 = vadd.f32 1.0, %v4993_v22  ;;  %v4153_v22 = vld [vmem:[%s6678_s1 + $0x18] sm:$0xff] }
  0xde   :  { %v4995_v24 = vpop.eup %4994 }
  0xdf   :  { %v256_v25 = vadd.f32 1.0, %v4995_v24  ;;  %4996 = vrcp.f32 %v257_v23  ;;  %v4152_v24 = vld [vmem:[%s6678_s1 + $0x10] sm:$0xff] }
  0xe1   :  { %4998 = vrcp.f32 %v256_v25 }
  0xe2   :  { %5000 = vpow2.f32 %v4137_v39 }
  0xe3   :  { %5002 = vpow2.f32 %v4136_v41 }
  0xec   :  { %v4997_v26 = vpop.eup %4996 }
  0xed   :  { %v265_v29 = vmul.f32 %v4997_v26, %v5443_v5 }
  0xee   :  { %v4999_v27 = vpop.eup %4998 }
  0xef   :  { %v264_v28 = vmul.f32 %v4999_v27, %v5419_v2  ;;  %v5001_v42 = vpop.eup %5000 }
  0xf0   :  { %v166_v43 = vadd.f32 1.0, %v5001_v42  ;;  %v5003_v44 = vpop.eup %5002 }
  0xf1   :  { %4589 = vmatprep.mubr.msk.f32.mxu0 %vm75_vm0, %v264_v28  ;;  %v165_v45 = vadd.f32 1.0, %v5003_v44  ;;  %v5657_v44 = vld [vmem:[%s6684_s6 + $0x8] sm:$0xff] }
  0xf2   :  { %4590 = vmatmul.mubr.msk.f32.vlgmr.msra.gmra.mxu0 %vm75_vm0, %v265_v29  ;;  %5004 = vrcp.f32 %v166_v43  ;;  %v5652_v43 = vld [vmem:[%s6684_s6] sm:$0xff]  ;;  %vm56_vm2 = vcmp.gt.f32.partialorder %v5657_v44, 0.0 }
  0xf3   :  { %4604 = vmatpush3.msra.mxu0 %v5452_v6  ;;  %5006 = vrcp.f32 %v165_v45  ;;  %vm55_vm1 = vcmp.gt.f32.partialorder %v5652_v43, 0.0 }
  0xf4   :  { %4605 = vmatprep.subr.mxu0 %v5459_v7 }
  0xf5   :  { %4606 = vmatpush3.msra.mxu0 %v5459_v7 }
  0xf6   :  { %4607 = vmatprep.subr.mxu0 %v5466_v8 }
  0xf7   :  { %4608 = vmatpush3.msra.mxu0 %v5466_v8 }
  0xf8   :  { %4609 = vmatprep.subr.mxu0 %v5473_v9 }
  0xf9   :  { %4610 = vmatpush3.msra.mxu0 %v5473_v9 }
  0xfa   :  { %4625 = vmatprep.subr.mxu0 %v5482_v10 }
  0xff   :  { %v5005_v52 = vpop.eup %5004 }
 0x100   :  { %v352_v53 = vsub.f32 1.0, %v5005_v52  ;;  %v5007_v54 = vpop.eup %5006  ;;  %v356_v57 = vmul.f32 %v5005_v52, %v5443_v5 }
 0x101   :  { %v351_v58 = vsub.f32 1.0, %v5007_v54  ;;  %v355_v62 = vmul.f32 %v5007_v54, %v5419_v2  ;;  %v5324_v2 = vmov 0  }
 0x102   :  { %4990 = vset.pattern.permute.xlu0 %v5324_v2  ;;  %4991 = vset.pattern.permute.xlu1 %v5324_v2 }
 0x1b2   :  { %v4591_v47 = vpop.f32.mrf.mxu0 }
 0x1b3   :  { %v348_v49 = vadd.f32 %v4591_v47, %v263_v46 }
 0x1b4   :  { %v338_v50 = vpop.f32.mrf.mxu0 }
 0x1b5   :  { %5008 = vtanh.f32 %v348_v49  ;;  %v347_v51 = vadd.f32 %v338_v50, %v262_v48 }
 0x1b7   :  { %5010 = vtanh.f32 %v347_v51 }
 0x1c2   :  { %v5009_v55 = vpop.eup %5008 }
 0x1c3   :  { %v354_v56 = vmul.f32 %v5009_v55, %v352_v53 }
 0x1c4   :  { %v5011_v59 = vpop.eup %5010 }
 0x1c5   :  { %v5568_v60 = vadd.f32 %v356_v57, %v354_v56  ;;  %v353_v61 = vmul.f32 %v5011_v59, %v351_v58 }
 0x1c7   :  { %499 = vst.msk [vmem:[#allocation2 + $0x8] sm:$0xff] %vm75_vm0, %v5568_v60  ;;  %v5573_v63 = vadd.f32 %v355_v62, %v353_v61 }
 0x1c9   :  { %498 = vst.msk [vmem:[#allocation2] sm:$0xff] %vm75_vm0, %v5573_v63  ;;  %4600 = vmatprep.mubr.msk.f32.mxu1 %vm75_vm0, %v5573_v63  ;;  %4611 = vmatprep.mubr.msk.f32.mxu0 %vm75_vm0, %v5573_v63 }
 0x1ca   :  { %4601 = vmatmul.mubr.msk.f32.vlgmr.msra.gmra.mxu1 %vm75_vm0, %v5568_v60  ;;  %4612 = vmatmul.mubr.msk.f32.vlgmr.msra.gmra.mxu0 %vm75_vm0, %v5568_v60 }
 0x1cb   :  { %4615 = vmatpush3.msra.mxu1 %v5408_v0  ;;  %4622 = vmatprep.mubr.msk.f32.mxu1 %vm75_vm0, %v5573_v63 }
 0x1cc   :  { %4616 = vmatprep.subr.mxu1 %v5413_v1  ;;  %4626 = vmatpush3.msra.mxu0 %v5482_v10 }
 0x1cd   :  { %4617 = vmatpush3.msra.mxu1 %v5413_v1  ;;  %4627 = vmatprep.subr.mxu0 %v5487_v11 }
 0x1ce   :  { %4618 = vmatprep.subr.mxu1 %v5425_v3  ;;  %4628 = vmatpush3.msra.mxu0 %v5487_v11 }
 0x1cf   :  { %4619 = vmatpush3.msra.mxu1 %v5425_v3  ;;  %4629 = vmatprep.subr.mxu0 %v5494_v12 }
 0x1d0   :  { %4620 = vmatprep.subr.mxu1 %v5436_v4  ;;  %4630 = vmatpush3.msra.mxu0 %v5494_v12 }
 0x1d1   :  { %4621 = vmatpush3.msra.mxu1 %v5436_v4  ;;  %4631 = vmatprep.subr.mxu0 %v5501_v13 }
 0x1d2   :  { %4623 = vmatmul.mubr.msk.f32.vlgmr.msra.gmra.mxu1 %vm75_vm0, %v5568_v60  ;;  %4632 = vmatpush3.msra.mxu0 %v5501_v13 }
 0x1d3   :  { %4636 = vmatprep.subr.mxu1 %v5529_v30  ;;  %4647 = vmatprep.subr.mxu0 %v5452_v6 }
 0x1d4   :  { %4637 = vmatpush3.msra.mxu1 %v5529_v30 }
 0x1d5   :  { %4638 = vmatprep.subr.mxu1 %v5536_v31 }
 0x1d6   :  { %4639 = vmatpush3.msra.mxu1 %v5536_v31 }
 0x1d7   :  { %4640 = vmatprep.subr.mxu1 %v5543_v32 }
 0x1d8   :  { %4641 = vmatpush3.msra.mxu1 %v5543_v32 }
 0x1d9   :  { %4642 = vmatprep.subr.mxu1 %v5550_v33 }
 0x1da   :  { %4643 = vmatpush3.msra.mxu1 %v5550_v33 }
 0x1db   :  { %4658 = vmatprep.subr.mxu1 %v5408_v0 }
 0x28a   :  { %v4602_v5 = vpop.f32.mrf.mxu1 }
 0x28b   :  { %v443_v19 = vadd.f32 %v4602_v5, %v360_v15 }
 0x28c   :  { %v433_v16 = vpop.f32.mrf.mxu1 }
 0x28d   :  { %v442_v18 = vadd.f32 %v433_v16, %v359_v14  ;;  %v5634_v25 = vadd.f32 %v443_v19, %v52_v21 }
 0x28f   :  { %v5622_v20 = vadd.f32 %v442_v18, %v51_v17 }
 0x291   :  { %448 = vperm.xlu0 %4990, %v5622_v20  }
 0x292   :  { %v4624_v23 = vpop.f32.mrf.mxu1 }
 0x293   :  { %v689_v26 = vadd.f32 %v4624_v23, %v4153_v22 }
 0x294   :  { %v679_v27 = vpop.f32.mrf.mxu1 }
 0x295   :  { %v4157_v28 = vmul.f32 -1.442695, %v689_v26  ;;  %v688_v29 = vadd.f32 %v4152_v24, %v679_v27  ;;  %453 = vperm.xlu0 %4990, %v5634_v25  }
 0x297   :  { %5012 = vpow2.f32 %v4157_v28  ;;  %v4156_v34 = vmul.f32 -1.442695, %v688_v29 }
 0x299   :  { %5014 = vpow2.f32 %v4156_v34 }
 0x2a4   :  { %v5013_v35 = vpop.eup %5012 }
 0x2a5   :  { %v697_v36 = vadd.f32 1.0, %v5013_v35  ;;  %v4613_v35 = vpop.f32.mrf.mxu0 }
 0x2a6   :  { %v5015_v37 = vpop.eup %5014 }
 0x2a7   :  { %v696_v38 = vadd.f32 1.0, %v5015_v37  ;;  %5016 = vrcp.f32 %v697_v36 }
 0x2a9   :  { %5018 = vrcp.f32 %v696_v38  ;;  %v4147_v38 = vld [vmem:[%s6680_s0 + $0x18] sm:$0xff] }
 0x2b4   :  { %v5017_v39 = vpop.eup %5016 }
 0x2b5   :  { %v706_v42 = vmul.f32 %v5017_v39, %v5568_v60  ;;  %v4146_v39 = vld [vmem:[%s6680_s0 + $0x10] sm:$0xff] }
 0x2b6   :  { %v5019_v40 = vpop.eup %5018 }
 0x2b7   :  { %v705_v41 = vmul.f32 %v5019_v40, %v5573_v63  ;;  %v587_v40 = vpop.f32.mrf.mxu0 }
 0x2b9   :  { %4633 = vmatprep.mubr.msk.f32.mxu0 %vm75_vm0, %v705_v41 }
 0x2ba   :  { %4634 = vmatmul.mubr.msk.f32.vlgmr.msra.gmra.mxu0 %vm75_vm0, %v706_v42  ;;  %v597_v42 = vadd.f32 %v4613_v35, %v4147_v38  ;;  %v4173_v38 = vld [vmem:[%s6678_s1 + $0x28] sm:$0xff] }
 0x2bb   :  { %4648 = vmatpush3.msra.mxu0 %v5452_v6 }
 0x2bc   :  { %4649 = vmatprep.subr.mxu0 %v5459_v7 }
 0x2bd   :  { %4650 = vmatpush3.msra.mxu0 %v5459_v7 }
 0x2be   :  { %4651 = vmatprep.subr.mxu0 %v5466_v8 }
 0x2bf   :  { %4652 = vmatpush3.msra.mxu0 %v5466_v8 }
 0x2c0   :  { %4653 = vmatprep.subr.mxu0 %v5473_v9 }
 0x2c1   :  { %4654 = vmatpush3.msra.mxu0 %v5473_v9 }
 0x2c2   :  { %4669 = vmatprep.subr.mxu0 %v5482_v10 }
 0x30c   :  { %v449_v45 = vpop.permute.xlu0 %448 }
 0x30d   :  { %v456_v46 = vsel %vm55_vm1, %v449_v45, -inf }
 0x30e   :  { %v459_v49 = vsel %vm458_vm3, %v456_v46, -inf  ;;  %v4151_v46 = vmul.f32 -1.442695, %v597_v42 }
 0x310   :  { %v454_v47 = vpop.permute.xlu0 %453 }
 0x311   :  { %v457_v48 = vsel %vm56_vm2, %v454_v47, -inf }
 0x312   :  { %v460_v50 = vsel %vm458_vm3, %v457_v48, -inf }
 0x313   :  { %v461_v51 = vmax.f32 %v459_v49, %v460_v50 }
 0x315   :  { %v462_v52 = vrot.slane %v461_v51, 4 }
 0x317   :  { %v463_v53 = vmax.f32 %v461_v51, %v462_v52  ;;  %v4159_v52 = vld [vmem:[%s6681_s2 + $0x18] sm:$0xff] }
 0x319   :  { %v464_v54 = vrot.slane %v463_v53, 2 }
 0x31b   :  { %v465_v55 = vmax.f32 %v463_v53, %v464_v54  ;;  %v4158_v54 = vld [vmem:[%s6681_s2 + $0x10] sm:$0xff] }
 0x31d   :  { %v466_v56 = vrot.slane %v465_v55, 1 }
 0x31f   :  { %v467_v57 = vmax.f32 %v465_v55, %v466_v56 }
 0x321   :  { %v468_v58 = vsub.f32 %v449_v45, %v467_v57  ;;  %v469_v59 = vsub.f32 %v454_v47, %v467_v57  ;;  %v596_v45 = vadd.f32 %v4146_v39, %v587_v40 }
 0x323   :  { %v470_v61 = vmul.f32 1.442695, %v468_v58  ;;  %v472_v62 = vmul.f32 1.442695, %v469_v59  ;;  %v4150_v47 = vmul.f32 -1.442695, %v596_v45 }
 0x325   :  { %5020 = vpow2.f32 %v470_v61 }
 0x326   :  { %5022 = vpow2.f32 %v472_v62 }
 0x332   :  { %v5021_v2 = vpop.eup %5020 }
 0x333   :  { %v5023_v5 = vpop.eup %5022  ;;  %v474_v14 = vsel %vm55_vm1, %v5021_v2, 0.0 }
 0x334   :  { %v475_v15 = vsel %vm56_vm2, %v5023_v5, 0.0  ;;  %v476_v16 = vsel %vm458_vm3, %v474_v14, 0.0 }
 0x335   :  { %v477_v17 = vsel %vm458_vm3, %v475_v15, 0.0 }
 0x336   :  { %v478_v18 = vadd.f32 %v477_v17, %v476_v16 }
 0x338   :  { %v479_v19 = vrot.slane %v478_v18, 4 }
 0x33a   :  { %v480_v21 = vadd.f32 %v479_v19, %v478_v18 }
 0x33c   :  { %v481_v22 = vrot.slane %v480_v21, 2 }
 0x33e   :  { %v482_v23 = vadd.f32 %v481_v22, %v480_v21 }
 0x340   :  { %v483_v24 = vrot.slane %v482_v23, 1 }
 0x342   :  { %v484_v26 = vadd.f32 %v483_v24, %v482_v23  ;;  %v4163_v23 = vld [vmem:[%s6682_s3 + $0x18] sm:$0xff] }
 0x344   :  { %5024 = vlog2.f32 %v484_v26  ;;  %v4162_v26 = vld [vmem:[%s6682_s3 + $0x10] sm:$0xff] }
 0x345   :  { %5026 = vpow2.f32 %v4151_v46 }
 0x346   :  { %5028 = vpow2.f32 %v4150_v47 }
 0x351   :  { %v5025_v27 = vpop.eup %5024 }
 0x352   :  { %v486_v28 = vmul.f32 0.6931472, %v5025_v27  ;;  %v5027_v48 = vpop.eup %5026 }
 0x353   :  { %v5029_v49 = vpop.eup %5028  ;;  %v605_v50 = vadd.f32 1.0, %v5027_v48 }
 0x354   :  { %v487_v29 = vadd.f32 %v486_v28, %v467_v57  ;;  %v604_v51 = vadd.f32 1.0, %v5029_v49 }
 0x355   :  { %5030 = vrcp.f32 %v605_v50 }
 0x356   :  { %v488_v34 = vmul.f32 %v487_v29, %v5652_v43  ;;  %v489_v37 = vmul.f32 %v487_v29, %v5657_v44  ;;  %5032 = vrcp.f32 %v604_v51 }
 0x358   :  { %v490_v36 = vsel %vm458_vm3, %v488_v34, 0.0  ;;  %v493_v41 = vsel %vm458_vm3, %v489_v37, 0.0 }
 0x359   :  { %491 = vadd.xlane.f32.xlu1 %v490_v36 }
 0x35d   :  { %494 = vadd.xlane.f32.xlu1 %v493_v41 }
 0x362   :  { %v5031_v58 = vpop.eup %5030 }
 0x363   :  { %v5033_v59 = vpop.eup %5032  ;;  %v793_v61 = vsub.f32 1.0, %v5031_v58  ;;  %v797_v5 = vmul.f32 %v5031_v58, %v5568_v60 }
 0x364   :  { %v792_v14 = vsub.f32 1.0, %v5033_v59  ;;  %v796_v18 = vmul.f32 %v5033_v59, %v5573_v63 }
 0x37a   :  { %v4635_v53 = vpop.f32.mrf.mxu0 }
 0x37b   :  { %v789_v55 = vadd.f32 %v4635_v53, %v4159_v52 }
 0x37c   :  { %v779_v56 = vpop.f32.mrf.mxu0 }
 0x37d   :  { %5034 = vtanh.f32 %v789_v55  ;;  %v788_v57 = vadd.f32 %v4158_v54, %v779_v56 }
 0x37f   :  { %5036 = vtanh.f32 %v788_v57 }
 0x38a   :  { %v5035_v62 = vpop.eup %5034 }
 0x38b   :  { %v795_v2 = vmul.f32 %v5035_v62, %v793_v61 }
 0x38c   :  { %v5037_v15 = vpop.eup %5036 }
 0x38d   :  { %v5690_v16 = vadd.f32 %v797_v5, %v795_v2  ;;  %v794_v17 = vmul.f32 %v5037_v15, %v792_v14 }
 0x38f   :  { %940 = vst.msk [vmem:[#allocation2 + $0x18] sm:$0xff] %vm75_vm0, %v5690_v16  ;;  %v5695_v19 = vadd.f32 %v796_v18, %v794_v17 }
 0x391   :  { %939 = vst.msk [vmem:[#allocation2 + $0x10] sm:$0xff] %vm75_vm0, %v5695_v19  ;;  %4644 = vmatprep.mubr.msk.f32.mxu1 %vm75_vm0, %v5695_v19  ;;  %4655 = vmatprep.mubr.msk.f32.mxu0 %vm75_vm0, %v5695_v19 }
 0x392   :  { %4645 = vmatmul.mubr.msk.f32.vlgmr.msra.gmra.mxu1 %vm75_vm0, %v5690_v16  ;;  %4656 = vmatmul.mubr.msk.f32.vlgmr.msra.gmra.mxu0 %vm75_vm0, %v5690_v16 }
 0x393   :  { %4659 = vmatpush3.msra.mxu1 %v5408_v0  ;;  %4666 = vmatprep.mubr.msk.f32.mxu1 %vm75_vm0, %v5695_v19 }
 0x394   :  { %4660 = vmatprep.subr.mxu1 %v5413_v1  ;;  %4670 = vmatpush3.msra.mxu0 %v5482_v10 }
 0x395   :  { %4661 = vmatpush3.msra.mxu1 %v5413_v1  ;;  %4671 = vmatprep.subr.mxu0 %v5487_v11 }
 0x396   :  { %4662 = vmatprep.subr.mxu1 %v5425_v3  ;;  %4672 = vmatpush3.msra.mxu0 %v5487_v11 }
 0x397   :  { %4663 = vmatpush3.msra.mxu1 %v5425_v3  ;;  %4673 = vmatprep.subr.mxu0 %v5494_v12 }
 0x398   :  { %4664 = vmatprep.subr.mxu1 %v5436_v4  ;;  %4674 = vmatpush3.msra.mxu0 %v5494_v12 }
 0x399   :  { %4665 = vmatpush3.msra.mxu1 %v5436_v4  ;;  %4675 = vmatprep.subr.mxu0 %v5501_v13 }
 0x39a   :  { %4667 = vmatmul.mubr.msk.f32.vlgmr.msra.gmra.mxu1 %vm75_vm0, %v5690_v16  ;;  %4676 = vmatpush3.msra.mxu0 %v5501_v13 }
 0x39b   :  { %4680 = vmatprep.subr.mxu1 %v5529_v30  ;;  %4691 = vmatprep.subr.mxu0 %v5452_v6 }
 0x39c   :  { %4681 = vmatpush3.msra.mxu1 %v5529_v30 }
 0x39d   :  { %4682 = vmatprep.subr.mxu1 %v5536_v31 }
 0x39e   :  { %4683 = vmatpush3.msra.mxu1 %v5536_v31 }
 0x39f   :  { %4684 = vmatprep.subr.mxu1 %v5543_v32 }
 0x3a0   :  { %4685 = vmatpush3.msra.mxu1 %v5543_v32 }
 0x3a1   :  { %4686 = vmatprep.subr.mxu1 %v5550_v33 }
 0x3a2   :  { %4687 = vmatpush3.msra.mxu1 %v5550_v33 }
 0x3a3   :  { %4702 = vmatprep.subr.mxu1 %v5408_v0 }
 0x3e2   :  { %v492_v21 = vpop.xlane.xlu1 %491 }
 0x3e3   :  { %v5745_v34 = vsub.f32 %v5622_v20, %v492_v21  ;;  %v4172_v20 = vld [vmem:[%s6678_s1 + $0x20] sm:$0xff] }
 0x3e6   :  { %v495_v22 = vpop.xlane.xlu1 %494 }
 0x3e7   :  { %v5742_v27 = vsub.f32 %v5634_v25, %v495_v22 }
 0x452   :  { %v4646_v24 = vpop.f32.mrf.mxu1 }
 0x453   :  { %v885_v28 = vadd.f32 %v4646_v24, %v4163_v23 }
 0x454   :  { %v875_v29 = vpop.f32.mrf.mxu1 }
 0x455   :  { %v5748_v35 = vadd.f32 %v885_v28, %v5742_v27  ;;  %v884_v36 = vadd.f32 %v4162_v26, %v875_v29 }
 0x457   :  { %v5751_v37 = vadd.f32 %v884_v36, %v5745_v34  ;;  %895 = vperm.xlu1 %4991, %v5748_v35  }
 0x459   :  { %890 = vperm.xlu0 %4990, %v5751_v37  }
 0x45a   :  { %v4668_v25 = vpop.f32.mrf.mxu1 }
 0x45b   :  { %v1130_v39 = vadd.f32 %v4668_v25, %v4173_v38 }
 0x45c   :  { %v1120_v40 = vpop.f32.mrf.mxu1 }
 0x45d   :  { %v4177_v41 = vmul.f32 -1.442695, %v1130_v39  ;;  %v1129_v42 = vadd.f32 %v4172_v20, %v1120_v40 }
 0x45f   :  { %5038 = vpow2.f32 %v4177_v41  ;;  %v4176_v45 = vmul.f32 -1.442695, %v1129_v42 }
 0x461   :  { %5040 = vpow2.f32 %v4176_v45 }
 0x46c   :  { %v5039_v46 = vpop.eup %5038 }
 0x46d   :  { %v1138_v47 = vadd.f32 1.0, %v5039_v46 }
 0x46e   :  { %v5041_v48 = vpop.eup %5040 }
 0x46f   :  { %v1137_v49 = vadd.f32 1.0, %v5041_v48  ;;  %5042 = vrcp.f32 %v1138_v47 }
 0x471   :  { %5044 = vrcp.f32 %v1137_v49 }
 0x47c   :  { %v5043_v50 = vpop.eup %5042 }
 0x47d   :  { %v1147_v53 = vmul.f32 %v5043_v50, %v5690_v16 }
 0x47e   :  { %v5045_v51 = vpop.eup %5044 }
 0x47f   :  { %v1146_v52 = vmul.f32 %v5045_v51, %v5695_v19 }
 0x481   :  { %4677 = vmatprep.mubr.msk.f32.mxu0 %vm75_vm0, %v1146_v52 }
 0x482   :  { %4678 = vmatmul.mubr.msk.f32.vlgmr.msra.gmra.mxu0 %vm75_vm0, %v1147_v53  ;;  %v4657_v53 = vpop.f32.mrf.mxu0 }
 0x483   :  { %4692 = vmatpush3.msra.mxu0 %v5452_v6 }
 0x484   :  { %4693 = vmatprep.subr.mxu0 %v5459_v7 }
 0x485   :  { %4694 = vmatpush3.msra.mxu0 %v5459_v7 }
 0x486   :  { %4695 = vmatprep.subr.mxu0 %v5466_v8 }
 0x487   :  { %4696 = vmatpush3.msra.mxu0 %v5466_v8 }
 0x488   :  { %4697 = vmatprep.subr.mxu0 %v5473_v9 }
 0x489   :  { %4698 = vmatpush3.msra.mxu0 %v5473_v9 }
 0x48a   :  { %4713 = vmatprep.subr.mxu0 %v5482_v10 }
 0x4d2   :  { %v896_v54 = vpop.permute.xlu1 %895 }
 0x4d3   :  { %v899_v55 = vsel %vm56_vm2, %v896_v54, -inf }
 0x4d4   :  { %v891_v56 = vpop.permute.xlu0 %890  ;;  %v901_v58 = vsel %vm458_vm3, %v899_v55, -inf  ;;  %v4166_v55 = vld [vmem:[%s6680_s0 + $0x20] sm:$0xff] }
 0x4d5   :  { %v898_v57 = vsel %vm55_vm1, %v891_v56, -inf }
 0x4d6   :  { %v900_v59 = vsel %vm458_vm3, %v898_v57, -inf }
 0x4d7   :  { %v902_v61 = vmax.f32 %v900_v59, %v901_v58 }
 0x4d9   :  { %v903_v62 = vrot.slane %v902_v61, 4 }
 0x4db   :  { %v904_v2 = vmax.f32 %v902_v61, %v903_v62 }
 0x4dd   :  { %v905_v5 = vrot.slane %v904_v2, 2 }
 0x4df   :  { %v906_v14 = vmax.f32 %v904_v2, %v905_v5 }
 0x4e1   :  { %v907_v15 = vrot.slane %v906_v14, 1 }
 0x4e3   :  { %v908_v17 = vmax.f32 %v906_v14, %v907_v15  ;;  %v4179_v15 = vld [vmem:[%s6681_s2 + $0x28] sm:$0xff] }
 0x4e5   :  { %v909_v18 = vsub.f32 %v891_v56, %v908_v17  ;;  %v910_v21 = vsub.f32 %v896_v54, %v908_v17  ;;  %v4167_v54 = vld [vmem:[%s6680_s0 + $0x28] sm:$0xff]  ;;  %v1028_v56 = vpop.f32.mrf.mxu0 }
 0x4e6   :  { %v1038_v57 = vadd.f32 %v4657_v53, %v4167_v54  ;;  %v1037_v58 = vadd.f32 %v4166_v55, %v1028_v56 }
 0x4e7   :  { %v911_v22 = vmul.f32 1.442695, %v909_v18  ;;  %v913_v23 = vmul.f32 1.442695, %v910_v21  ;;  %v4178_v18 = vld [vmem:[%s6681_s2 + $0x20] sm:$0xff] }
 0x4e8   :  { %v4171_v59 = vmul.f32 -1.442695, %v1038_v57  ;;  %v4170_v61 = vmul.f32 -1.442695, %v1037_v58 }
 0x4e9   :  { %5046 = vpow2.f32 %v911_v22 }
 0x4ea   :  { %5048 = vpow2.f32 %v913_v23 }
 0x4f6   :  { %v5047_v24 = vpop.eup %5046 }
 0x4f7   :  { %v5049_v26 = vpop.eup %5048  ;;  %v915_v28 = vsel %vm55_vm1, %v5047_v24, 0.0 }
 0x4f8   :  { %v916_v29 = vsel %vm56_vm2, %v5049_v26, 0.0  ;;  %v917_v36 = vsel %vm458_vm3, %v915_v28, 0.0 }
 0x4f9   :  { %v918_v38 = vsel %vm458_vm3, %v916_v29, 0.0 }
 0x4fa   :  { %v919_v25 = vadd.f32 %v918_v38, %v917_v36 }
 0x4fc   :  { %v920_v20 = vrot.slane %v919_v25, 4 }
 0x4fe   :  { %v921_v39 = vadd.f32 %v920_v20, %v919_v25 }
 0x500   :  { %v922_v40 = vrot.slane %v921_v39, 2 }
 0x502   :  { %v923_v41 = vadd.f32 %v922_v40, %v921_v39 }
 0x504   :  { %v924_v42 = vrot.slane %v923_v41, 1 }
 0x506   :  { %v925_v45 = vadd.f32 %v924_v42, %v923_v41 }
 0x508   :  { %5050 = vlog2.f32 %v925_v45 }
 0x509   :  { %5052 = vpow2.f32 %v4171_v59 }
 0x50a   :  { %5054 = vpow2.f32 %v4170_v61 }
 0x515   :  { %v5051_v46 = vpop.eup %5050 }
 0x516   :  { %v927_v47 = vmul.f32 0.6931472, %v5051_v46  ;;  %v5053_v62 = vpop.eup %5052  ;;  %v4193_v46 = vld [vmem:[%s6678_s1 + $0x38] sm:$0xff] }
 0x517   :  { %v5055_v2 = vpop.eup %5054  ;;  %v1046_v5 = vadd.f32 1.0, %v5053_v62 }
 0x518   :  { %v928_v48 = vadd.f32 %v927_v47, %v908_v17  ;;  %v1045_v14 = vadd.f32 1.0, %v5055_v2 }
 0x519   :  { %5056 = vrcp.f32 %v1046_v5 }
 0x51a   :  { %v930_v49 = vmul.f32 %v928_v48, %v5657_v44  ;;  %v929_v50 = vmul.f32 %v928_v48, %v5652_v43  ;;  %5058 = vrcp.f32 %v1045_v14 }
 0x51c   :  { %v934_v51 = vsel %vm458_vm3, %v930_v49, 0.0  ;;  %v931_v52 = vsel %vm458_vm3, %v929_v50, 0.0 }
 0x51d   :  { %935 = vadd.xlane.f32.xlu1 %v934_v51  ;;  %932 = vadd.xlane.f32.xlu0 %v931_v52 }
 0x526   :  { %v5057_v24 = vpop.eup %5056 }
 0x527   :  { %v5059_v26 = vpop.eup %5058  ;;  %v1234_v28 = vsub.f32 1.0, %v5057_v24  ;;  %v1238_v38 = vmul.f32 %v5057_v24, %v5690_v16 }
 0x528   :  { %v1233_v25 = vsub.f32 1.0, %v5059_v26  ;;  %v1237_v41 = vmul.f32 %v5059_v26, %v5695_v19 }
 0x542   :  { %v4679_v17 = vpop.f32.mrf.mxu0 }
 0x543   :  { %v1230_v21 = vadd.f32 %v4679_v17, %v4179_v15 }
 0x544   :  { %v1220_v22 = vpop.f32.mrf.mxu0 }
 0x545   :  { %5060 = vtanh.f32 %v1230_v21  ;;  %v1229_v23 = vadd.f32 %v4178_v18, %v1220_v22 }
 0x547   :  { %5062 = vtanh.f32 %v1229_v23 }
 0x552   :  { %v5061_v29 = vpop.eup %5060 }
 0x553   :  { %v1236_v36 = vmul.f32 %v5061_v29, %v1234_v28 }
 0x554   :  { %v5063_v20 = vpop.eup %5062 }
 0x555   :  { %v5802_v39 = vadd.f32 %v1238_v38, %v1236_v36  ;;  %v1235_v40 = vmul.f32 %v5063_v20, %v1233_v25 }
 0x557   :  { %1381 = vst.msk [vmem:[#allocation2 + $0x28] sm:$0xff] %vm75_vm0, %v5802_v39  ;;  %v5807_v42 = vadd.f32 %v1237_v41, %v1235_v40 }
 0x559   :  { %1380 = vst.msk [vmem:[#allocation2 + $0x20] sm:$0xff] %vm75_vm0, %v5807_v42  ;;  %4688 = vmatprep.mubr.msk.f32.mxu1 %vm75_vm0, %v5807_v42  ;;  %4699 = vmatprep.mubr.msk.f32.mxu0 %vm75_vm0, %v5807_v42 }
 0x55a   :  { %4689 = vmatmul.mubr.msk.f32.vlgmr.msra.gmra.mxu1 %vm75_vm0, %v5802_v39  ;;  %4700 = vmatmul.mubr.msk.f32.vlgmr.msra.gmra.mxu0 %vm75_vm0, %v5802_v39 }
 0x55b   :  { %4703 = vmatpush3.msra.mxu1 %v5408_v0  ;;  %4710 = vmatprep.mubr.msk.f32.mxu1 %vm75_vm0, %v5807_v42 }
 0x55c   :  { %4704 = vmatprep.subr.mxu1 %v5413_v1  ;;  %4714 = vmatpush3.msra.mxu0 %v5482_v10 }
 0x55d   :  { %4705 = vmatpush3.msra.mxu1 %v5413_v1  ;;  %4715 = vmatprep.subr.mxu0 %v5487_v11 }
 0x55e   :  { %4706 = vmatprep.subr.mxu1 %v5425_v3  ;;  %4716 = vmatpush3.msra.mxu0 %v5487_v11 }
 0x55f   :  { %4707 = vmatpush3.msra.mxu1 %v5425_v3  ;;  %4717 = vmatprep.subr.mxu0 %v5494_v12  ;;  %v4183_v3 = vld [vmem:[%s6682_s3 + $0x28] sm:$0xff] }
 0x560   :  { %4708 = vmatprep.subr.mxu1 %v5436_v4  ;;  %4718 = vmatpush3.msra.mxu0 %v5494_v12  ;;  %v4182_v12 = vld [vmem:[%s6682_s3 + $0x20] sm:$0xff] }
 0x561   :  { %4709 = vmatpush3.msra.mxu1 %v5436_v4  ;;  %4719 = vmatprep.subr.mxu0 %v5501_v13 }
 0x562   :  { %4711 = vmatmul.mubr.msk.f32.vlgmr.msra.gmra.mxu1 %vm75_vm0, %v5802_v39  ;;  %4720 = vmatpush3.msra.mxu0 %v5501_v13 }
 0x563   :  { %4724 = vmatprep.subr.mxu1 %v5529_v30  ;;  %4735 = vmatprep.subr.mxu0 %v5452_v6 }
 0x564   :  { %4725 = vmatpush3.msra.mxu1 %v5529_v30 }
 0x565   :  { %4726 = vmatprep.subr.mxu1 %v5536_v31 }
 0x566   :  { %4727 = vmatpush3.msra.mxu1 %v5536_v31 }
 0x567   :  { %4728 = vmatprep.subr.mxu1 %v5543_v32 }
 0x568   :  { %4729 = vmatpush3.msra.mxu1 %v5543_v32 }
 0x569   :  { %4730 = vmatprep.subr.mxu1 %v5550_v33 }
 0x56a   :  { %4731 = vmatpush3.msra.mxu1 %v5550_v33 }
 0x56b   :  { %4746 = vmatprep.subr.mxu1 %v5408_v0 }
 0x5a6   :  { %v936_v1 = vpop.xlane.xlu1 %935  ;;  %v933_v4 = vpop.xlane.xlu0 %932 }
 0x5a7   :  { %v5854_v13 = vsub.f32 %v5748_v35, %v936_v1  ;;  %v5857_v32 = vsub.f32 %v5751_v37, %v933_v4  ;;  %v4192_v37 = vld [vmem:[%s6678_s1 + $0x30] sm:$0xff] }
 0x61a   :  { %v4690_v11 = vpop.f32.mrf.mxu1 }
 0x61b   :  { %v1326_v30 = vadd.f32 %v4690_v11, %v4183_v3 }
 0x61c   :  { %v1316_v31 = vpop.f32.mrf.mxu1 }
 0x61d   :  { %v5860_v0 = vadd.f32 %v1326_v30, %v5854_v13  ;;  %v1325_v33 = vadd.f32 %v4182_v12, %v1316_v31 }
 0x61f   :  { %v5863_v45 = vadd.f32 %v1325_v33, %v5857_v32  ;;  %1336 = vperm.xlu1 %4991, %v5860_v0  }
 0x621   :  { %1331 = vperm.xlu0 %4990, %v5863_v45  }
 0x622   :  { %v4712_v35 = vpop.f32.mrf.mxu1 }
 0x623   :  { %v1571_v47 = vadd.f32 %v4712_v35, %v4193_v46 }
 0x624   :  { %v1561_v48 = vpop.f32.mrf.mxu1 }
 0x625   :  { %v4197_v49 = vmul.f32 -1.442695, %v1571_v47  ;;  %v1570_v50 = vadd.f32 %v4192_v37, %v1561_v48  ;;  %v4701_v47 = vpop.f32.mrf.mxu0  ;;  %v4187_v48 = vld [vmem:[%s6680_s0 + $0x38] sm:$0xff] }
 0x627   :  { %5064 = vpow2.f32 %v4197_v49  ;;  %v4196_v51 = vmul.f32 -1.442695, %v1570_v50  ;;  %v4186_v49 = vld [vmem:[%s6680_s0 + $0x30] sm:$0xff]  ;;  %v1469_v50 = vpop.f32.mrf.mxu0 }
 0x629   :  { %5066 = vpow2.f32 %v4196_v51  ;;  %v1479_v51 = vadd.f32 %v4701_v47, %v4187_v48 }
 0x634   :  { %v5065_v52 = vpop.eup %5064 }
 0x635   :  { %v1579_v53 = vadd.f32 1.0, %v5065_v52  ;;  %v1478_v52 = vadd.f32 %v4186_v49, %v1469_v50 }
 0x636   :  { %v5067_v54 = vpop.eup %5066 }
 0x637   :  { %v1578_v55 = vadd.f32 1.0, %v5067_v54  ;;  %5068 = vrcp.f32 %v1579_v53  ;;  %v4191_v53 = vmul.f32 -1.442695, %v1479_v51  ;;  %v4190_v54 = vmul.f32 -1.442695, %v1478_v52  ;;  %v4213_v52 = vld [vmem:[%s6678_s1 + $0x48] sm:$0xff] }
 0x639   :  { %5070 = vrcp.f32 %v1578_v55 }
 0x644   :  { %v5069_v56 = vpop.eup %5068 }
 0x645   :  { %v1588_v59 = vmul.f32 %v5069_v56, %v5802_v39 }
 0x646   :  { %v5071_v57 = vpop.eup %5070 }
 0x647   :  { %v1587_v58 = vmul.f32 %v5071_v57, %v5807_v42 }
 0x649   :  { %4721 = vmatprep.mubr.msk.f32.mxu0 %vm75_vm0, %v1587_v58 }
 0x64a   :  { %4722 = vmatmul.mubr.msk.f32.vlgmr.msra.gmra.mxu0 %vm75_vm0, %v1588_v59  ;;  %v4199_v59 = vld [vmem:[%s6681_s2 + $0x38] sm:$0xff] }
 0x64b   :  { %4736 = vmatpush3.msra.mxu0 %v5452_v6 }
 0x64c   :  { %4737 = vmatprep.subr.mxu0 %v5459_v7 }
 0x64d   :  { %4738 = vmatpush3.msra.mxu0 %v5459_v7 }
 0x64e   :  { %4739 = vmatprep.subr.mxu0 %v5466_v8 }
 0x64f   :  { %4740 = vmatpush3.msra.mxu0 %v5466_v8 }
 0x650   :  { %4741 = vmatprep.subr.mxu0 %v5473_v9 }
 0x651   :  { %4742 = vmatpush3.msra.mxu0 %v5473_v9 }
 0x652   :  { %4757 = vmatprep.subr.mxu0 %v5482_v10 }
 0x69a   :  { %v1337_v61 = vpop.permute.xlu1 %1336 }
 0x69b   :  { %v1340_v62 = vsel %vm56_vm2, %v1337_v61, -inf }
 0x69c   :  { %v1332_v2 = vpop.permute.xlu0 %1331  ;;  %v1342_v7 = vsel %vm458_vm3, %v1340_v62, -inf  ;;  %v4198_v62 = vld [vmem:[%s6681_s2 + $0x30] sm:$0xff] }
 0x69d   :  { %v1339_v6 = vsel %vm55_vm1, %v1332_v2, -inf }
 0x69e   :  { %v1341_v5 = vsel %vm458_vm3, %v1339_v6, -inf }
 0x69f   :  { %v1343_v14 = vmax.f32 %v1341_v5, %v1342_v7 }
 0x6a1   :  { %v1344_v8 = vrot.slane %v1343_v14, 4 }
 0x6a3   :  { %v1345_v15 = vmax.f32 %v1343_v14, %v1344_v8 }
 0x6a5   :  { %v1346_v17 = vrot.slane %v1345_v15, 2 }
 0x6a7   :  { %v1347_v18 = vmax.f32 %v1345_v15, %v1346_v17 }
 0x6a9   :  { %v1348_v9 = vrot.slane %v1347_v18, 1 }
 0x6ab   :  { %v1349_v21 = vmax.f32 %v1347_v18, %v1348_v9 }
 0x6ad   :  { %v1350_v10 = vsub.f32 %v1332_v2, %v1349_v21  ;;  %v1351_v22 = vsub.f32 %v1337_v61, %v1349_v21 }
 0x6af   :  { %v1352_v23 = vmul.f32 1.442695, %v1350_v10  ;;  %v1354_v24 = vmul.f32 1.442695, %v1351_v22 }
 0x6b1   :  { %5072 = vpow2.f32 %v1352_v23 }
 0x6b2   :  { %5074 = vpow2.f32 %v1354_v24 }
 0x6be   :  { %v5073_v26 = vpop.eup %5072 }
 0x6bf   :  { %v5075_v28 = vpop.eup %5074  ;;  %v1356_v29 = vsel %vm55_vm1, %v5073_v26, 0.0  ;;  %v5934_v26 = vld [vmem:[%s6674_s9 + $0x18] sm:$0xff] }
 0x6c0   :  { %v1357_v36 = vsel %vm56_vm2, %v5075_v28, 0.0  ;;  %v1358_v38 = vsel %vm458_vm3, %v1356_v29, 0.0  ;;  %v5942_v28 = vld [vmem:[%s6674_s9 + $0x10] sm:$0xff]  ;;  %v5948_v29 = vld [vmem:[%s6677_s10 + $0x18] sm:$0xff] }
 0x6c1   :  { %v1359_v25 = vsel %vm458_vm3, %v1357_v36, 0.0  ;;  %v5955_v36 = vld [vmem:[%s6677_s10 + $0x10] sm:$0xff] }
 0x6c2   :  { %v1360_v20 = vadd.f32 %v1359_v25, %v1358_v38  ;;  %v5961_v38 = vld [vmem:[%s6674_s9 + $0x8] sm:$0xff] }
 0x6c3   :  { %v5969_v25 = vld [vmem:[%s6677_s10 + $0x8] sm:$0xff] }
 0x6c4   :  { %v1361_v40 = vrot.slane %v1360_v20, 4 }
 0x6c6   :  { %v1362_v41 = vadd.f32 %v1361_v40, %v1360_v20  ;;  %v5975_v20 = vld [vmem:[%s6674_s9] sm:$0xff] }
 0x6c7   :  { %v5983_v40 = vld [vmem:[%s6677_s10] sm:$0xff] }
 0x6c8   :  { %v1363_v1 = vrot.slane %v1362_v41, 2 }
 0x6ca   :  { %v1364_v3 = vadd.f32 %v1363_v1, %v1362_v41  ;;  %v5992_v41 = vld [vmem:[%s6679_s11 + $0x18] sm:$0xff] }
 0x6cb   :  { %v5998_v1 = vld [vmem:[%s6676_s8 + $0x18] sm:$0xff] }
 0x6cc   :  { %v1365_v4 = vrot.slane %v1364_v3, 1 }
 0x6ce   :  { %v1366_v11 = vadd.f32 %v1365_v4, %v1364_v3  ;;  %v6005_v3 = vld [vmem:[%s6679_s11 + $0x10] sm:$0xff]  ;;  %v6012_v4 = vld [vmem:[%s6679_s11 + $0x8] sm:$0xff] }
 0x6d0   :  { %5076 = vlog2.f32 %v1366_v11  ;;  %v6019_v11 = vld [vmem:[%s6679_s11] sm:$0xff] }
 0x6d1   :  { %5078 = vpow2.f32 %v4191_v53 }
 0x6d2   :  { %5080 = vpow2.f32 %v4190_v54 }
 0x6dd   :  { %v5077_v12 = vpop.eup %5076 }
 0x6de   :  { %v1368_v30 = vmul.f32 0.6931472, %v5077_v12  ;;  %v5079_v55 = vpop.eup %5078 }
 0x6df   :  { %v5081_v56 = vpop.eup %5080  ;;  %v1487_v57 = vadd.f32 1.0, %v5079_v55 }
 0x6e0   :  { %v1369_v31 = vadd.f32 %v1368_v30, %v1349_v21  ;;  %v1486_v58 = vadd.f32 1.0, %v5081_v56  ;;  %v4203_v30 = vld [vmem:[%s6682_s3 + $0x38] sm:$0xff] }
 0x6e1   :  { %5082 = vrcp.f32 %v1487_v57 }
 0x6e2   :  { %v1371_v33 = vmul.f32 %v1369_v31, %v5657_v44  ;;  %v1370_v46 = vmul.f32 %v1369_v31, %v5652_v43  ;;  %5084 = vrcp.f32 %v1486_v58 }
 0x6e4   :  { %v1375_v35 = vsel %vm458_vm3, %v1371_v33, 0.0  ;;  %v1372_v37 = vsel %vm458_vm3, %v1370_v46, 0.0  ;;  %v4202_v46 = vld [vmem:[%s6682_s3 + $0x30] sm:$0xff] }
 0x6e5   :  { %1376 = vadd.xlane.f32.xlu1 %v1375_v35  ;;  %1373 = vadd.xlane.f32.xlu0 %v1372_v37 }
 0x6ee   :  { %v5083_v5 = vpop.eup %5082 }
 0x6ef   :  { %v5085_v14 = vpop.eup %5084  ;;  %v1675_v8 = vsub.f32 1.0, %v5083_v5  ;;  %v1679_v18 = vmul.f32 %v5083_v5, %v5802_v39 }
 0x6f0   :  { %v1674_v9 = vsub.f32 1.0, %v5085_v14  ;;  %v1678_v23 = vmul.f32 %v5085_v14, %v5807_v42  ;;  %v6058_v14 = vld [vmem:[%s6676_s8 + $0x10] sm:$0xff] }
 0x70a   :  { %v4723_v61 = vpop.f32.mrf.mxu0 }
 0x70b   :  { %v1671_v2 = vadd.f32 %v4723_v61, %v4199_v59 }
 0x70c   :  { %v1661_v6 = vpop.f32.mrf.mxu0 }
 0x70d   :  { %5086 = vtanh.f32 %v1671_v2  ;;  %v1670_v7 = vadd.f32 %v4198_v62, %v1661_v6 }
 0x70f   :  { %5088 = vtanh.f32 %v1670_v7 }
 0x71a   :  { %v5087_v15 = vpop.eup %5086 }
 0x71b   :  { %v1677_v17 = vmul.f32 %v5087_v15, %v1675_v8  ;;  %v6065_v8 = vld [vmem:[%s6676_s8 + $0x8] sm:$0xff]  ;;  %v6072_v15 = vld [vmem:[%s6676_s8] sm:$0xff] }
 0x71c   :  { %v5089_v21 = vpop.eup %5088 }
 0x71d   :  { %v5914_v10 = vadd.f32 %v1679_v18, %v1677_v17  ;;  %v1676_v22 = vmul.f32 %v5089_v21, %v1674_v9 }
 0x71f   :  { %1822 = vst.msk [vmem:[#allocation2 + $0x38] sm:$0xff] %vm75_vm0, %v5914_v10  ;;  %v5919_v24 = vadd.f32 %v1678_v23, %v1676_v22 }
 0x721   :  { %1821 = vst.msk [vmem:[#allocation2 + $0x30] sm:$0xff] %vm75_vm0, %v5919_v24  ;;  %4732 = vmatprep.mubr.msk.f32.mxu1 %vm75_vm0, %v5919_v24  ;;  %4743 = vmatprep.mubr.msk.f32.mxu0 %vm75_vm0, %v5919_v24 }
 0x722   :  { %4733 = vmatmul.mubr.msk.f32.vlgmr.msra.gmra.mxu1 %vm75_vm0, %v5914_v10  ;;  %4744 = vmatmul.mubr.msk.f32.vlgmr.msra.gmra.mxu0 %vm75_vm0, %v5914_v10 }
 0x723   :  { %4747 = vmatpush3.msra.mxu1 %v5934_v26  ;;  %4754 = vmatprep.mubr.msk.f32.mxu1 %vm75_vm0, %v5919_v24 }
 0x724   :  { %4748 = vmatprep.subr.mxu1 %v5942_v28  ;;  %4758 = vmatpush3.msra.mxu0 %v5948_v29 }
 0x725   :  { %4749 = vmatpush3.msra.mxu1 %v5942_v28  ;;  %4759 = vmatprep.subr.mxu0 %v5955_v36 }
 0x726   :  { %4750 = vmatprep.subr.mxu1 %v5961_v38  ;;  %4760 = vmatpush3.msra.mxu0 %v5955_v36 }
 0x727   :  { %4751 = vmatpush3.msra.mxu1 %v5961_v38  ;;  %4761 = vmatprep.subr.mxu0 %v5969_v25 }
 0x728   :  { %4752 = vmatprep.subr.mxu1 %v5975_v20  ;;  %4762 = vmatpush3.msra.mxu0 %v5969_v25 }
 0x729   :  { %4753 = vmatpush3.msra.mxu1 %v5975_v20  ;;  %4763 = vmatprep.subr.mxu0 %v5983_v40 }
 0x72a   :  { %4755 = vmatmul.mubr.msk.f32.vlgmr.msra.gmra.mxu1 %vm75_vm0, %v5914_v10  ;;  %4764 = vmatpush3.msra.mxu0 %v5983_v40 }
 0x72b   :  { %4768 = vmatprep.subr.mxu1 %v5992_v41  ;;  %4779 = vmatprep.subr.mxu0 %v5998_v1 }
 0x72c   :  { %4769 = vmatpush3.msra.mxu1 %v5992_v41 }
 0x72d   :  { %4770 = vmatprep.subr.mxu1 %v6005_v3 }
 0x72e   :  { %4771 = vmatpush3.msra.mxu1 %v6005_v3 }
 0x72f   :  { %4772 = vmatprep.subr.mxu1 %v6012_v4 }
 0x730   :  { %4773 = vmatpush3.msra.mxu1 %v6012_v4 }
 0x731   :  { %4774 = vmatprep.subr.mxu1 %v6019_v11 }
 0x732   :  { %4775 = vmatpush3.msra.mxu1 %v6019_v11 }
 0x733   :  { %4790 = vmatprep.subr.mxu1 %v5934_v26 }
 0x76e   :  { %v1377_v12 = vpop.xlane.xlu1 %1376  ;;  %v1374_v31 = vpop.xlane.xlu0 %1373 }
 0x76f   :  { %v6031_v35 = vsub.f32 %v5860_v0, %v1377_v12  ;;  %v6034_v48 = vsub.f32 %v5863_v45, %v1374_v31  ;;  %v4212_v45 = vld [vmem:[%s6678_s1 + $0x40] sm:$0xff] }
 0x7e2   :  { %v4734_v33 = vpop.f32.mrf.mxu1 }
 0x7e3   :  { %v1767_v37 = vadd.f32 %v4734_v33, %v4203_v30 }
 0x7e4   :  { %v1757_v47 = vpop.f32.mrf.mxu1 }
 0x7e5   :  { %v6037_v49 = vadd.f32 %v1767_v37, %v6031_v35  ;;  %v1766_v50 = vadd.f32 %v4202_v46, %v1757_v47 }
 0x7e7   :  { %v6040_v51 = vadd.f32 %v1766_v50, %v6034_v48  ;;  %1777 = vperm.xlu1 %4991, %v6037_v49  }
 0x7e9   :  { %1772 = vperm.xlu0 %4990, %v6040_v51  }
 0x7ea   :  { %v4756_v0 = vpop.f32.mrf.mxu1 }
 0x7eb   :  { %v2012_v53 = vadd.f32 %v4756_v0, %v4213_v52 }
 0x7ec   :  { %v2002_v54 = vpop.f32.mrf.mxu1 }
 0x7ed   :  { %v4217_v55 = vmul.f32 -1.442695, %v2012_v53  ;;  %v2011_v56 = vadd.f32 %v4212_v45, %v2002_v54 }
 0x7ef   :  { %5090 = vpow2.f32 %v4217_v55  ;;  %v4216_v57 = vmul.f32 -1.442695, %v2011_v56 }
 0x7f1   :  { %5092 = vpow2.f32 %v4216_v57 }
 0x7fc   :  { %v5091_v58 = vpop.eup %5090 }
 0x7fd   :  { %v2020_v59 = vadd.f32 1.0, %v5091_v58 }
 0x7fe   :  { %v5093_v61 = vpop.eup %5092 }
 0x7ff   :  { %v2019_v62 = vadd.f32 1.0, %v5093_v61  ;;  %5094 = vrcp.f32 %v2020_v59 }
 0x801   :  { %5096 = vrcp.f32 %v2019_v62 }
 0x80c   :  { %v5095_v2 = vpop.eup %5094 }
 0x80d   :  { %v2029_v5 = vmul.f32 %v5095_v2, %v5914_v10 }
 0x80e   :  { %v5097_v6 = vpop.eup %5096 }
 0x80f   :  { %v2028_v7 = vmul.f32 %v5097_v6, %v5919_v24 }
 0x811   :  { %4765 = vmatprep.mubr.msk.f32.mxu0 %vm75_vm0, %v2028_v7 }
 0x812   :  { %4766 = vmatmul.mubr.msk.f32.vlgmr.msra.gmra.mxu0 %vm75_vm0, %v2029_v5 }
 0x813   :  { %4780 = vmatpush3.msra.mxu0 %v5998_v1 }
 0x814   :  { %4781 = vmatprep.subr.mxu0 %v6058_v14 }
 0x815   :  { %4782 = vmatpush3.msra.mxu0 %v6058_v14 }
 0x816   :  { %4783 = vmatprep.subr.mxu0 %v6065_v8 }
 0x817   :  { %4784 = vmatpush3.msra.mxu0 %v6065_v8 }
 0x818   :  { %4785 = vmatprep.subr.mxu0 %v6072_v15 }
 0x819   :  { %4786 = vmatpush3.msra.mxu0 %v6072_v15 }
 0x81a   :  { %4801 = vmatprep.subr.mxu0 %v5948_v29 }
 0x862   :  { %v1778_v17 = vpop.permute.xlu1 %1777 }
 0x863   :  { %v1781_v18 = vsel %vm56_vm2, %v1778_v17, -inf }
 0x864   :  { %v1773_v9 = vpop.permute.xlu0 %1772  ;;  %v1783_v22 = vsel %vm458_vm3, %v1781_v18, -inf }
 0x865   :  { %v1780_v21 = vsel %vm55_vm1, %v1773_v9, -inf }
 0x866   :  { %v1782_v23 = vsel %vm458_vm3, %v1780_v21, -inf }
 0x867   :  { %v1784_v12 = vmax.f32 %v1782_v23, %v1783_v22 }
 0x869   :  { %v1785_v30 = vrot.slane %v1784_v12, 4 }
 0x86b   :  { %v1786_v31 = vmax.f32 %v1784_v12, %v1785_v30  ;;  %v4745_v30 = vpop.f32.mrf.mxu0 }
 0x86d   :  { %v1787_v33 = vrot.slane %v1786_v31, 2 }
 0x86f   :  { %v1788_v46 = vmax.f32 %v1786_v31, %v1787_v33  ;;  %v4207_v31 = vld [vmem:[%s6680_s0 + $0x48] sm:$0xff]  ;;  %v4206_v33 = vld [vmem:[%s6680_s0 + $0x40] sm:$0xff] }
 0x871   :  { %v1789_v37 = vrot.slane %v1788_v46, 1 }
 0x873   :  { %v1790_v47 = vmax.f32 %v1788_v46, %v1789_v37  ;;  %v1910_v46 = vpop.f32.mrf.mxu0  ;;  %v1920_v37 = vadd.f32 %v4745_v30, %v4207_v31  ;;  %v4223_v31 = vld [vmem:[%s6682_s3 + $0x48] sm:$0xff] }
 0x875   :  { %v1791_v50 = vsub.f32 %v1773_v9, %v1790_v47  ;;  %v1792_v52 = vsub.f32 %v1778_v17, %v1790_v47 }
 0x877   :  { %v1793_v0 = vmul.f32 1.442695, %v1791_v50  ;;  %v1795_v45 = vmul.f32 1.442695, %v1792_v52  ;;  %v4211_v50 = vmul.f32 -1.442695, %v1920_v37 }
 0x878   :  { %v4222_v37 = vld [vmem:[%s6682_s3 + $0x40] sm:$0xff] }
 0x879   :  { %5098 = vpow2.f32 %v1793_v0 }
 0x87a   :  { %5100 = vpow2.f32 %v1795_v45 }
 0x886   :  { %v5099_v53 = vpop.eup %5098 }
 0x887   :  { %v5101_v54 = vpop.eup %5100  ;;  %v1797_v55 = vsel %vm55_vm1, %v5099_v53, 0.0 }
 0x888   :  { %v1798_v56 = vsel %vm56_vm2, %v5101_v54, 0.0  ;;  %v1799_v57 = vsel %vm458_vm3, %v1797_v55, 0.0  ;;  %v4219_v55 = vld [vmem:[%s6681_s2 + $0x48] sm:$0xff] }
 0x889   :  { %v1800_v58 = vsel %vm458_vm3, %v1798_v56, 0.0 }
 0x88a   :  { %v1801_v59 = vadd.f32 %v1800_v58, %v1799_v57  ;;  %v4218_v57 = vld [vmem:[%s6681_s2 + $0x40] sm:$0xff] }
 0x88c   :  { %v1802_v61 = vrot.slane %v1801_v59, 4 }
 0x88e   :  { %v1803_v62 = vadd.f32 %v1802_v61, %v1801_v59 }
 0x890   :  { %v1804_v2 = vrot.slane %v1803_v62, 2 }
 0x892   :  { %v1805_v6 = vadd.f32 %v1804_v2, %v1803_v62 }
 0x894   :  { %v1806_v7 = vrot.slane %v1805_v6, 1 }
 0x896   :  { %v1807_v5 = vadd.f32 %v1806_v7, %v1805_v6 }
 0x898   :  { %5102 = vlog2.f32 %v1807_v5 }
 0x899   :  { %5104 = vpow2.f32 %v4211_v50 }
 0x8a5   :  { %v5103_v17 = vpop.eup %5102 }
 0x8a6   :  { %v1809_v18 = vmul.f32 0.6931472, %v5103_v17  ;;  %v5105_v0 = vpop.eup %5104 }
 0x8a7   :  { %v1928_v53 = vadd.f32 1.0, %v5105_v0 }
 0x8a8   :  { %v1810_v9 = vadd.f32 %v1809_v18, %v1790_v47  ;;  %v1919_v47 = vadd.f32 %v4206_v33, %v1910_v46 }
 0x8aa   :  { %v1812_v21 = vmul.f32 %v1810_v9, %v5657_v44  ;;  %v1811_v22 = vmul.f32 %v1810_v9, %v5652_v43  ;;  %v4210_v52 = vmul.f32 -1.442695, %v1919_v47  ;;  %v5322_v43 = vld [vmem:[%s6684_s6 + $0x8] sm:$0xff] }
 0x8ac   :  { %v1816_v23 = vsel %vm458_vm3, %v1812_v21, 0.0  ;;  %v1813_v12 = vsel %vm458_vm3, %v1811_v22, 0.0  ;;  %5106 = vpow2.f32 %v4210_v52 }
 0x8ad   :  { %1817 = vadd.xlane.f32.xlu1 %v1816_v23  ;;  %1814 = vadd.xlane.f32.xlu0 %v1813_v12  ;;  %5108 = vrcp.f32 %v1928_v53 }
 0x8b9   :  { %v5107_v45 = vpop.eup %5106 }
 0x8ba   :  { %v1927_v54 = vadd.f32 1.0, %v5107_v45  ;;  %v5109_v62 = vpop.eup %5108 }
 0x8bb   :  { %v2116_v6 = vsub.f32 1.0, %v5109_v62  ;;  %v2120_v17 = vmul.f32 %v5109_v62, %v5914_v10 }
 0x8bc   :  { %5110 = vrcp.f32 %v1927_v54 }
 0x8c9   :  { %v5111_v2 = vpop.eup %5110 }
 0x8ca   :  { %v2115_v18 = vsub.f32 1.0, %v5111_v2  ;;  %v2119_v23 = vmul.f32 %v5111_v2, %v5919_v24 }
 0x8d2   :  { %v4767_v56 = vpop.f32.mrf.mxu0 }
 0x8d3   :  { %v2112_v58 = vadd.f32 %v4767_v56, %v4219_v55  ;;  %v4233_v55 = vld [vmem:[%s6678_s1 + $0x58] sm:$0xff] }
 0x8d4   :  { %v2102_v59 = vpop.f32.mrf.mxu0 }
 0x8d5   :  { %5112 = vtanh.f32 %v2112_v58  ;;  %v2111_v61 = vadd.f32 %v4218_v57, %v2102_v59 }
 0x8d7   :  { %5114 = vtanh.f32 %v2111_v61 }
 0x8e2   :  { %v5113_v7 = vpop.eup %5112 }
 0x8e3   :  { %v2118_v5 = vmul.f32 %v5113_v7, %v2116_v6 }
 0x8e4   :  { %v5115_v9 = vpop.eup %5114 }
 0x8e5   :  { %v6106_v21 = vadd.f32 %v2120_v17, %v2118_v5  ;;  %v2117_v22 = vmul.f32 %v5115_v9, %v2115_v18 }
 0x8e7   :  { %2263 = vst.msk [vmem:[#allocation2 + $0x48] sm:$0xff] %vm75_vm0, %v6106_v21  ;;  %v6111_v12 = vadd.f32 %v2119_v23, %v2117_v22 }
 0x8e9   :  { %2262 = vst.msk [vmem:[#allocation2 + $0x40] sm:$0xff] %vm75_vm0, %v6111_v12  ;;  %4776 = vmatprep.mubr.msk.f32.mxu1 %vm75_vm0, %v6111_v12  ;;  %4787 = vmatprep.mubr.msk.f32.mxu0 %vm75_vm0, %v6111_v12 }
 0x8ea   :  { %4777 = vmatmul.mubr.msk.f32.vlgmr.msra.gmra.mxu1 %vm75_vm0, %v6106_v21  ;;  %4788 = vmatmul.mubr.msk.f32.vlgmr.msra.gmra.mxu0 %vm75_vm0, %v6106_v21 }
 0x8eb   :  { %4791 = vmatpush3.msra.mxu1 %v5934_v26  ;;  %4798 = vmatprep.mubr.msk.f32.mxu1 %vm75_vm0, %v6111_v12 }
 0x8ec   :  { %4792 = vmatprep.subr.mxu1 %v5942_v28  ;;  %4802 = vmatpush3.msra.mxu0 %v5948_v29 }
 0x8ed   :  { %4793 = vmatpush3.msra.mxu1 %v5942_v28  ;;  %4803 = vmatprep.subr.mxu0 %v5955_v36 }
 0x8ee   :  { %4794 = vmatprep.subr.mxu1 %v5961_v38  ;;  %4804 = vmatpush3.msra.mxu0 %v5955_v36 }
 0x8ef   :  { %4795 = vmatpush3.msra.mxu1 %v5961_v38  ;;  %4805 = vmatprep.subr.mxu0 %v5969_v25 }
 0x8f0   :  { %4796 = vmatprep.subr.mxu1 %v5975_v20  ;;  %4806 = vmatpush3.msra.mxu0 %v5969_v25 }
 0x8f1   :  { %4797 = vmatpush3.msra.mxu1 %v5975_v20  ;;  %4807 = vmatprep.subr.mxu0 %v5983_v40 }
 0x8f2   :  { %4799 = vmatmul.mubr.msk.f32.vlgmr.msra.gmra.mxu1 %vm75_vm0, %v6106_v21  ;;  %4808 = vmatpush3.msra.mxu0 %v5983_v40 }
 0x8f3   :  { %4812 = vmatprep.subr.mxu1 %v5992_v41  ;;  %4823 = vmatprep.subr.mxu0 %v5998_v1 }
 0x8f4   :  { %4813 = vmatpush3.msra.mxu1 %v5992_v41 }
 0x8f5   :  { %4814 = vmatprep.subr.mxu1 %v6005_v3 }
 0x8f6   :  { %4815 = vmatpush3.msra.mxu1 %v6005_v3 }
 0x8f7   :  { %4816 = vmatprep.subr.mxu1 %v6012_v4 }
 0x8f8   :  { %4817 = vmatpush3.msra.mxu1 %v6012_v4 }
 0x8f9   :  { %4818 = vmatprep.subr.mxu1 %v6019_v11 }
 0x8fa   :  { %4819 = vmatpush3.msra.mxu1 %v6019_v11 }
 0x8fb   :  { %4834 = vmatprep.subr.mxu1 %v5934_v26 }
 0x936   :  { %v1818_v30 = vpop.xlane.xlu1 %1817  ;;  %v1815_v33 = vpop.xlane.xlu0 %1814 }
 0x937   :  { %v6158_v47 = vsub.f32 %v6037_v49, %v1818_v30  ;;  %v6161_v0 = vsub.f32 %v6040_v51, %v1815_v33  ;;  %v4232_v51 = vld [vmem:[%s6678_s1 + $0x50] sm:$0xff] }
 0x9aa   :  { %v4778_v46 = vpop.f32.mrf.mxu1 }
 0x9ab   :  { %v2208_v50 = vadd.f32 %v4778_v46, %v4223_v31 }
 0x9ac   :  { %v2198_v52 = vpop.f32.mrf.mxu1 }
 0x9ad   :  { %v6164_v45 = vadd.f32 %v2208_v50, %v6158_v47  ;;  %v2207_v53 = vadd.f32 %v4222_v37, %v2198_v52 }
 0x9af   :  { %v6167_v54 = vadd.f32 %v2207_v53, %v6161_v0  ;;  %2218 = vperm.xlu1 %4991, %v6164_v45  }
 0x9b1   :  { %2213 = vperm.xlu0 %4990, %v6167_v54  }
 0x9b2   :  { %v4800_v49 = vpop.f32.mrf.mxu1 }
 0x9b3   :  { %v2453_v56 = vadd.f32 %v4800_v49, %v4233_v55 }
 0x9b4   :  { %v2443_v57 = vpop.f32.mrf.mxu1 }
 0x9b5   :  { %v4237_v58 = vmul.f32 -1.442695, %v2453_v56  ;;  %v2452_v59 = vadd.f32 %v4232_v51, %v2443_v57 }
 0x9b7   :  { %5116 = vpow2.f32 %v4237_v58  ;;  %v4236_v61 = vmul.f32 -1.442695, %v2452_v59 }
 0x9b9   :  { %5118 = vpow2.f32 %v4236_v61 }
 0x9c4   :  { %v5117_v62 = vpop.eup %5116 }
 0x9c5   :  { %v2461_v2 = vadd.f32 1.0, %v5117_v62 }
 0x9c6   :  { %v5119_v6 = vpop.eup %5118 }
 0x9c7   :  { %v2460_v7 = vadd.f32 1.0, %v5119_v6  ;;  %5120 = vrcp.f32 %v2461_v2 }
 0x9c9   :  { %5122 = vrcp.f32 %v2460_v7 }
 0x9d4   :  { %v5121_v5 = vpop.eup %5120 }
 0x9d5   :  { %v2470_v9 = vmul.f32 %v5121_v5, %v6106_v21 }
 0x9d6   :  { %v5123_v17 = vpop.eup %5122 }
 0x9d7   :  { %v2469_v18 = vmul.f32 %v5123_v17, %v6111_v12 }
 0x9d9   :  { %4809 = vmatprep.mubr.msk.f32.mxu0 %vm75_vm0, %v2469_v18 }
 0x9da   :  { %4810 = vmatmul.mubr.msk.f32.vlgmr.msra.gmra.mxu0 %vm75_vm0, %v2470_v9 }
 0x9db   :  { %4824 = vmatpush3.msra.mxu0 %v5998_v1 }
 0x9dc   :  { %4825 = vmatprep.subr.mxu0 %v6058_v14 }
 0x9dd   :  { %4826 = vmatpush3.msra.mxu0 %v6058_v14 }
 0x9de   :  { %4827 = vmatprep.subr.mxu0 %v6065_v8 }
 0x9df   :  { %4828 = vmatpush3.msra.mxu0 %v6065_v8 }
 0x9e0   :  { %4829 = vmatprep.subr.mxu0 %v6072_v15 }
 0x9e1   :  { %4830 = vmatpush3.msra.mxu0 %v6072_v15 }
 0x9e2   :  { %4845 = vmatprep.subr.mxu0 %v5948_v29 }
 0xa2a   :  { %v2219_v22 = vpop.permute.xlu1 %2218 }
 0xa2b   :  { %v2222_v23 = vsel %vm56_vm2, %v2219_v22, -inf }
 0xa2c   :  { %v2214_v30 = vpop.permute.xlu0 %2213  ;;  %v2224_v33 = vsel %vm458_vm3, %v2222_v23, -inf }
 0xa2d   :  { %v2221_v31 = vsel %vm55_vm1, %v2214_v30, -inf }
 0xa2e   :  { %v2223_v46 = vsel %vm458_vm3, %v2221_v31, -inf }
 0xa2f   :  { %v2225_v37 = vmax.f32 %v2223_v46, %v2224_v33 }
 0xa31   :  { %v2226_v50 = vrot.slane %v2225_v37, 4 }
 0xa33   :  { %v2227_v52 = vmax.f32 %v2225_v37, %v2226_v50  ;;  %v6204_v50 = vld [vmem:[%s6684_s6 + $0x8] sm:$0xff] }
 0xa35   :  { %v2228_v53 = vrot.slane %v2227_v52, 2 }
 0xa37   :  { %v2229_v55 = vmax.f32 %v2227_v52, %v2228_v53  ;;  %v6210_v53 = vld [vmem:[%s6684_s6] sm:$0xff] }
 0xa39   :  { %v2230_v49 = vrot.slane %v2229_v55, 1 }
 0xa3b   :  { %v2231_v51 = vmax.f32 %v2229_v55, %v2230_v49 }
 0xa3d   :  { %v2232_v56 = vsub.f32 %v2214_v30, %v2231_v51  ;;  %v2233_v57 = vsub.f32 %v2219_v22, %v2231_v51 }
 0xa3f   :  { %v2234_v58 = vmul.f32 1.442695, %v2232_v56  ;;  %v2236_v59 = vmul.f32 1.442695, %v2233_v57  ;;  %v4227_v57 = vld [vmem:[%s6680_s0 + $0x58] sm:$0xff] }
 0xa41   :  { %5124 = vpow2.f32 %v2234_v58  ;;  %v4226_v58 = vld [vmem:[%s6680_s0 + $0x50] sm:$0xff] }
 0xa42   :  { %5126 = vpow2.f32 %v2236_v59 }
 0xa4e   :  { %v5125_v61 = vpop.eup %5124 }
 0xa4f   :  { %v5127_v62 = vpop.eup %5126  ;;  %v2238_v2 = vsel %vm55_vm1, %v5125_v61, 0.0 }
 0xa50   :  { %v2239_v6 = vsel %vm56_vm2, %v5127_v62, 0.0  ;;  %v2240_v7 = vsel %vm458_vm3, %v2238_v2, 0.0 }
 0xa51   :  { %v2241_v5 = vsel %vm458_vm3, %v2239_v6, 0.0 }
 0xa52   :  { %v2242_v17 = vadd.f32 %v2241_v5, %v2240_v7 }
 0xa54   :  { %v2243_v18 = vrot.slane %v2242_v17, 4 }
 0xa56   :  { %v2244_v9 = vadd.f32 %v2243_v18, %v2242_v17 }
 0xa58   :  { %v2245_v22 = vrot.slane %v2244_v9, 2 }
 0xa5a   :  { %v2246_v23 = vadd.f32 %v2245_v22, %v2244_v9  ;;  %v4239_v9 = vld [vmem:[%s6681_s2 + $0x58] sm:$0xff] }
 0xa5c   :  { %v2247_v30 = vrot.slane %v2246_v23, 1 }
 0xa5e   :  { %v2248_v31 = vadd.f32 %v2247_v30, %v2246_v23  ;;  %v4238_v23 = vld [vmem:[%s6681_s2 + $0x50] sm:$0xff] }
 0xa60   :  { %5128 = vlog2.f32 %v2248_v31 }
 0xa6d   :  { %v5129_v33 = vpop.eup %5128 }
 0xa6e   :  { %v2250_v46 = vmul.f32 0.6931472, %v5129_v33 }
 0xa70   :  { %v2251_v37 = vadd.f32 %v2250_v46, %v2231_v51  ;;  %v4789_v51 = vpop.f32.mrf.mxu0 }
 0xa71   :  { %v2361_v61 = vadd.f32 %v4789_v51, %v4227_v57 }
 0xa72   :  { %v2253_v52 = vmul.f32 %v6204_v50, %v2251_v37  ;;  %v2252_v55 = vmul.f32 %v6210_v53, %v2251_v37  ;;  %v2351_v59 = vpop.f32.mrf.mxu0 }
 0xa73   :  { %v2360_v62 = vadd.f32 %v4226_v58, %v2351_v59  ;;  %v4231_v2 = vmul.f32 -1.442695, %v2361_v61 }
 0xa74   :  { %v2257_v49 = vsel %vm458_vm3, %v2253_v52, 0.0  ;;  %v2254_v56 = vsel %vm458_vm3, %v2252_v55, 0.0 }
 0xa75   :  { %2258 = vadd.xlane.f32.xlu1 %v2257_v49  ;;  %2255 = vadd.xlane.f32.xlu0 %v2254_v56  ;;  %v4230_v6 = vmul.f32 -1.442695, %v2360_v62  ;;  %5130 = vpow2.f32 %v4231_v2 }
 0xa77   :  { %5132 = vpow2.f32 %v4230_v6  ;;  %v4243_v6 = vld [vmem:[%s6682_s3 + $0x58] sm:$0xff] }
 0xa82   :  { %v5131_v7 = vpop.eup %5130 }
 0xa83   :  { %v2369_v17 = vadd.f32 1.0, %v5131_v7 }
 0xa84   :  { %v5133_v5 = vpop.eup %5132 }
 0xa85   :  { %v2368_v18 = vadd.f32 1.0, %v5133_v5  ;;  %5134 = vrcp.f32 %v2369_v17  ;;  %v4242_v17 = vld [vmem:[%s6682_s3 + $0x50] sm:$0xff] }
 0xa87   :  { %5136 = vrcp.f32 %v2368_v18 }
 0xa92   :  { %v5135_v46 = vpop.eup %5134 }
 0xa93   :  { %v2557_v52 = vsub.f32 1.0, %v5135_v46  ;;  %v2561_v56 = vmul.f32 %v5135_v46, %v6106_v21  ;;  %v4253_v46 = vld [vmem:[%s6678_s1 + $0x68] sm:$0xff] }
 0xa94   :  { %v5137_v37 = vpop.eup %5136 }
 0xa95   :  { %v2556_v51 = vsub.f32 1.0, %v5137_v37  ;;  %v2560_v61 = vmul.f32 %v5137_v37, %v6111_v12 }
 0xa9a   :  { %v4811_v22 = vpop.f32.mrf.mxu0 }
 0xa9b   :  { %v2553_v30 = vadd.f32 %v4811_v22, %v4239_v9 }
 0xa9c   :  { %v2543_v31 = vpop.f32.mrf.mxu0 }
 0xa9d   :  { %5138 = vtanh.f32 %v2553_v30  ;;  %v2552_v33 = vadd.f32 %v4238_v23, %v2543_v31 }
 0xa9f   :  { %5140 = vtanh.f32 %v2552_v33 }
 0xaaa   :  { %v5139_v55 = vpop.eup %5138 }
 0xaab   :  { %v2559_v49 = vmul.f32 %v5139_v55, %v2557_v52 }
 0xaac   :  { %v5141_v57 = vpop.eup %5140 }
 0xaad   :  { %v6228_v58 = vadd.f32 %v2561_v56, %v2559_v49  ;;  %v2558_v59 = vmul.f32 %v5141_v57, %v2556_v51 }
 0xaaf   :  { %2704 = vst.msk [vmem:[#allocation2 + $0x58] sm:$0xff] %vm75_vm0, %v6228_v58  ;;  %v6233_v62 = vadd.f32 %v2560_v61, %v2558_v59 }
 0xab1   :  { %2703 = vst.msk [vmem:[#allocation2 + $0x50] sm:$0xff] %vm75_vm0, %v6233_v62  ;;  %4820 = vmatprep.mubr.msk.f32.mxu1 %vm75_vm0, %v6233_v62  ;;  %4831 = vmatprep.mubr.msk.f32.mxu0 %vm75_vm0, %v6233_v62 }
 0xab2   :  { %4821 = vmatmul.mubr.msk.f32.vlgmr.msra.gmra.mxu1 %vm75_vm0, %v6228_v58  ;;  %4832 = vmatmul.mubr.msk.f32.vlgmr.msra.gmra.mxu0 %vm75_vm0, %v6228_v58 }
 0xab3   :  { %4835 = vmatpush3.msra.mxu1 %v5934_v26  ;;  %4842 = vmatprep.mubr.msk.f32.mxu1 %vm75_vm0, %v6233_v62 }
 0xab4   :  { %4836 = vmatprep.subr.mxu1 %v5942_v28  ;;  %4846 = vmatpush3.msra.mxu0 %v5948_v29 }
 0xab5   :  { %4837 = vmatpush3.msra.mxu1 %v5942_v28  ;;  %4847 = vmatprep.subr.mxu0 %v5955_v36 }
 0xab6   :  { %4838 = vmatprep.subr.mxu1 %v5961_v38  ;;  %4848 = vmatpush3.msra.mxu0 %v5955_v36 }
 0xab7   :  { %4839 = vmatpush3.msra.mxu1 %v5961_v38  ;;  %4849 = vmatprep.subr.mxu0 %v5969_v25 }
 0xab8   :  { %4840 = vmatprep.subr.mxu1 %v5975_v20  ;;  %4850 = vmatpush3.msra.mxu0 %v5969_v25 }
 0xab9   :  { %4841 = vmatpush3.msra.mxu1 %v5975_v20  ;;  %4851 = vmatprep.subr.mxu0 %v5983_v40 }
 0xaba   :  { %4843 = vmatmul.mubr.msk.f32.vlgmr.msra.gmra.mxu1 %vm75_vm0, %v6228_v58  ;;  %4852 = vmatpush3.msra.mxu0 %v5983_v40 }
 0xabb   :  { %4856 = vmatprep.subr.mxu1 %v5992_v41  ;;  %4867 = vmatprep.subr.mxu0 %v5998_v1 }
 0xabc   :  { %4857 = vmatpush3.msra.mxu1 %v5992_v41 }
 0xabd   :  { %4858 = vmatprep.subr.mxu1 %v6005_v3 }
 0xabe   :  { %4859 = vmatpush3.msra.mxu1 %v6005_v3 }
 0xabf   :  { %4860 = vmatprep.subr.mxu1 %v6012_v4 }
 0xac0   :  { %4861 = vmatpush3.msra.mxu1 %v6012_v4 }
 0xac1   :  { %4862 = vmatprep.subr.mxu1 %v6019_v11 }
 0xac2   :  { %4863 = vmatpush3.msra.mxu1 %v6019_v11 }
 0xac3   :  { %4878 = vmatprep.subr.mxu1 %v5934_v26 }
 0xafe   :  { %v2259_v2 = vpop.xlane.xlu1 %2258  ;;  %v2256_v7 = vpop.xlane.xlu0 %2255 }
 0xaff   :  { %v6280_v18 = vsub.f32 %v6164_v45, %v2259_v2  ;;  %v6283_v23 = vsub.f32 %v6167_v54, %v2256_v7  ;;  %v4252_v54 = vld [vmem:[%s6678_s1 + $0x60] sm:$0xff] }
 0xb72   :  { %v4822_v5 = vpop.f32.mrf.mxu1 }
 0xb73   :  { %v2649_v9 = vadd.f32 %v4822_v5, %v4243_v6 }
 0xb74   :  { %v2639_v22 = vpop.f32.mrf.mxu1 }
 0xb75   :  { %v6286_v30 = vadd.f32 %v2649_v9, %v6280_v18  ;;  %v2648_v31 = vadd.f32 %v4242_v17, %v2639_v22 }
 0xb77   :  { %v6289_v33 = vadd.f32 %v2648_v31, %v6283_v23  ;;  %2659 = vperm.xlu1 %4991, %v6286_v30  }
 0xb79   :  { %2654 = vperm.xlu0 %4990, %v6289_v33  }
 0xb7a   :  { %v4844_v45 = vpop.f32.mrf.mxu1 }
 0xb7b   :  { %v2894_v37 = vadd.f32 %v4844_v45, %v4253_v46 }
 0xb7c   :  { %v2884_v52 = vpop.f32.mrf.mxu1 }
 0xb7d   :  { %v4257_v55 = vmul.f32 -1.442695, %v2894_v37  ;;  %v2893_v49 = vadd.f32 %v4252_v54, %v2884_v52 }
 0xb7f   :  { %5142 = vpow2.f32 %v4257_v55  ;;  %v4256_v56 = vmul.f32 -1.442695, %v2893_v49 }
 0xb81   :  { %5144 = vpow2.f32 %v4256_v56 }
 0xb8c   :  { %v5143_v51 = vpop.eup %5142 }
 0xb8d   :  { %v2902_v57 = vadd.f32 1.0, %v5143_v51 }
 0xb8e   :  { %v5145_v59 = vpop.eup %5144 }
 0xb8f   :  { %v2901_v61 = vadd.f32 1.0, %v5145_v59  ;;  %5146 = vrcp.f32 %v2902_v57 }
 0xb91   :  { %5148 = vrcp.f32 %v2901_v61 }
 0xb9c   :  { %v5147_v2 = vpop.eup %5146 }
 0xb9d   :  { %v2911_v5 = vmul.f32 %v5147_v2, %v6228_v58 }
 0xb9e   :  { %v5149_v6 = vpop.eup %5148 }
 0xb9f   :  { %v2910_v7 = vmul.f32 %v5149_v6, %v6233_v62 }
 0xba1   :  { %4853 = vmatprep.mubr.msk.f32.mxu0 %vm75_vm0, %v2910_v7 }
 0xba2   :  { %4854 = vmatmul.mubr.msk.f32.vlgmr.msra.gmra.mxu0 %vm75_vm0, %v2911_v5 }
 0xba3   :  { %4868 = vmatpush3.msra.mxu0 %v5998_v1 }
 0xba4   :  { %4869 = vmatprep.subr.mxu0 %v6058_v14 }
 0xba5   :  { %4870 = vmatpush3.msra.mxu0 %v6058_v14 }
 0xba6   :  { %4871 = vmatprep.subr.mxu0 %v6065_v8 }
 0xba7   :  { %4872 = vmatpush3.msra.mxu0 %v6065_v8 }
 0xba8   :  { %4873 = vmatprep.subr.mxu0 %v6072_v15 }
 0xba9   :  { %4874 = vmatpush3.msra.mxu0 %v6072_v15 }
 0xbaa   :  { %4889 = vmatprep.subr.mxu0 %v5948_v29 }
 0xbf2   :  { %v2660_v17 = vpop.permute.xlu1 %2659 }
 0xbf3   :  { %v2663_v9 = vsel %vm56_vm2, %v2660_v17, -inf }
 0xbf4   :  { %v2655_v22 = vpop.permute.xlu0 %2654  ;;  %v2665_v14 = vsel %vm458_vm3, %v2663_v9, -inf }
 0xbf5   :  { %v2662_v1 = vsel %vm55_vm1, %v2655_v22, -inf }
 0xbf6   :  { %v2664_v31 = vsel %vm458_vm3, %v2662_v1, -inf }
 0xbf7   :  { %v2666_v46 = vmax.f32 %v2664_v31, %v2665_v14 }
 0xbf9   :  { %v2667_v8 = vrot.slane %v2666_v46, 4 }
 0xbfb   :  { %v2668_v45 = vmax.f32 %v2666_v46, %v2667_v8 }
 0xbfd   :  { %v2669_v54 = vrot.slane %v2668_v45, 2 }
 0xbff   :  { %v2670_v37 = vmax.f32 %v2668_v45, %v2669_v54 }
 0xc01   :  { %v2671_v15 = vrot.slane %v2670_v37, 1 }
 0xc03   :  { %v2672_v52 = vmax.f32 %v2670_v37, %v2671_v15 }
 0xc05   :  { %v2673_v55 = vsub.f32 %v2655_v22, %v2672_v52  ;;  %v2674_v49 = vsub.f32 %v2660_v17, %v2672_v52 }
 0xc07   :  { %v2675_v56 = vmul.f32 1.442695, %v2673_v55  ;;  %v2677_v51 = vmul.f32 1.442695, %v2674_v49  ;;  %v4833_v49 = vpop.f32.mrf.mxu0 }
 0xc09   :  { %5150 = vpow2.f32 %v2675_v56  ;;  %v4247_v56 = vld [vmem:[%s6680_s0 + $0x68] sm:$0xff] }
 0xc0a   :  { %5152 = vpow2.f32 %v2677_v51  ;;  %v4246_v51 = vld [vmem:[%s6680_s0 + $0x60] sm:$0xff] }
 0xc16   :  { %v5151_v57 = vpop.eup %5150 }
 0xc17   :  { %v5153_v59 = vpop.eup %5152  ;;  %v2679_v61 = vsel %vm55_vm1, %v5151_v57, 0.0  ;;  %v2802_v57 = vadd.f32 %v4833_v49, %v4247_v56 }
 0xc18   :  { %v2680_v2 = vsel %vm56_vm2, %v5153_v59, 0.0  ;;  %v2681_v6 = vsel %vm458_vm3, %v2679_v61, 0.0 }
 0xc19   :  { %v2682_v7 = vsel %vm458_vm3, %v2680_v2, 0.0  ;;  %v4251_v61 = vmul.f32 -1.442695, %v2802_v57 }
 0xc1a   :  { %v2683_v5 = vadd.f32 %v2682_v7, %v2681_v6 }
 0xc1c   :  { %v2684_v9 = vrot.slane %v2683_v5, 4 }
 0xc1e   :  { %v2685_v22 = vadd.f32 %v2684_v9, %v2683_v5 }
 0xc20   :  { %v2686_v17 = vrot.slane %v2685_v22, 2 }
 0xc22   :  { %v2687_v1 = vadd.f32 %v2686_v17, %v2685_v22  ;;  %v4259_v22 = vld [vmem:[%s6681_s2 + $0x68] sm:$0xff] }
 0xc24   :  { %v2688_v14 = vrot.slane %v2687_v1, 1 }
 0xc26   :  { %v2689_v31 = vadd.f32 %v2688_v14, %v2687_v1  ;;  %v4258_v1 = vld [vmem:[%s6681_s2 + $0x60] sm:$0xff] }
 0xc28   :  { %5154 = vlog2.f32 %v2689_v31 }
 0xc29   :  { %5156 = vpow2.f32 %v4251_v61 }
 0xc35   :  { %v5155_v46 = vpop.eup %5154 }
 0xc36   :  { %v2691_v8 = vmul.f32 0.6931472, %v5155_v46  ;;  %v5157_v6 = vpop.eup %5156 }
 0xc37   :  { %v2810_v5 = vadd.f32 1.0, %v5157_v6 }
 0xc38   :  { %v2692_v45 = vadd.f32 %v2691_v8, %v2672_v52  ;;  %v2792_v52 = vpop.f32.mrf.mxu0 }
 0xc39   :  { %v2801_v59 = vadd.f32 %v4246_v51, %v2792_v52 }
 0xc3a   :  { %v2694_v54 = vmul.f32 %v6204_v50, %v2692_v45  ;;  %v2693_v37 = vmul.f32 %v6210_v53, %v2692_v45 }
 0xc3b   :  { %v4250_v2 = vmul.f32 -1.442695, %v2801_v59 }
 0xc3c   :  { %v2698_v15 = vsel %vm458_vm3, %v2694_v54, 0.0  ;;  %v2695_v55 = vsel %vm458_vm3, %v2693_v37, 0.0 }
 0xc3d   :  { %2699 = vadd.xlane.f32.xlu1 %v2698_v15  ;;  %2696 = vadd.xlane.f32.xlu0 %v2695_v55  ;;  %5158 = vpow2.f32 %v4250_v2  ;;  %v4273_v2 = vld [vmem:[%s6678_s1 + $0x78] sm:$0xff] }
 0xc3e   :  { %5160 = vrcp.f32 %v2810_v5 }
 0xc4a   :  { %v5159_v7 = vpop.eup %5158 }
 0xc4b   :  { %v2809_v9 = vadd.f32 1.0, %v5159_v7  ;;  %v5161_v8 = vpop.eup %5160 }
 0xc4c   :  { %v2998_v54 = vsub.f32 1.0, %v5161_v8  ;;  %v3002_v55 = vmul.f32 %v5161_v8, %v6228_v58 }
 0xc4d   :  { %5162 = vrcp.f32 %v2809_v9 }
 0xc5a   :  { %v5163_v45 = vpop.eup %5162 }
 0xc5b   :  { %v2997_v49 = vsub.f32 1.0, %v5163_v45  ;;  %v3001_v57 = vmul.f32 %v5163_v45, %v6233_v62 }
 0xc62   :  { %v4855_v17 = vpop.f32.mrf.mxu0 }
 0xc63   :  { %v2994_v14 = vadd.f32 %v4855_v17, %v4259_v22 }
 0xc64   :  { %v2984_v31 = vpop.f32.mrf.mxu0 }
 0xc65   :  { %5164 = vtanh.f32 %v2994_v14  ;;  %v2993_v46 = vadd.f32 %v4258_v1, %v2984_v31 }
 0xc67   :  { %5166 = vtanh.f32 %v2993_v46 }
 0xc72   :  { %v5165_v37 = vpop.eup %5164 }
 0xc73   :  { %v3000_v15 = vmul.f32 %v5165_v37, %v2998_v54  ;;  %v3607_v37 = vld [vmem:[%s6685_s12 + $0x10] sm:$0xff] }
 0xc74   :  { %v5167_v56 = vpop.eup %5166 }
 0xc75   :  { %v6340_v51 = vadd.f32 %v3002_v55, %v3000_v15  ;;  %v2999_v52 = vmul.f32 %v5167_v56, %v2997_v49  ;;  %v3610_v15 = vld [vmem:[#allocation2] sm:$0xff]  ;;  %v3606_v55 = vld [vmem:[%s6685_s12 + $0x8] sm:$0xff] }
 0xc76   :  { %v3605_v49 = vld [vmem:[%s6685_s12] sm:$0xff]  ;;  %v3611_v56 = vld [vmem:[#allocation2 + $0x8] sm:$0xff] }
 0xc77   :  { %3145 = vst.msk [vmem:[#allocation2 + $0x68] sm:$0xff] %vm75_vm0, %v6340_v51  ;;  %v6345_v59 = vadd.f32 %v3001_v57, %v2999_v52  ;;  %v3612_v52 = vld [vmem:[#allocation2 + $0x10] sm:$0xff]  ;;  %v3613_v57 = vld [vmem:[#allocation2 + $0x18] sm:$0xff] }
 0xc79   :  { %3144 = vst.msk [vmem:[#allocation2 + $0x60] sm:$0xff] %vm75_vm0, %v6345_v59  ;;  %4864 = vmatprep.mubr.msk.f32.mxu1 %vm75_vm0, %v6345_v59  ;;  %4875 = vmatprep.mubr.msk.f32.mxu0 %vm75_vm0, %v6345_v59 }
 0xc7a   :  { %4865 = vmatmul.mubr.msk.f32.vlgmr.msra.gmra.mxu1 %vm75_vm0, %v6340_v51  ;;  %4876 = vmatmul.mubr.msk.f32.vlgmr.msra.gmra.mxu0 %vm75_vm0, %v6340_v51 }
 0xc7b   :  { %4879 = vmatpush3.msra.mxu1 %v5934_v26  ;;  %4886 = vmatprep.mubr.msk.f32.mxu1 %vm75_vm0, %v6345_v59  ;;  %v3608_v26 = vld [vmem:[%s6685_s12 + $0x18] sm:$0xff] }
 0xc7c   :  { %4880 = vmatprep.subr.mxu1 %v5942_v28  ;;  %4890 = vmatpush3.msra.mxu0 %v5948_v29  ;;  %v4263_v29 = vld [vmem:[%s6682_s3 + $0x68] sm:$0xff] }
 0xc7d   :  { %4881 = vmatpush3.msra.mxu1 %v5942_v28  ;;  %4891 = vmatprep.subr.mxu0 %v5955_v36 }
 0xc7e   :  { %4882 = vmatprep.subr.mxu1 %v5961_v38  ;;  %4892 = vmatpush3.msra.mxu0 %v5955_v36 }
 0xc7f   :  { %4883 = vmatpush3.msra.mxu1 %v5961_v38  ;;  %4893 = vmatprep.subr.mxu0 %v5969_v25 }
 0xc80   :  { %4884 = vmatprep.subr.mxu1 %v5975_v20  ;;  %4894 = vmatpush3.msra.mxu0 %v5969_v25  ;;  %v4262_v25 = vld [vmem:[%s6682_s3 + $0x60] sm:$0xff] }
 0xc81   :  { %4885 = vmatpush3.msra.mxu1 %v5975_v20  ;;  %4895 = vmatprep.subr.mxu0 %v5983_v40 }
 0xc82   :  { %4887 = vmatmul.mubr.msk.f32.vlgmr.msra.gmra.mxu1 %vm75_vm0, %v6340_v51  ;;  %4896 = vmatpush3.msra.mxu0 %v5983_v40 }
 0xc83   :  { %4900 = vmatprep.subr.mxu1 %v5992_v41  ;;  %4911 = vmatprep.subr.mxu0 %v3608_v26 }
 0xc84   :  { %4901 = vmatpush3.msra.mxu1 %v5992_v41 }
 0xc85   :  { %4902 = vmatprep.subr.mxu1 %v6005_v3 }
 0xc86   :  { %4903 = vmatpush3.msra.mxu1 %v6005_v3 }
 0xc87   :  { %4904 = vmatprep.subr.mxu1 %v6012_v4 }
 0xc88   :  { %4905 = vmatpush3.msra.mxu1 %v6012_v4 }
 0xc89   :  { %4906 = vmatprep.subr.mxu1 %v6019_v11 }
 0xc8a   :  { %4907 = vmatpush3.msra.mxu1 %v6019_v11 }
 0xcc6   :  { %v2700_v28 = vpop.xlane.xlu1 %2699  ;;  %v2697_v36 = vpop.xlane.xlu0 %2696 }
 0xcc7   :  { %v6393_v20 = vsub.f32 %v6286_v30, %v2700_v28  ;;  %v6396_v3 = vsub.f32 %v6289_v33, %v2697_v36  ;;  %v4272_v33 = vld [vmem:[%s6678_s1 + $0x70] sm:$0xff]  ;;  %v3614_v28 = vld [vmem:[#allocation2 + $0x20] sm:$0xff] }
 0xcc8   :  { %v3616_v36 = vld [vmem:[#allocation2 + $0x30] sm:$0xff] }
 0xd3a   :  { %v4866_v38 = vpop.f32.mrf.mxu1 }
 0xd3b   :  { %v3090_v40 = vadd.f32 %v4866_v38, %v4263_v29  ;;  %v3615_v29 = vld [vmem:[#allocation2 + $0x28] sm:$0xff]  ;;  %v3617_v38 = vld [vmem:[#allocation2 + $0x38] sm:$0xff] }
 0xd3c   :  { %v3080_v41 = vpop.f32.mrf.mxu1 }
 0xd3d   :  { %v6399_v4 = vadd.f32 %v3090_v40, %v6393_v20  ;;  %v3089_v11 = vadd.f32 %v4262_v25, %v3080_v41  ;;  %v3619_v25 = vld [vmem:[#allocation2 + $0x48] sm:$0xff]  ;;  %v3620_v40 = vld [vmem:[#allocation2 + $0x50] sm:$0xff]  ;;  %v3621_v41 = vld [vmem:[#allocation2 + $0x58] sm:$0xff] }
 0xd3f   :  { %v6402_v61 = vadd.f32 %v3089_v11, %v6396_v3  ;;  %3100 = vperm.xlu1 %4991, %v6399_v4   ;;  %v3622_v11 = vld [vmem:[#allocation2 + $0x60] sm:$0xff] }
 0xd41   :  { %3095 = vperm.xlu0 %4990, %v6402_v61  }
 0xd42   :  { %v4888_v30 = vpop.f32.mrf.mxu1 }
 0xd43   :  { %v3335_v6 = vadd.f32 %v4888_v30, %v4273_v2  ;;  %v3623_v2 = vld [vmem:[#allocation2 + $0x68] sm:$0xff] }
 0xd44   :  { %v3325_v7 = vpop.f32.mrf.mxu1 }
 0xd45   :  { %v4277_v5 = vmul.f32 -1.442695, %v3335_v6  ;;  %v3334_v9 = vadd.f32 %v4272_v33, %v3325_v7 }
 0xd47   :  { %5168 = vpow2.f32 %v4277_v5  ;;  %v4276_v22 = vmul.f32 -1.442695, %v3334_v9 }
 0xd49   :  { %5170 = vpow2.f32 %v4276_v22 }
 0xd54   :  { %v5169_v17 = vpop.eup %5168 }
 0xd55   :  { %v3343_v1 = vadd.f32 1.0, %v5169_v17 }
 0xd56   :  { %v5171_v14 = vpop.eup %5170 }
 0xd57   :  { %v3342_v31 = vadd.f32 1.0, %v5171_v14  ;;  %5172 = vrcp.f32 %v3343_v1 }
 0xd59   :  { %5174 = vrcp.f32 %v3342_v31 }
 0xd64   :  { %v5173_v46 = vpop.eup %5172 }
 0xd65   :  { %v3352_v54 = vmul.f32 %v5173_v46, %v6340_v51 }
 0xd66   :  { %v5175_v8 = vpop.eup %5174 }
 0xd67   :  { %v3351_v45 = vmul.f32 %v5175_v8, %v6345_v59 }
 0xd69   :  { %4897 = vmatprep.mubr.msk.f32.mxu0 %vm75_vm0, %v3351_v45 }
 0xd6a   :  { %4898 = vmatmul.mubr.msk.f32.vlgmr.msra.gmra.mxu0 %vm75_vm0, %v3352_v54 }
 0xd6b   :  { %4912 = vmatpush3.msra.mxu0 %v3608_v26  ;;  %4919 = vmatprep.mubr.msk.f32.mxu0 %vm75_vm0, %v3610_v15 }
 0xd6c   :  { %4913 = vmatprep.subr.mxu0 %v3607_v37 }
 0xd6d   :  { %4914 = vmatpush3.msra.mxu0 %v3607_v37 }
 0xd6e   :  { %4915 = vmatprep.subr.mxu0 %v3606_v55 }
 0xd6f   :  { %4916 = vmatpush3.msra.mxu0 %v3606_v55 }
 0xd70   :  { %4917 = vmatprep.subr.mxu0 %v3605_v49 }
 0xd71   :  { %4918 = vmatpush3.msra.mxu0 %v3605_v49 }
 0xd72   :  { %4920 = vmatmul.mubr.msk.f32.vlgmr.msra.gmra.mxu0 %vm75_vm0, %v3611_v56  ;;  %4978 = vmatprep.subr.mxu0 %v3608_v26 }
 0xd73   :  { %4922 = vmatprep.mubr.msk.f32.mxu0 %vm75_vm0, %v3612_v52  ;;  %4979 = vmatpush3.msra.mxu0 %v3608_v26  ;;  %v3618_v26 = vld [vmem:[#allocation2 + $0x40] sm:$0xff] }
 0xd74   :  { %4980 = vmatprep.subr.mxu0 %v3607_v37 }
 0xd75   :  { %4981 = vmatpush3.msra.mxu0 %v3607_v37 }
 0xd76   :  { %4923 = vmatmul.mubr.msk.f32.gmra.mxu0 %vm75_vm0, %v3613_v57  ;;  %4982 = vmatprep.subr.mxu0 %v3606_v55 }
 0xd77   :  { %4925 = vmatprep.mubr.msk.f32.mxu0 %vm75_vm0, %v3614_v28  ;;  %4983 = vmatpush3.msra.mxu0 %v3606_v55 }
 0xd78   :  { %4984 = vmatprep.subr.mxu0 %v3605_v49 }
 0xd79   :  { %4985 = vmatpush3.msra.mxu0 %v3605_v49 }
 0xd7a   :  { %4926 = vmatmul.mubr.msk.f32.gmra.mxu0 %vm75_vm0, %v3615_v29 }
 0xd7b   :  { %4928 = vmatprep.mubr.msk.f32.mxu0 %vm75_vm0, %v3616_v36 }
 0xd7e   :  { %4929 = vmatmul.mubr.msk.f32.gmra.mxu0 %vm75_vm0, %v3617_v38 }
 0xd7f   :  { %4931 = vmatprep.mubr.msk.f32.mxu0 %vm75_vm0, %v3618_v26 }
 0xd82   :  { %4932 = vmatmul.mubr.msk.f32.gmra.mxu0 %vm75_vm0, %v3619_v25 }
 0xd83   :  { %4934 = vmatprep.mubr.msk.f32.mxu0 %vm75_vm0, %v3620_v40 }
 0xd86   :  { %4935 = vmatmul.mubr.msk.f32.gmra.mxu0 %vm75_vm0, %v3621_v41 }
 0xd87   :  { %4937 = vmatprep.mubr.msk.f32.mxu0 %vm75_vm0, %v3622_v11 }
 0xd8a   :  { %4938 = vmatmul.mubr.msk.f32.gmra.mxu0 %vm75_vm0, %v3623_v2 }
 0xdba   :  { %v3101_v30 = vpop.permute.xlu1 %3100 }
 0xdbb   :  { %v3104_v33 = vsel %vm56_vm2, %v3101_v30, -inf }
 0xdbc   :  { %v3096_v6 = vpop.permute.xlu0 %3095  ;;  %v3106_v5 = vsel %vm458_vm3, %v3104_v33, -inf }
 0xdbd   :  { %v3103_v7 = vsel %vm55_vm1, %v3096_v6, -inf }
 0xdbe   :  { %v3105_v9 = vsel %vm458_vm3, %v3103_v7, -inf }
 0xdbf   :  { %v3107_v22 = vmax.f32 %v3105_v9, %v3106_v5  ;;  %v4877_v9 = vpop.f32.mrf.mxu0 }
 0xdc1   :  { %v3108_v17 = vrot.slane %v3107_v22, 4 }
 0xdc3   :  { %v3109_v1 = vmax.f32 %v3107_v22, %v3108_v17  ;;  %v4267_v22 = vld [vmem:[%s6680_s0 + $0x78] sm:$0xff]  ;;  %v4266_v17 = vld [vmem:[%s6680_s0 + $0x70] sm:$0xff] }
 0xdc5   :  { %v3110_v14 = vrot.slane %v3109_v1, 2 }
 0xdc7   :  { %v3111_v31 = vmax.f32 %v3109_v1, %v3110_v14  ;;  %v3233_v1 = vpop.f32.mrf.mxu0  ;;  %v3243_v14 = vadd.f32 %v4877_v9, %v4267_v22 }
 0xdc9   :  { %v3112_v46 = vrot.slane %v3111_v31, 1 }
 0xdcb   :  { %v3113_v8 = vmax.f32 %v3111_v31, %v3112_v46  ;;  %v4271_v31 = vmul.f32 -1.442695, %v3243_v14 }
 0xdcd   :  { %v3114_v45 = vsub.f32 %v3096_v6, %v3113_v8  ;;  %v3115_v54 = vsub.f32 %v3101_v30, %v3113_v8 }
 0xdcf   :  { %v3116_v37 = vmul.f32 1.442695, %v3114_v45  ;;  %v3118_v15 = vmul.f32 1.442695, %v3115_v54 }
 0xdd1   :  { %5176 = vpow2.f32 %v3116_v37  ;;  %v4279_v37 = vld [vmem:[%s6681_s2 + $0x78] sm:$0xff] }
 0xdd2   :  { %5178 = vpow2.f32 %v3118_v15 }
 0xdde   :  { %v5177_v55 = vpop.eup %5176 }
 0xddf   :  { %v5179_v49 = vpop.eup %5178  ;;  %v3120_v56 = vsel %vm55_vm1, %v5177_v55, 0.0  ;;  %v4278_v55 = vld [vmem:[%s6681_s2 + $0x70] sm:$0xff] }
 0xde0   :  { %v3121_v52 = vsel %vm56_vm2, %v5179_v49, 0.0  ;;  %v3122_v57 = vsel %vm458_vm3, %v3120_v56, 0.0 }
 0xde1   :  { %v3123_v28 = vsel %vm458_vm3, %v3121_v52, 0.0 }
 0xde2   :  { %v3124_v29 = vadd.f32 %v3123_v28, %v3122_v57  ;;  %v6470_v57 = vld [vmem:[%s6686_s13] ss:$0 sm:$0xff] }
 0xde4   :  { %v3125_v36 = vrot.slane %v3124_v29, 4 }
 0xde6   :  { %v3126_v38 = vadd.f32 %v3125_v36, %v3124_v29 }
 0xde8   :  { %v3127_v26 = vrot.slane %v3126_v38, 2 }
 0xdea   :  { %v3128_v25 = vadd.f32 %v3127_v26, %v3126_v38 }
 0xdec   :  { %v3129_v40 = vrot.slane %v3128_v25, 1 }
 0xdee   :  { %v3130_v41 = vadd.f32 %v3129_v40, %v3128_v25 }
 0xdf0   :  { %5180 = vlog2.f32 %v3130_v41 }
 0xdf1   :  { %5182 = vpow2.f32 %v4271_v31 }
 0xdfd   :  { %v5181_v11 = vpop.eup %5180 }
 0xdfe   :  { %v3132_v2 = vmul.f32 0.6931472, %v5181_v11  ;;  %v5183_v46 = vpop.eup %5182 }
 0xdff   :  { %v3251_v45 = vadd.f32 1.0, %v5183_v46 }
 0xe00   :  { %v3133_v30 = vadd.f32 %v3132_v2, %v3113_v8 }
 0xe02   :  { %v3135_v33 = vmul.f32 %v6204_v50, %v3133_v30  ;;  %v3134_v6 = vmul.f32 %v6210_v53, %v3133_v30  ;;  %v3242_v50 = vadd.f32 %v4266_v17, %v3233_v1 }
 0xe04   :  { %v3139_v7 = vsel %vm458_vm3, %v3135_v33, 0.0  ;;  %v3136_v5 = vsel %vm458_vm3, %v3134_v6, 0.0  ;;  %v4270_v53 = vmul.f32 -1.442695, %v3242_v50 }
 0xe05   :  { %3140 = vadd.xlane.f32.xlu1 %v3139_v7  ;;  %3137 = vadd.xlane.f32.xlu0 %v3136_v5 }
 0xe06   :  { %5184 = vpow2.f32 %v4270_v53 }
 0xe07   :  { %5186 = vrcp.f32 %v3251_v45 }
 0xe13   :  { %v5185_v8 = vpop.eup %5184 }
 0xe14   :  { %v3250_v54 = vadd.f32 1.0, %v5185_v8  ;;  %v5187_v25 = vpop.eup %5186 }
 0xe15   :  { %v3439_v7 = vsub.f32 1.0, %v5187_v25  ;;  %v3443_v46 = vmul.f32 %v5187_v25, %v6340_v51 }
 0xe16   :  { %5188 = vrcp.f32 %v3250_v54 }
 0xe23   :  { %v5189_v41 = vpop.eup %5188 }
 0xe24   :  { %v3438_v22 = vsub.f32 1.0, %v5189_v41  ;;  %v3442_v53 = vmul.f32 %v5189_v41, %v6345_v59 }
 0xe2a   :  { %v4899_v15 = vpop.f32.mrf.mxu0 }
 0xe2b   :  { %v3435_v49 = vadd.f32 %v4899_v15, %v4279_v37 }
 0xe2c   :  { %v3425_v56 = vpop.f32.mrf.mxu0 }
 0xe2d   :  { %5190 = vtanh.f32 %v3435_v49  ;;  %v3434_v52 = vadd.f32 %v4278_v55, %v3425_v56 }
 0xe2f   :  { %5192 = vtanh.f32 %v3434_v52 }
 0xe32   :  { %v4921_v28 = vpop.f32.mrf.mxu0 }
 0xe33   :  { %v3752_v29 = vadd.f32 %v4921_v28, %v6470_v57 }
 0xe34   :  { %v3746_v36 = vpop.f32.mrf.mxu0 }
 0xe35   :  { %v4304_v38 = vmul.f32 -1.442695, %v3752_v29  ;;  %v3747_v26 = vadd.f32 %v6470_v57, %v3746_v36 }
 0xe36   :  { %v4924_v40 = vpop.f32.mrf.mxu0 }
 0xe37   :  { %5194 = vpow2.f32 %v4304_v38  ;;  %v4303_v11 = vmul.f32 -1.442695, %v3747_v26  ;;  %v3762_v2 = vadd.f32 %v4924_v40, %v6470_v57 }
 0xe38   :  { %v3756_v30 = vpop.f32.mrf.mxu0 }
 0xe39   :  { %5196 = vpow2.f32 %v4303_v11  ;;  %v4306_v33 = vmul.f32 -1.442695, %v3762_v2  ;;  %v3757_v6 = vadd.f32 %v6470_v57, %v3756_v30 }
 0xe3a   :  { %v5191_v5 = vpop.eup %5190  ;;  %v4927_v9 = vpop.f32.mrf.mxu0 }
 0xe3b   :  { %5198 = vpow2.f32 %v4306_v33  ;;  %v4305_v17 = vmul.f32 -1.442695, %v3757_v6  ;;  %v3772_v1 = vadd.f32 %v4927_v9, %v6470_v57  ;;  %v3441_v14 = vmul.f32 %v5191_v5, %v3439_v7 }
 0xe3c   :  { %v5193_v50 = vpop.eup %5192  ;;  %v3766_v31 = vpop.f32.mrf.mxu0 }
 0xe3d   :  { %5200 = vpow2.f32 %v4305_v17  ;;  %v4308_v8 = vmul.f32 -1.442695, %v3772_v1  ;;  %v3767_v45 = vadd.f32 %v6470_v57, %v3766_v31  ;;  %v3440_v54 = vmul.f32 %v5193_v50, %v3438_v22 }
 0xe3e   :  { %v4930_v37 = vpop.f32.mrf.mxu0  ;;  %v6480_v15 = vadd.f32 %v3443_v46, %v3441_v14 }
 0xe3f   :  { %5202 = vpow2.f32 %v4308_v8  ;;  %v4307_v55 = vmul.f32 -1.442695, %v3767_v45  ;;  %v3782_v49 = vadd.f32 %v4930_v37, %v6470_v57  ;;  %v6483_v56 = vadd.f32 %v3442_v53, %v3440_v54 }
 0xe40   :  { %v3776_v52 = vpop.f32.mrf.mxu0  ;;  %3586 = vst.msk [vmem:[#allocation2 + $0x78] sm:$0xff] %vm75_vm0, %v6480_v15 }
 0xe41   :  { %5204 = vpow2.f32 %v4307_v55  ;;  %v4310_v28 = vmul.f32 -1.442695, %v3782_v49  ;;  %v3777_v29 = vadd.f32 %v6470_v57, %v3776_v52  ;;  %4908 = vmatprep.mubr.msk.f32.mxu1 %vm75_vm0, %v6483_v56  ;;  %3585 = vst.msk [vmem:[#allocation2 + $0x70] sm:$0xff] %vm75_vm0, %v6483_v56 }
 0xe42   :  { %v4933_v36 = vpop.f32.mrf.mxu0  ;;  %4909 = vmatmul.mubr.msk.f32.vlgmr.msra.gmra.mxu1 %vm75_vm0, %v6480_v15 }
 0xe43   :  { %5206 = vpow2.f32 %v4310_v28  ;;  %v4309_v38 = vmul.f32 -1.442695, %v3777_v29  ;;  %v3792_v26 = vadd.f32 %v4933_v36, %v6470_v57 }
 0xe44   :  { %v5195_v25 = vpop.eup %5194  ;;  %v3786_v40 = vpop.f32.mrf.mxu0 }
 0xe45   :  { %v3874_v41 = vadd.f32 1.0, %v5195_v25  ;;  %5208 = vpow2.f32 %v4309_v38  ;;  %v4312_v11 = vmul.f32 -1.442695, %v3792_v26  ;;  %v3787_v2 = vadd.f32 %v6470_v57, %v3786_v40 }
 0xe46   :  { %v5197_v30 = vpop.eup %5196  ;;  %v4936_v33 = vpop.f32.mrf.mxu0 }
 0xe47   :  { %5210 = vrcp.f32 %v3874_v41  ;;  %v3873_v6 = vadd.f32 1.0, %v5197_v30  ;;  %v4311_v7 = vmul.f32 -1.442695, %v3787_v2  ;;  %v3802_v5 = vadd.f32 %v4936_v33, %v6470_v57  ;;  %v3625_v31 = vld [vmem:[#allocation2 + $0x78] sm:$0xff] }
 0xe48   :  { %v5199_v9 = vpop.eup %5198  ;;  %5212 = vpow2.f32 %v4312_v11  ;;  %v3796_v22 = vpop.f32.mrf.mxu0  ;;  %v3624_v17 = vld [vmem:[#allocation2 + $0x70] sm:$0xff] }
 0xe49   :  { %5214 = vrcp.f32 %v3873_v6  ;;  %v3876_v1 = vadd.f32 1.0, %v5199_v9  ;;  %v4314_v14 = vmul.f32 -1.442695, %v3802_v5  ;;  %v3797_v50 = vadd.f32 %v6470_v57, %v3796_v22  ;;  %4940 = vmatprep.mubr.msk.f32.mxu0 %vm75_vm0, %v3624_v17 }
 0xe4a   :  { %v5201_v53 = vpop.eup %5200  ;;  %5216 = vpow2.f32 %v4311_v7  ;;  %v4939_v46 = vpop.f32.mrf.mxu0  ;;  %4941 = vmatmul.mubr.msk.f32.gmra.mxu0 %vm75_vm0, %v3625_v31 }
 0xe4b   :  { %5218 = vrcp.f32 %v3876_v1  ;;  %v3875_v8 = vadd.f32 1.0, %v5201_v53  ;;  %v4313_v45 = vmul.f32 -1.442695, %v3797_v50  ;;  %v3812_v54 = vadd.f32 %v4939_v46, %v6470_v57 }
 0xe4c   :  { %v5203_v37 = vpop.eup %5202  ;;  %5220 = vpow2.f32 %v4314_v14  ;;  %v3806_v55 = vpop.f32.mrf.mxu0 }
 0xe4d   :  { %5222 = vrcp.f32 %v3875_v8  ;;  %v3878_v49 = vadd.f32 1.0, %v5203_v37  ;;  %v4316_v52 = vmul.f32 -1.442695, %v3812_v54  ;;  %v3807_v28 = vadd.f32 %v6470_v57, %v3806_v55 }
 0xe4e   :  { %v5205_v29 = vpop.eup %5204  ;;  %5224 = vpow2.f32 %v4313_v45 }
 0xe4f   :  { %5226 = vrcp.f32 %v3878_v49  ;;  %v3877_v36 = vadd.f32 1.0, %v5205_v29  ;;  %v4315_v38 = vmul.f32 -1.442695, %v3807_v28 }
 0xe50   :  { %v5207_v26 = vpop.eup %5206  ;;  %5228 = vpow2.f32 %v4316_v52 }
 0xe51   :  { %5230 = vrcp.f32 %v3877_v36  ;;  %v3880_v25 = vadd.f32 1.0, %v5207_v26  ;;  %v4283_v26 = vld [vmem:[%s6682_s3 + $0x78] sm:$0xff] }
 0xe52   :  { %v5209_v40 = vpop.eup %5208  ;;  %5232 = vpow2.f32 %v4315_v38 }
 0xe53   :  { %5234 = vrcp.f32 %v3880_v25  ;;  %v3879_v41 = vadd.f32 1.0, %v5209_v40 }
 0xe54   :  { %v5211_v11 = vpop.eup %5210 }
 0xe55   :  { %v5213_v2 = vpop.eup %5212  ;;  %3923 = vst.msk [vmem:[%s6687_s15 + $0x8] sm:$0xff] %vm3921_vm4, %v5211_v11  ;;  %5236 = vrcp.f32 %v3879_v41  ;;  %v4282_v41 = vld [vmem:[%s6682_s3 + $0x70] sm:$0xff] }
 0xe56   :  { %v5215_v30 = vpop.eup %5214  ;;  %v3882_v33 = vadd.f32 1.0, %v5213_v2 }
 0xe57   :  { %v5217_v6 = vpop.eup %5216  ;;  %3922 = vst.msk [vmem:[%s6687_s15] sm:$0xff] %vm3921_vm4, %v5215_v30 }
 0xe58   :  { %v5219_v7 = vpop.eup %5218  ;;  %5238 = vrcp.f32 %v3882_v33  ;;  %v3881_v5 = vadd.f32 1.0, %v5217_v6 }
 0xe59   :  { %v5221_v9 = vpop.eup %5220  ;;  %3925 = vst.msk [vmem:[%s6687_s15 + $0x18] sm:$0xff] %vm3921_vm4, %v5219_v7 }
 0xe5a   :  { %v5223_v22 = vpop.eup %5222  ;;  %5240 = vrcp.f32 %v3881_v5  ;;  %v3884_v17 = vadd.f32 1.0, %v5221_v9 }
 0xe5b   :  { %v5225_v1 = vpop.eup %5224  ;;  %3924 = vst.msk [vmem:[%s6687_s15 + $0x10] sm:$0xff] %vm3921_vm4, %v5223_v22 }
 0xe5c   :  { %v5227_v14 = vpop.eup %5226  ;;  %5242 = vrcp.f32 %v3884_v17  ;;  %v3883_v50 = vadd.f32 1.0, %v5225_v1 }
 0xe5d   :  { %v5229_v31 = vpop.eup %5228  ;;  %3927 = vst.msk [vmem:[%s6687_s15 + $0x28] sm:$0xff] %vm3921_vm4, %v5227_v14 }
 0xe5e   :  { %v5231_v53 = vpop.eup %5230  ;;  %5244 = vrcp.f32 %v3883_v50  ;;  %v3886_v46 = vadd.f32 1.0, %v5229_v31 }
 0xe5f   :  { %v5233_v8 = vpop.eup %5232  ;;  %3926 = vst.msk [vmem:[%s6687_s15 + $0x20] sm:$0xff] %vm3921_vm4, %v5231_v53 }
 0xe60   :  { %v5235_v45 = vpop.eup %5234  ;;  %5246 = vrcp.f32 %v3886_v46  ;;  %v3885_v54 = vadd.f32 1.0, %v5233_v8 }
 0xe61   :  { %3929 = vst.msk [vmem:[%s6687_s15 + $0x38] sm:$0xff] %vm3921_vm4, %v5235_v45 }
 0xe62   :  { %v5237_v37 = vpop.eup %5236  ;;  %5248 = vrcp.f32 %v3885_v54 }
 0xe63   :  { %3928 = vst.msk [vmem:[%s6687_s15 + $0x30] sm:$0xff] %vm3921_vm4, %v5237_v37 }
 0xe65   :  { %v5239_v55 = vpop.eup %5238 }
 0xe66   :  { %3931 = vst.msk [vmem:[%s6687_s15 + $0x48] sm:$0xff] %vm3921_vm4, %v5239_v55 }
 0xe67   :  { %v5241_v49 = vpop.eup %5240 }
 0xe68   :  { %3930 = vst.msk [vmem:[%s6687_s15 + $0x40] sm:$0xff] %vm3921_vm4, %v5241_v49 }
 0xe69   :  { %v5243_v52 = vpop.eup %5242 }
 0xe6a   :  { %3933 = vst.msk [vmem:[%s6687_s15 + $0x58] sm:$0xff] %vm3921_vm4, %v5243_v52 }
 0xe6b   :  { %v5245_v28 = vpop.eup %5244 }
 0xe6c   :  { %3932 = vst.msk [vmem:[%s6687_s15 + $0x50] sm:$0xff] %vm3921_vm4, %v5245_v28 }
 0xe6d   :  { %v5247_v29 = vpop.eup %5246 }
 0xe6e   :  { %3935 = vst.msk [vmem:[%s6687_s15 + $0x68] sm:$0xff] %vm3921_vm4, %v5247_v29 }
 0xe6f   :  { %v5249_v36 = vpop.eup %5248 }
 0xe70   :  { %3934 = vst.msk [vmem:[%s6687_s15 + $0x60] sm:$0xff] %vm3921_vm4, %v5249_v36 }
 0xe8e   :  { %v3141_v38 = vpop.xlane.xlu1 %3140  ;;  %v3138_v25 = vpop.xlane.xlu0 %3137 }
 0xe8f   :  { %v6565_v11 = vsub.f32 %v6399_v4, %v3141_v38  ;;  %v6568_v33 = vsub.f32 %v6402_v61, %v3138_v25 }
 0xf02   :  { %v4910_v40 = vpop.f32.mrf.mxu1 }
 0xf03   :  { %v3531_v2 = vadd.f32 %v4910_v40, %v4283_v26 }
 0xf04   :  { %v3521_v30 = vpop.f32.mrf.mxu1 }
 0xf05   :  { %v6571_v6 = vadd.f32 %v3531_v2, %v6565_v11  ;;  %v3530_v7 = vadd.f32 %v4282_v41, %v3521_v30 }
 0xf07   :  { %v6574_v5 = vadd.f32 %v3530_v7, %v6568_v33  ;;  %3541 = vperm.xlu1 %4991, %v6571_v6  }
 0xf09   :  { %3536 = vperm.xlu0 %4990, %v6574_v5  }
 0xf0a   :  { %v4942_v9 = vpop.f32.mrf.mxu0 }
 0xf0b   :  { %v3822_v4 = vadd.f32 %v4942_v9, %v6470_v57 }
 0xf0c   :  { %v3816_v22 = vpop.f32.mrf.mxu0 }
 0xf0d   :  { %v4318_v17 = vmul.f32 -1.442695, %v3822_v4  ;;  %v3817_v1 = vadd.f32 %v6470_v57, %v3816_v22 }
 0xf0f   :  { %5250 = vpow2.f32 %v4318_v17  ;;  %v4317_v61 = vmul.f32 -1.442695, %v3817_v1 }
 0xf11   :  { %5252 = vpow2.f32 %v4317_v61 }
 0xf1c   :  { %v5251_v14 = vpop.eup %5250 }
 0xf1d   :  { %v3888_v50 = vadd.f32 1.0, %v5251_v14 }
 0xf1e   :  { %v5253_v31 = vpop.eup %5252 }
 0xf1f   :  { %5254 = vrcp.f32 %v3888_v50  ;;  %v3887_v53 = vadd.f32 1.0, %v5253_v31 }
 0xf21   :  { %5256 = vrcp.f32 %v3887_v53 }
 0xf2c   :  { %v5255_v46 = vpop.eup %5254 }
 0xf2d   :  { %3937 = vst.msk [vmem:[%s6687_s15 + $0x78] sm:$0xff] %vm3921_vm4, %v5255_v46 }
 0xf2e   :  { %v5257_v8 = vpop.eup %5256 }
 0xf2f   :  { %3936 = vst.msk [vmem:[%s6687_s15 + $0x70] sm:$0xff] %vm3921_vm4, %v5257_v8 }
 0xf82   :  { %v3542_v45 = vpop.permute.xlu1 %3541 }
 0xf83   :  { %v3545_v54 = vsel %vm56_vm2, %v3542_v45, -inf }
 0xf84   :  { %v3537_v37 = vpop.permute.xlu0 %3536  ;;  %v3547_v49 = vsel %vm458_vm3, %v3545_v54, -inf }
 0xf85   :  { %v3544_v55 = vsel %vm55_vm1, %v3537_v37, -inf }
 0xf86   :  { %v3546_v52 = vsel %vm458_vm3, %v3544_v55, -inf }
 0xf87   :  { %v3548_v28 = vmax.f32 %v3546_v52, %v3547_v49  ;;  %v5323_v49 = vld [vmem:[%s6684_s6] sm:$0xff] }
 0xf89   :  { %v3549_v29 = vrot.slane %v3548_v28, 4 }
 0xf8b   :  { %v3550_v36 = vmax.f32 %v3548_v28, %v3549_v29 }
 0xf8d   :  { %v3551_v38 = vrot.slane %v3550_v36, 2 }
 0xf8f   :  { %v3552_v26 = vmax.f32 %v3550_v36, %v3551_v38 }
 0xf91   :  { %v3553_v25 = vrot.slane %v3552_v26, 1 }
 0xf93   :  { %v3554_v40 = vmax.f32 %v3552_v26, %v3553_v25 }
 0xf95   :  { %v3555_v41 = vsub.f32 %v3537_v37, %v3554_v40  ;;  %v3556_v2 = vsub.f32 %v3542_v45, %v3554_v40 }
 0xf97   :  { %v3557_v30 = vmul.f32 1.442695, %v3555_v41  ;;  %v3559_v7 = vmul.f32 1.442695, %v3556_v2  ;;  %v3148_v2 = vmul.f32 1.442695, %v6565_v11 }
 0xf99   :  { %5258 = vpow2.f32 %v3557_v30  ;;  %v2266_v30 = vmul.f32 1.442695, %v6280_v18 }
 0xf9a   :  { %5260 = vpow2.f32 %v3559_v7  ;;  %v3146_v7 = vmul.f32 1.442695, %v6568_v33  ;;  %v2264_v33 = vmul.f32 1.442695, %v6283_v23 }
 0xfa6   :  { %v5259_v9 = vpop.eup %5258 }
 0xfa7   :  { %v5261_v4 = vpop.eup %5260  ;;  %v3561_v22 = vsel %vm55_vm1, %v5259_v9, 0.0  ;;  %v1825_v9 = vmul.f32 1.442695, %v6158_v47 }
 0xfa8   :  { %v3562_v17 = vsel %vm56_vm2, %v5261_v4, 0.0  ;;  %v3563_v1 = vsel %vm458_vm3, %v3561_v22, 0.0  ;;  %v2707_v4 = vmul.f32 1.442695, %v6393_v20  ;;  %v943_v22 = vmul.f32 1.442695, %v5854_v13 }
 0xfa9   :  { %v3564_v61 = vsel %vm458_vm3, %v3562_v17, 0.0  ;;  %v502_v20 = vmul.f32 1.442695, %v5742_v27  ;;  %v941_v27 = vmul.f32 1.442695, %v5857_v32 }
 0xfaa   :  { %v3565_v14 = vadd.f32 %v3564_v61, %v3563_v1  ;;  %v1382_v1 = vmul.f32 1.442695, %v6034_v48 }
 0xfac   :  { %v3566_v50 = vrot.slane %v3565_v14, 4 }
 0xfae   :  { %v3567_v31 = vadd.f32 %v3566_v50, %v3565_v14 }
 0xfb0   :  { %v3568_v53 = vrot.slane %v3567_v31, 2 }
 0xfb2   :  { %v3569_v46 = vadd.f32 %v3568_v53, %v3567_v31 }
 0xfb4   :  { %v3570_v8 = vrot.slane %v3569_v46, 1 }
 0xfb6   :  { %v3571_v45 = vadd.f32 %v3570_v8, %v3569_v46 }
 0xfb8   :  { %5262 = vlog2.f32 %v3571_v45  ;;  %v3938_v45 = vld [vmem:[%s6688_s7] sm:$0xff] }
 0xfb9   :  { %4975 = vmatprep.mubr.f32.mxu1 %v3938_v45 }
 0xfc5   :  { %v5263_v54 = vpop.eup %5262 }
 0xfc6   :  { %v3573_v37 = vmul.f32 0.6931472, %v5263_v54 }
 0xfc8   :  { %v3574_v55 = vadd.f32 %v3573_v37, %v3554_v40 }
 0xfca   :  { %v3576_v44 = vmul.f32 %v5322_v43, %v3574_v55  ;;  %v3575_v52 = vmul.f32 %v5323_v49, %v3574_v55 }
 0xfcc   :  { %v3580_v28 = vsel %vm458_vm3, %v3576_v44, 0.0  ;;  %v3577_v29 = vsel %vm458_vm3, %v3575_v52, 0.0 }
 0xfcd   :  { %3581 = vadd.xlane.f32.xlu0 %v3580_v28  ;;  %3578 = vadd.xlane.f32.xlu1 %v3577_v29 }
0x1056   :  { %v3582_v36 = vpop.xlane.xlu0 %3581  ;;  %v3579_v38 = vpop.xlane.xlu1 %3578 }
0x1057   :  { %v3584_v26 = vsub.f32 %v6571_v6, %v3582_v36  ;;  %v3583_v25 = vsub.f32 %v6574_v5, %v3579_v38  ;;  %v1384_v6 = vmul.f32 1.442695, %v6031_v35  ;;  %v2705_v5 = vmul.f32 1.442695, %v6396_v3 }
0x1058   :  { %v1823_v35 = vmul.f32 1.442695, %v6161_v0  ;;  %v500_v0 = vmul.f32 1.442695, %v5745_v34 }
0x1059   :  { %v3589_v40 = vmul.f32 1.442695, %v3584_v26  ;;  %v3587_v41 = vmul.f32 1.442695, %v3583_v25 }
0x105b   :  { %5264 = vpow2.f32 %v3589_v40 }
0x105c   :  { %5266 = vpow2.f32 %v3587_v41 }
0x105d   :  { %5268 = vpow2.f32 %v3148_v2 }
0x105e   :  { %5270 = vpow2.f32 %v2266_v30 }
0x105f   :  { %5272 = vpow2.f32 %v3146_v7 }
0x1060   :  { %5274 = vpow2.f32 %v1825_v9 }
0x1061   :  { %5276 = vpow2.f32 %v2707_v4 }
0x1062   :  { %5278 = vpow2.f32 %v1384_v6 }
0x1063   :  { %5280 = vpow2.f32 %v2705_v5 }
0x1064   :  { %5282 = vpow2.f32 %v943_v22 }
0x1065   :  { %5284 = vpow2.f32 %v2264_v33 }
0x1066   :  { %5286 = vpow2.f32 %v502_v20 }
0x1067   :  { %5288 = vpow2.f32 %v1823_v35 }
0x1068   :  { %v5265_v11 = vpop.eup %5264  ;;  %5290 = vpow2.f32 %v1382_v1 }
0x1069   :  { %v5267_v18 = vpop.eup %5266  ;;  %3598 = vperm.xlu0 %4990, %v5265_v11   ;;  %5292 = vpow2.f32 %v941_v27 }
0x106a   :  { %3593 = vperm.xlu1 %4991, %v5267_v18   ;;  %v5269_v47 = vpop.eup %5268  ;;  %5294 = vpow2.f32 %v500_v0 }
0x106b   :  { %v5271_v17 = vpop.eup %5270 }
0x106c   :  { %v5273_v3 = vpop.eup %5272 }
0x106d   :  { %3157 = vperm.xlu0 %4990, %v5269_v47   ;;  %v5275_v13 = vpop.eup %5274 }
0x106e   :  { %2275 = vperm.xlu1 %4991, %v5271_v17   ;;  %v5277_v23 = vpop.eup %5276 }
0x106f   :  { %v5279_v61 = vpop.eup %5278 }
0x1070   :  { %v5281_v14 = vpop.eup %5280 }
0x1071   :  { %3152 = vperm.xlu0 %4990, %v5273_v3   ;;  %v5283_v50 = vpop.eup %5282 }
0x1072   :  { %1834 = vperm.xlu1 %4991, %v5275_v13   ;;  %v5285_v31 = vpop.eup %5284 }
0x1073   :  { %v5287_v53 = vpop.eup %5286 }
0x1074   :  { %v5289_v48 = vpop.eup %5288 }
0x1075   :  { %2716 = vperm.xlu0 %4990, %v5277_v23   ;;  %v5291_v46 = vpop.eup %5290 }
0x1076   :  { %1393 = vperm.xlu1 %4991, %v5279_v61   ;;  %v5293_v8 = vpop.eup %5292 }
0x1077   :  { %v5295_v32 = vpop.eup %5294 }
0x1079   :  { %2711 = vperm.xlu0 %4990, %v5281_v14  }
0x107a   :  { %952 = vperm.xlu1 %4991, %v5283_v50  }
0x107d   :  { %2270 = vperm.xlu0 %4990, %v5285_v31  }
0x107e   :  { %511 = vperm.xlu1 %4991, %v5287_v53  }
0x1081   :  { %1829 = vperm.xlu0 %4990, %v5289_v48  }
0x1085   :  { %1388 = vperm.xlu0 %4990, %v5291_v46  }
0x1089   :  { %947 = vperm.xlu0 %4990, %v5293_v8  }
0x108d   :  { %506 = vperm.xlu0 %4990, %v5295_v32  }
0x10e4   :  { %v3599_v34 = vpop.permute.xlu0 %3598 }
0x10e5   :  { %v3602_v54 = vmul.f32 %v3599_v34, %v6480_v15  ;;  %v3594_v37 = vpop.permute.xlu1 %3593 }
0x10e6   :  { %v3601_v55 = vmul.f32 %v3594_v37, %v6483_v56 }
0x10e7   :  { %3604 = vst.msk [vmem:[#allocation3 + $0x78] sm:$0xff] %vm75_vm0, %v3602_v54 }
0x10e8   :  { %3603 = vst.msk [vmem:[#allocation3 + $0x70] sm:$0xff] %vm75_vm0, %v3601_v55  ;;  %v3158_v43 = vpop.permute.xlu0 %3157 }
0x10e9   :  { %v3161_v44 = vmul.f32 %v3158_v43, %v6340_v51  ;;  %v2276_v49 = vpop.permute.xlu1 %2275 }
0x10ea   :  { %v2279_v52 = vmul.f32 %v2276_v49, %v6106_v21 }
0x10eb   :  { %3163 = vst.msk [vmem:[#allocation3 + $0x68] sm:$0xff] %vm75_vm0, %v3161_v44 }
0x10ec   :  { %2281 = vst.msk [vmem:[#allocation3 + $0x48] sm:$0xff] %vm75_vm0, %v2279_v52  ;;  %v3153_v28 = vpop.permute.xlu0 %3152 }
0x10ed   :  { %v1835_v29 = vpop.permute.xlu1 %1834  ;;  %v3160_v15 = vmul.f32 %v3153_v28, %v6345_v59 }
0x10ee   :  { %v1838_v56 = vmul.f32 %v1835_v29, %v5914_v10  ;;  %v3955_v36 = vld [vmem:[#allocation3 + $0x78] sm:$0xff] }
0x10ef   :  { %3162 = vst.msk [vmem:[#allocation3 + $0x60] sm:$0xff] %vm75_vm0, %v3160_v15  ;;  %4943 = vmatprep.subr.mxu1 %v3955_v36  ;;  %v3954_v38 = vld [vmem:[#allocation3 + $0x70] sm:$0xff] }
0x10f0   :  { %1840 = vst.msk [vmem:[#allocation3 + $0x38] sm:$0xff] %vm75_vm0, %v1838_v56  ;;  %4944 = vmatpush3.msra.mxu1 %v3955_v36  ;;  %v2717_v51 = vpop.permute.xlu0 %2716 }
0x10f1   :  { %v1394_v21 = vpop.permute.xlu1 %1393  ;;  %v2720_v26 = vmul.f32 %v2717_v51, %v6228_v58  ;;  %4945 = vmatprep.subr.mxu1 %v3954_v38 }
0x10f2   :  { %v1397_v25 = vmul.f32 %v1394_v21, %v5802_v39  ;;  %4946 = vmatpush3.msra.mxu1 %v3954_v38  ;;  %v3953_v40 = vld [vmem:[#allocation3 + $0x68] sm:$0xff] }
0x10f3   :  { %2722 = vst.msk [vmem:[#allocation3 + $0x58] sm:$0xff] %vm75_vm0, %v2720_v26  ;;  %4947 = vmatprep.subr.mxu1 %v3953_v40 }
0x10f4   :  { %1399 = vst.msk [vmem:[#allocation3 + $0x28] sm:$0xff] %vm75_vm0, %v1397_v25  ;;  %4948 = vmatpush3.msra.mxu1 %v3953_v40  ;;  %v2712_v10 = vpop.permute.xlu0 %2711 }
0x10f5   :  { %v953_v59 = vpop.permute.xlu1 %952  ;;  %v2719_v41 = vmul.f32 %v2712_v10, %v6233_v62 }
0x10f6   :  { %v956_v2 = vmul.f32 %v953_v59, %v5690_v16  ;;  %v3952_v30 = vld [vmem:[#allocation3 + $0x60] sm:$0xff] }
0x10f7   :  { %2721 = vst.msk [vmem:[#allocation3 + $0x50] sm:$0xff] %vm75_vm0, %v2719_v41  ;;  %4949 = vmatprep.subr.mxu1 %v3952_v30  ;;  %v3947_v18 = vld [vmem:[#allocation3 + $0x38] sm:$0xff] }
0x10f8   :  { %958 = vst.msk [vmem:[#allocation3 + $0x18] sm:$0xff] %vm75_vm0, %v956_v2  ;;  %4950 = vmatpush3.msra.mxu1 %v3952_v30  ;;  %v2271_v39 = vpop.permute.xlu0 %2270 }
0x10f9   :  { %v2278_v58 = vmul.f32 %v2271_v39, %v6111_v12  ;;  %v512_v7 = vpop.permute.xlu1 %511  ;;  %v3949_v12 = vld [vmem:[#allocation3 + $0x48] sm:$0xff] }
0x10fa   :  { %v515_v9 = vmul.f32 %v512_v7, %v5568_v60  ;;  %v3951_v4 = vld [vmem:[#allocation3 + $0x58] sm:$0xff] }
0x10fb   :  { %2280 = vst.msk [vmem:[#allocation3 + $0x40] sm:$0xff] %vm75_vm0, %v2278_v58  ;;  %4951 = vmatprep.subr.mxu1 %v3951_v4 }
0x10fc   :  { %517 = vst.msk [vmem:[#allocation3 + $0x8] sm:$0xff] %vm75_vm0, %v515_v9  ;;  %4952 = vmatpush3.msra.mxu1 %v3951_v4  ;;  %v1830_v16 = vpop.permute.xlu0 %1829 }
0x10fd   :  { %v1837_v62 = vmul.f32 %v1830_v16, %v5919_v24 }
0x10fe   :  { %v3950_v6 = vld [vmem:[#allocation3 + $0x50] sm:$0xff] }
0x10ff   :  { %1839 = vst.msk [vmem:[#allocation3 + $0x30] sm:$0xff] %vm75_vm0, %v1837_v62  ;;  %4953 = vmatprep.subr.mxu1 %v3950_v6  ;;  %v3943_v35 = vld [vmem:[#allocation3 + $0x18] sm:$0xff] }
0x1100   :  { %4954 = vmatpush3.msra.mxu1 %v3950_v6  ;;  %v1389_v5 = vpop.permute.xlu0 %1388 }
0x1101   :  { %v1396_v11 = vmul.f32 %v1389_v5, %v5807_v42  ;;  %4955 = vmatprep.subr.mxu1 %v3949_v12  ;;  %v3945_v42 = vld [vmem:[#allocation3 + $0x28] sm:$0xff] }
0x1102   :  { %4956 = vmatpush3.msra.mxu1 %v3949_v12  ;;  %v3948_v60 = vld [vmem:[#allocation3 + $0x40] sm:$0xff] }
0x1103   :  { %1398 = vst.msk [vmem:[#allocation3 + $0x20] sm:$0xff] %vm75_vm0, %v1396_v11  ;;  %4957 = vmatprep.subr.mxu1 %v3948_v60  ;;  %v3941_v3 = vld [vmem:[#allocation3 + $0x8] sm:$0xff] }
0x1104   :  { %4958 = vmatpush3.msra.mxu1 %v3948_v60  ;;  %v948_v22 = vpop.permute.xlu0 %947 }
0x1105   :  { %v955_v24 = vmul.f32 %v948_v22, %v5695_v19  ;;  %4959 = vmatprep.subr.mxu1 %v3947_v18 }
0x1106   :  { %4960 = vmatpush3.msra.mxu1 %v3947_v18  ;;  %v3946_v33 = vld [vmem:[#allocation3 + $0x30] sm:$0xff] }
0x1107   :  { %957 = vst.msk [vmem:[#allocation3 + $0x10] sm:$0xff] %vm75_vm0, %v955_v24  ;;  %4961 = vmatprep.subr.mxu1 %v3946_v33 }
0x1108   :  { %4962 = vmatpush3.msra.mxu1 %v3946_v33  ;;  %v507_v47 = vpop.permute.xlu0 %506 }
0x1109   :  { %v514_v20 = vmul.f32 %v507_v47, %v5573_v63  ;;  %4963 = vmatprep.subr.mxu1 %v3945_v42  ;;  %v3939_v63 = vld [vmem:[%s6688_s7 + $0x8] sm:$0xff] }
0x110a   :  { %4964 = vmatpush3.msra.mxu1 %v3945_v42  ;;  %v3944_v17 = vld [vmem:[#allocation3 + $0x20] sm:$0xff] }
0x110b   :  { %516 = vst.msk [vmem:[#allocation3] sm:$0xff] %vm75_vm0, %v514_v20  ;;  %4965 = vmatprep.subr.mxu1 %v3944_v17 }
0x110c   :  { %4966 = vmatpush3.msra.mxu1 %v3944_v17 }
0x110d   :  { %4967 = vmatprep.subr.mxu1 %v3943_v35 }
0x110e   :  { %4968 = vmatpush3.msra.mxu1 %v3943_v35  ;;  %v3942_v19 = vld [vmem:[#allocation3 + $0x10] sm:$0xff] }
0x110f   :  { %4969 = vmatprep.subr.mxu1 %v3942_v19 }
0x1110   :  { %4970 = vmatpush3.msra.mxu1 %v3942_v19 }
0x1111   :  { %4971 = vmatprep.subr.mxu1 %v3941_v3 }
0x1112   :  { %4972 = vmatpush3.msra.mxu1 %v3941_v3  ;;  %v3940_v13 = vld [vmem:[#allocation3] sm:$0xff] }
0x1113   :  { %4973 = vmatprep.subr.mxu1 %v3940_v13 }
0x1114   :  { %4974 = vmatpush3.msra.mxu1 %v3940_v13 }
0x1115   :  { %4976 = vmatmul.mubr.f32.vlgmr.msra.gmra.mxu1 %v3939_v63 }
0x11d5   :  { %v4977_v1 = vpop.f32.mrf.mxu1 }
0x11d7   :  { %v4022_v23 = vpop.f32.mrf.mxu1 }
0x11d8   :  { %4986 = vmatprep.mubr.msk.f32.mxu0 %vm75_vm0, %v4022_v23 }
0x11d9   :  { %4987 = vmatmul.mubr.msk.f32.vlgmr.msra.gmra.mxu0 %vm75_vm0, %v4977_v1 }
0x1299   :  { %v4988_v61 = vpop.f32.mrf.mxu0 }
0x129a   :  { %v4109_v27 = vadd.f32 %v4988_v61, %v6470_v57 }
0x129b   :  { %v4103_v14 = vpop.f32.mrf.mxu0 }
0x129c   :  { %v4322_v50 = vmul.f32 -1.442695, %v4109_v27  ;;  %v4104_v0 = vadd.f32 %v6470_v57, %v4103_v14 }
0x129e   :  { %5296 = vpow2.f32 %v4322_v50  ;;  %v4321_v31 = vmul.f32 -1.442695, %v4104_v0 }
0x12a0   :  { %5298 = vpow2.f32 %v4321_v31 }
0x12ab   :  { %v5297_v53 = vpop.eup %5296 }
0x12ac   :  { %v4119_v48 = vadd.f32 1.0, %v5297_v53 }
0x12ad   :  { %v5299_v46 = vpop.eup %5298 }
0x12ae   :  { %5300 = vrcp.f32 %v4119_v48  ;;  %v4118_v8 = vadd.f32 1.0, %v5299_v46 }
0x12b0   :  { %5302 = vrcp.f32 %v4118_v8 }
0x12bb   :  { %v5301_v32 = vpop.eup %5300 }
0x12bc   :  { %4125 = vst.msk [vmem:[%s6689_s14 + $0x8] sm:$0xff] %vm3921_vm4, %v5301_v32 }
0x12bd   :  { %v5303_v45 = vpop.eup %5302 }
0x12be   :  { %4124 = vst.msk [vmem:[%s6689_s14] sm:$0xff] %vm3921_vm4, %v5303_v45 }

</bundles_post_ra>
